<compile_context>
chip_gen: v6e
topology: v6e:2x2x1
jax: 0.10.0
libtpu: 0.0.40
codegen_flags: <defaults>
</compile_context>

<pallas_src>
import functools

import jax
import jax.numpy as jnp
from jax.experimental import pallas as pl
from jax.experimental.pallas import tpu as pltpu


def _round_up(x, m):
    return (x + m - 1) // m * m


# ---------------------------------------------------------------------------
# Pallas kernels (all blocks are [channels, M] with M = N*H*W on lanes)
# ---------------------------------------------------------------------------
def _linear_kernel(w_ref, z_ref, b_ref, o_ref):
    acc = jnp.dot(w_ref[...], z_ref[...], preferred_element_type=jnp.float32)
    o_ref[...] = acc + b_ref[...]


def _bn_kernel(x_ref, g_ref, b_ref, o_ref, *, m_real, eps, slope):
    """Fused training-mode BatchNorm (stats + apply) over the lane axis."""
    x = x_ref[...].astype(jnp.float32)
    mp = x.shape[1]
    mask = jax.lax.broadcasted_iota(jnp.int32, (1, mp), 1) < m_real
    xm = jnp.where(mask, x, 0.0)
    mean = jnp.sum(xm, axis=1, keepdims=True) / m_real
    var = jnp.sum(xm * xm, axis=1, keepdims=True) / m_real - mean * mean
    var = jnp.maximum(var, 0.0)                    # guard f32 cancellation
    scale = g_ref[...] * jax.lax.rsqrt(var + eps)
    shift = b_ref[...] - mean * scale
    y = x * scale + shift
    if slope is not None:
        y = jnp.where(y >= 0.0, y, slope * y)      # LeakyReLU
    o_ref[...] = y


def _ct_bn_lrelu_kernel(w00, w01, w10, w11, x00, x01, x10, x11, g_ref, b_ref,
                        o00, o01, o10, o11, *, m_real, eps, slope):
    """Fused ConvTranspose2d(4,2,1) (sub-pixel parity matmuls) + BN + LeakyReLU."""
    outs = []
    for w_ref, x_ref in ((w00, x00), (w01, x01), (w10, x10), (w11, x11)):
        outs.append(jnp.dot(w_ref[...], x_ref[...],
                            preferred_element_type=jnp.float32))
    mp = outs[0].shape[1]
    mask = jax.lax.broadcasted_iota(jnp.int32, (1, mp), 1) < m_real
    cnt = 4.0 * m_real                             # parity blocks together = full output
    s = 0.0
    sq = 0.0
    for o in outs:
        om = jnp.where(mask, o, 0.0)
        s = s + jnp.sum(om, axis=1, keepdims=True)
        sq = sq + jnp.sum(om * om, axis=1, keepdims=True)
    mean = s / cnt
    var = jnp.maximum(sq / cnt - mean * mean, 0.0)
    scale = g_ref[...] * jax.lax.rsqrt(var + eps)
    shift = b_ref[...] - mean * scale
    for o, o_ref in zip(outs, (o00, o01, o10, o11)):
        y = o * scale + shift
        y = jnp.where(y >= 0.0, y, slope * y)      # LeakyReLU
        o_ref[...] = y


def _conv_tanh_kernel(w_ref, x_ref, b_ref, o_ref):
    acc = jnp.dot(w_ref[...], x_ref[...], preferred_element_type=jnp.float32)
    o_ref[...] = jnp.tanh(acc + b_ref[...])


# ---------------------------------------------------------------------------
# Layer wrappers (plain-JAX glue builds lane-dense [C, M] operands)
# ---------------------------------------------------------------------------
def linear_project(z, w, b):
    """proj^T = W @ z^T + b  ->  (out_dim, N)."""
    N, nz = z.shape
    out_dim = w.shape[0]
    Np = max(128, _round_up(N, 128))
    zt = z.T
    if Np != N:
        zt = jnp.pad(zt, ((0, 0), (0, Np - N)))
    out = pl.pallas_call(
        _linear_kernel,
        out_shape=jax.ShapeDtypeStruct((out_dim, Np), jnp.float32),
        grid=(1,),
        in_specs=[pl.BlockSpec((out_dim, nz), lambda i: (0, 0)),
                  pl.BlockSpec((nz, Np), lambda i: (0, 0)),
                  pl.BlockSpec((out_dim, 1), lambda i: (0, 0))],
        out_specs=pl.BlockSpec((out_dim, Np), lambda i: (0, 0)),
    )(w.astype(jnp.bfloat16), zt.astype(jnp.bfloat16),
      b.reshape(out_dim, 1).astype(jnp.float32))
    return out[:, :N]


def batchnorm(x_cnhw, gamma, beta, slope=None, eps=1e-5):
    """Training-mode BatchNorm2d on a (C, N, H, W) activation (fused stats+apply)."""
    C, N, H, W = x_cnhw.shape
    M = N * H * W
    Mp = max(128, _round_up(M, 128))
    xf = x_cnhw.reshape(C, M)
    if Mp != M:
        xf = jnp.pad(xf, ((0, 0), (0, Mp - M)))
    out = pl.pallas_call(
        functools.partial(_bn_kernel, m_real=M, eps=eps, slope=slope),
        out_shape=jax.ShapeDtypeStruct((C, Mp), jnp.float32),
        grid=(1,),
        in_specs=[pl.BlockSpec((C, Mp), lambda i: (0, 0)),
                  pl.BlockSpec((C, 1), lambda i: (0, 0)),
                  pl.BlockSpec((C, 1), lambda i: (0, 0))],
        out_specs=pl.BlockSpec((C, Mp), lambda i: (0, 0)),
    )(xf, gamma.reshape(C, 1).astype(jnp.float32),
      beta.reshape(C, 1).astype(jnp.float32))
    return out[:, :M].reshape(C, N, H, W)


# Sub-pixel decomposition of ConvTranspose2d(k=4, s=2, p=1):
#   output index 2m+a gets taps (padded_row_offset, kernel_index) from _CT_TAPS[a]
#     even (a=0):  y = x[m]*w[1] + x[m-1]*w[3]
#     odd  (a=1):  y = x[m]*w[2] + x[m+1]*w[0]
_CT_TAPS = (((1, 1), (0, 3)),
            ((1, 2), (2, 0)))


def _ct_pack_weights(w_pt):
    """w_pt (Cin,Cout,4,4) -> 4 parity matrices (Cout, Cin*4) in (dh,dw) tap order."""
    Cin, Cout = w_pt.shape[0], w_pt.shape[1]
    packs = []
    for ah in range(2):
        kh = [t[1] for t in _CT_TAPS[ah]]
        for aw in range(2):
            kw = [t[1] for t in _CT_TAPS[aw]]
            ws = w_pt[:, :, kh, :][:, :, :, kw]                # (Cin, Cout, 2, 2)
            packs.append(jnp.transpose(ws, (1, 0, 2, 3)).reshape(Cout, Cin * 4))
    return packs


def _ct_gather_inputs(x_cnhw):
    """x (Cin,N,H,W) -> 4 parity operands (Cin*4, N*H*W) matching weight order."""
    Cin, N, H, W = x_cnhw.shape
    xp = jnp.pad(x_cnhw, ((0, 0), (0, 0), (1, 1), (1, 1)))
    gathers = []
    for ah in range(2):
        for aw in range(2):
            slabs = [xp[:, :, rh:rh + H, rw:rw + W]
                     for rh, _ in _CT_TAPS[ah] for rw, _ in _CT_TAPS[aw]]
            gathers.append(jnp.stack(slabs, axis=1).reshape(Cin * 4, N * H * W))
    return gathers


def conv_transpose_bn_lrelu(x_cnhw, w_pt, gamma, beta, slope, eps=1e-5):
    """Fused ConvTranspose2d(4,2,1,bias=False) + BatchNorm2d + LeakyReLU."""
    Cin, N, H, W = x_cnhw.shape
    Cout = w_pt.shape[1]
    K = Cin * 4
    M = N * H * W
    Mp = max(128, _round_up(M, 128))
    wpacks = [w.astype(jnp.bfloat16) for w in _ct_pack_weights(w_pt)]
    gathers = []
    for g in _ct_gather_inputs(x_cnhw):
        if Mp != M:
            g = jnp.pad(g, ((0, 0), (0, Mp - M)))
        gathers.append(g.astype(jnp.bfloat16))

    outs = pl.pallas_call(
        functools.partial(_ct_bn_lrelu_kernel, m_real=M, eps=eps, slope=slope),
        out_shape=tuple(jax.ShapeDtypeStruct((Cout, Mp), jnp.float32)
                        for _ in range(4)),
        grid=(1,),
        in_specs=[pl.BlockSpec((Cout, K), lambda i: (0, 0))] * 4
                + [pl.BlockSpec((K, Mp), lambda i: (0, 0))] * 4
                + [pl.BlockSpec((Cout, 1), lambda i: (0, 0))] * 2,
        out_specs=tuple(pl.BlockSpec((Cout, Mp), lambda i: (0, 0))
                        for _ in range(4)),
    )(*wpacks, *gathers,
      gamma.reshape(Cout, 1).astype(jnp.float32),
      beta.reshape(Cout, 1).astype(jnp.float32))

    # interleave the 4 parity blocks into the 2x-upsampled output
    y = jnp.stack([o[:, :M] for o in outs], axis=0).reshape(2, 2, Cout, N, H, W)
    y = jnp.transpose(y, (2, 3, 4, 0, 5, 1)).reshape(Cout, N, 2 * H, 2 * W)
    return y


def conv3x3_tanh(x_cnhw, w_pt, bias):
    """Conv2d(k=3,s=1,p=1) + bias + Tanh; grid tiles the lane (M) axis."""
    Cin, N, H, W = x_cnhw.shape
    Cout = w_pt.shape[0]
    Cp = _round_up(Cout, 8)
    K = Cin * 9
    M = N * H * W

    xp = jnp.pad(x_cnhw, ((0, 0), (0, 0), (1, 1), (1, 1)))
    slabs = [xp[:, :, a:a + H, c:c + W] for a in range(3) for c in range(3)]
    xg = jnp.stack(slabs, axis=1).reshape(K, M)

    tile = min(1024, max(128, _round_up(M, 128)))
    Mp = _round_up(max(M, 128), tile)
    if Mp != M:
        xg = jnp.pad(xg, ((0, 0), (0, Mp - M)))
    wm = jnp.pad(w_pt.reshape(Cout, K), ((0, Cp - Cout), (0, 0)))
    bm = jnp.pad(bias.reshape(Cout, 1), ((0, Cp - Cout), (0, 0)))

    out = pl.pallas_call(
        _conv_tanh_kernel,
        out_shape=jax.ShapeDtypeStruct((Cp, Mp), jnp.float32),
        grid=(Mp // tile,),
        in_specs=[pl.BlockSpec((Cp, K), lambda i: (0, 0)),
                  pl.BlockSpec((K, tile), lambda i: (0, i)),
                  pl.BlockSpec((Cp, 1), lambda i: (0, 0))],
        out_specs=pl.BlockSpec((Cp, tile), lambda i: (0, i)),
        compiler_params=pltpu.CompilerParams(
            dimension_semantics=("parallel",)),
    )(wm.astype(jnp.bfloat16), xg.astype(jnp.bfloat16), bm.astype(jnp.float32))
    return out[:Cout, :M].reshape(Cout, N, H, W)


# ---------------------------------------------------------------------------
# GeneratorB parameters & forward
# ---------------------------------------------------------------------------
def init_params(key, nz, ngf, nc, init_size):
    ih, iw = init_size
    keys = iter(jax.random.split(key, 16))

    def nrm(shape, std, mean=0.0):
        return mean + std * jax.random.normal(next(keys), shape, jnp.float32)

    p = {}
    out_dim = ngf * 8 * ih * iw
    p["lin_w"] = nrm((out_dim, nz), 0.02)                 # nn.Linear weight (out, in)
    p["lin_b"] = jnp.zeros((out_dim,), jnp.float32)
    p["bn0_g"] = nrm((ngf * 8,), 0.02, 1.0)
    p["bn0_b"] = jnp.zeros((ngf * 8,), jnp.float32)
    chans = [ngf * 8, ngf * 4, ngf * 2, ngf, ngf]
    for i in range(4):
        cin, cout = chans[i], chans[i + 1]
        p[f"ct{i}_w"] = nrm((cin, cout, 4, 4), 0.02)      # ConvTranspose2d weight
        p[f"bn{i+1}_g"] = nrm((cout,), 0.02, 1.0)
        p[f"bn{i+1}_b"] = jnp.zeros((cout,), jnp.float32)
    p["conv_w"] = nrm((nc, ngf, 3, 3), 0.02)
    p["conv_b"] = jnp.zeros((nc,), jnp.float32)
    return p


def generator_b_forward(z, params, init_size, slope=0.2):
    ih, iw = init_size
    N = z.shape[0]
    C0 = params["bn0_g"].shape[0]

    # Flatten + Linear (lane axis = padded batch), then PyTorch .view(N,C,ih,iw)
    proj_t = linear_project(z, params["lin_w"], params["lin_b"])   # (C0*ih*iw, N)
    x = jnp.transpose(proj_t.reshape(C0, ih, iw, N), (0, 3, 1, 2))  # (C0, N, ih, iw)

    # BatchNorm2d(ngf*8), no activation
    x = batchnorm(x, params["bn0_g"], params["bn0_b"], slope=None)

    # 4 x fused [ConvTranspose2d(4,2,1) -> BatchNorm2d -> LeakyReLU]
    for i in range(4):
        x = conv_transpose_bn_lrelu(x, params[f"ct{i}_w"],
                                    params[f"bn{i+1}_g"], params[f"bn{i+1}_b"],
                                    slope)

    # Conv2d(ngf, nc, 3, 1, 1) + Tanh (fused)
    y = conv3x3_tanh(x, params["conv_w"], params["conv_b"])
    return jnp.transpose(y, (1, 0, 2, 3))                 # back to NCHW


# ---------------------------------------------------------------------------
if __name__ == "__main__":
    nz, ngf, nc, img_size, slope = 32, 8, 3, 32, 0.2
    init_size = (img_size // 16, img_size // 16)

    key = jax.random.PRNGKey(0)
    pkey, zkey = jax.random.split(key)
    params = init_params(pkey, nz, ngf, nc, init_size)
    z = jax.random.normal(zkey, (2, nz), jnp.float32)

    fwd = jax.jit(functools.partial(generator_b_forward,
                                    init_size=init_size, slope=slope))
    out = jax.block_until_ready(fwd(z, params))

    assert out.shape == (2, nc, img_size, img_size), out.shape
    assert bool(jnp.all(jnp.isfinite(out)))
    assert bool(jnp.all(jnp.abs(out) <= 1.0 + 1e-6))      # tanh range
    print("KERNEL_OK")
</pallas_src>

<mosaic_0001>
module attributes {stable_mosaic.version = 11 : i64} {
  func.func @_linear_kernel(%arg0: i32, %arg1: memref<256x32xbf16, #tpu.memory_space<vmem>>, %arg2: memref<32x128xbf16, #tpu.memory_space<vmem>>, %arg3: memref<256x1xf32, #tpu.memory_space<vmem>>, %arg4: memref<256x128xf32, #tpu.memory_space<vmem>>) attributes {dimension_semantics = [#tpu.dimension_semantics<arbitrary>], iteration_bounds = array<i64: 1>, scalar_prefetch = 0 : i64, scratch_operands = 0 : i64, tpu.core_type = #tpu.core_type<tc>, window_params = [{pipeline_mode = #tpu.pipeline_mode<synchronous>, transform_indices = @transform_0, window_bounds = array<i64: 256, 32>}, {pipeline_mode = #tpu.pipeline_mode<synchronous>, transform_indices = @transform_1, window_bounds = array<i64: 32, 128>}, {pipeline_mode = #tpu.pipeline_mode<synchronous>, transform_indices = @transform_2, window_bounds = array<i64: 256, 1>}, {pipeline_mode = #tpu.pipeline_mode<synchronous>, transform_indices = @transform_3, window_bounds = array<i64: 256, 128>}]} {
    %c0 = arith.constant 0 : index
    %c0_0 = arith.constant 0 : index
    %0 = vector.load %arg1[%c0, %c0_0] : memref<256x32xbf16, #tpu.memory_space<vmem>>, vector<256x32xbf16>
    %c0_1 = arith.constant 0 : index
    %c0_2 = arith.constant 0 : index
    %1 = vector.load %arg2[%c0_1, %c0_2] : memref<32x128xbf16, #tpu.memory_space<vmem>>, vector<32x128xbf16>
    %cst = arith.constant dense<0.000000e+00> : vector<256x128xf32>
    %2 = tpu.matmul %0, %1, %cst {dimension_numbers = #tpu.dot_dimension_numbers<[1], [0], [0], [1], [0, 0, 1, 1], [], []>} : vector<256x32xbf16>, vector<32x128xbf16>, vector<256x128xf32> -> vector<256x128xf32>
    %c0_3 = arith.constant 0 : index
    %c0_4 = arith.constant 0 : index
    %3 = vector.load %arg3[%c0_3, %c0_4] : memref<256x1xf32, #tpu.memory_space<vmem>>, vector<256x1xf32>
    %4 = vector.broadcast %3 : vector<256x1xf32> to vector<256x128xf32>
    %5 = arith.addf %2, %4 : vector<256x128xf32>
    %c0_5 = arith.constant 0 : index
    %c0_6 = arith.constant 0 : index
    %6 = vector.load %arg4[%c0_5, %c0_6] : memref<256x128xf32, #tpu.memory_space<vmem>>, vector<256x128xf32>
    tpu.vector_store %arg4[%c0_5, %c0_6], %5 {strides = array<i32>} : memref<256x128xf32, #tpu.memory_space<vmem>>, vector<256x128xf32>,
    return
  }
  func.func @transform_0(%arg0: i32) -> (i32, i32) {
    %c0_i32 = arith.constant 0 : i32
    %c0_i32_0 = arith.constant 0 : i32
    %c0_i32_1 = arith.constant 0 : i32
    return %c0_i32, %c0_i32_0 : i32, i32
  }
  func.func @transform_1(%arg0: i32) -> (i32, i32) {
    %c0_i32 = arith.constant 0 : i32
    %c0_i32_0 = arith.constant 0 : i32
    %c0_i32_1 = arith.constant 0 : i32
    return %c0_i32, %c0_i32_0 : i32, i32
  }
  func.func @transform_2(%arg0: i32) -> (i32, i32) {
    %c0_i32 = arith.constant 0 : i32
    %c0_i32_0 = arith.constant 0 : i32
    %c0_i32_1 = arith.constant 0 : i32
    return %c0_i32, %c0_i32_0 : i32, i32
  }
  func.func @transform_3(%arg0: i32) -> (i32, i32) {
    %c0_i32 = arith.constant 0 : i32
    %c0_i32_0 = arith.constant 0 : i32
    %c0_i32_1 = arith.constant 0 : i32
    return %c0_i32, %c0_i32_0 : i32, i32
  }
}

module attributes {stable_mosaic.version = 11 : i64} {
  func.func @_bn_kernel(%arg0: i32, %arg1: memref<64x128xf32, #tpu.memory_space<vmem>>, %arg2: memref<64x1xf32, #tpu.memory_space<vmem>>, %arg3: memref<64x1xf32, #tpu.memory_space<vmem>>, %arg4: memref<64x128xf32, #tpu.memory_space<vmem>>) attributes {dimension_semantics = [#tpu.dimension_semantics<arbitrary>], iteration_bounds = array<i64: 1>, scalar_prefetch = 0 : i64, scratch_operands = 0 : i64, tpu.core_type = #tpu.core_type<tc>, window_params = [{pipeline_mode = #tpu.pipeline_mode<synchronous>, transform_indices = @transform_0, window_bounds = array<i64: 64, 128>}, {pipeline_mode = #tpu.pipeline_mode<synchronous>, transform_indices = @transform_1, window_bounds = array<i64: 64, 1>}, {pipeline_mode = #tpu.pipeline_mode<synchronous>, transform_indices = @transform_2, window_bounds = array<i64: 64, 1>}, {pipeline_mode = #tpu.pipeline_mode<synchronous>, transform_indices = @transform_3, window_bounds = array<i64: 64, 128>}]} {
    %c0 = arith.constant 0 : index
    %c0_0 = arith.constant 0 : index
    %0 = vector.load %arg1[%c0, %c0_0] : memref<64x128xf32, #tpu.memory_space<vmem>>, vector<64x128xf32>
    %1 = tpu.iota {dimensions = array<i32: 1>} : vector<1x128xi32>
    %c8_i32 = arith.constant 8 : i32
    %2 = vector.broadcast %c8_i32 : i32 to vector<1x128xi32>
    %3 = arith.cmpi slt, %1, %2 : vector<1x128xi32>
    %cst = arith.constant 0.000000e+00 : f32
    %4 = vector.shape_cast %3 : vector<1x128xi1> to vector<1x128xi1>
    %5 = vector.broadcast %4 : vector<1x128xi1> to vector<64x128xi1>
    %6 = vector.broadcast %cst : f32 to vector<64x128xf32>
    %7 = arith.select %5, %0, %6 : vector<64x128xi1>, vector<64x128xf32>
    %cst_1 = arith.constant dense<0.000000e+00> : vector<64xf32>
    %8 = vector.multi_reduction <add>, %7, %cst_1 [1] : vector<64x128xf32> to vector<64xf32>
    %9 = vector.shape_cast %8 : vector<64xf32> to vector<64x1xf32>
    %cst_2 = arith.constant 8.000000e+00 : f32
    %10 = vector.broadcast %cst_2 : f32 to vector<64x1xf32>
    %11 = arith.divf %9, %10 : vector<64x1xf32>
    %12 = arith.mulf %7, %7 : vector<64x128xf32>
    %cst_3 = arith.constant dense<0.000000e+00> : vector<64xf32>
    %13 = vector.multi_reduction <add>, %12, %cst_3 [1] : vector<64x128xf32> to vector<64xf32>
    %14 = vector.shape_cast %13 : vector<64xf32> to vector<64x1xf32>
    %cst_4 = arith.constant 8.000000e+00 : f32
    %15 = vector.broadcast %cst_4 : f32 to vector<64x1xf32>
    %16 = arith.divf %14, %15 : vector<64x1xf32>
    %17 = arith.mulf %11, %11 : vector<64x1xf32>
    %18 = arith.subf %16, %17 : vector<64x1xf32>
    %cst_5 = arith.constant 0.000000e+00 : f32
    %19 = vector.broadcast %cst_5 : f32 to vector<64x1xf32>
    %20 = arith.maximumf %18, %19 : vector<64x1xf32>
    %c0_6 = arith.constant 0 : index
    %c0_7 = arith.constant 0 : index
    %21 = vector.load %arg2[%c0_6, %c0_7] : memref<64x1xf32, #tpu.memory_space<vmem>>, vector<64x1xf32>
    %cst_8 = arith.constant 9.99999974E-6 : f32
    %22 = vector.broadcast %cst_8 : f32 to vector<64x1xf32>
    %23 = arith.addf %20, %22 : vector<64x1xf32>
    %24 = math.rsqrt %23 : vector<64x1xf32>
    %25 = arith.mulf %21, %24 : vector<64x1xf32>
    %c0_9 = arith.constant 0 : index
    %c0_10 = arith.constant 0 : index
    %26 = vector.load %arg3[%c0_9, %c0_10] : memref<64x1xf32, #tpu.memory_space<vmem>>, vector<64x1xf32>
    %27 = arith.mulf %11, %25 : vector<64x1xf32>
    %28 = arith.subf %26, %27 : vector<64x1xf32>
    %29 = vector.broadcast %25 : vector<64x1xf32> to vector<64x128xf32>
    %30 = arith.mulf %0, %29 : vector<64x128xf32>
    %31 = vector.broadcast %28 : vector<64x1xf32> to vector<64x128xf32>
    %32 = arith.addf %30, %31 : vector<64x128xf32>
    %c0_11 = arith.constant 0 : index
    %c0_12 = arith.constant 0 : index
    %33 = vector.load %arg4[%c0_11, %c0_12] : memref<64x128xf32, #tpu.memory_space<vmem>>, vector<64x128xf32>
    tpu.vector_store %arg4[%c0_11, %c0_12], %32 {strides = array<i32>} : memref<64x128xf32, #tpu.memory_space<vmem>>, vector<64x128xf32>,
    return
  }
  func.func @transform_0(%arg0: i32) -> (i32, i32) {
    %c0_i32 = arith.constant 0 : i32
    %c0_i32_0 = arith.constant 0 : i32
    %c0_i32_1 = arith.constant 0 : i32
    return %c0_i32, %c0_i32_0 : i32, i32
  }
  func.func @transform_1(%arg0: i32) -> (i32, i32) {
    %c0_i32 = arith.constant 0 : i32
    %c0_i32_0 = arith.constant 0 : i32
    %c0_i32_1 = arith.constant 0 : i32
    return %c0_i32, %c0_i32_0 : i32, i32
  }
  func.func @transform_2(%arg0: i32) -> (i32, i32) {
    %c0_i32 = arith.constant 0 : i32
    %c0_i32_0 = arith.constant 0 : i32
    %c0_i32_1 = arith.constant 0 : i32
    return %c0_i32, %c0_i32_0 : i32, i32
  }
  func.func @transform_3(%arg0: i32) -> (i32, i32) {
    %c0_i32 = arith.constant 0 : i32
    %c0_i32_0 = arith.constant 0 : i32
    %c0_i32_1 = arith.constant 0 : i32
    return %c0_i32, %c0_i32_0 : i32, i32
  }
}

module attributes {stable_mosaic.version = 11 : i64} {
  func.func @_ct_bn_lrelu_kernel(%arg0: i32, %arg1: memref<32x256xbf16, #tpu.memory_space<vmem>>, %arg2: memref<32x256xbf16, #tpu.memory_space<vmem>>, %arg3: memref<32x256xbf16, #tpu.memory_space<vmem>>, %arg4: memref<32x256xbf16, #tpu.memory_space<vmem>>, %arg5: memref<256x128xbf16, #tpu.memory_space<vmem>>, %arg6: memref<256x128xbf16, #tpu.memory_space<vmem>>, %arg7: memref<256x128xbf16, #tpu.memory_space<vmem>>, %arg8: memref<256x128xbf16, #tpu.memory_space<vmem>>, %arg9: memref<32x1xf32, #tpu.memory_space<vmem>>, %arg10: memref<32x1xf32, #tpu.memory_space<vmem>>, %arg11: memref<32x128xf32, #tpu.memory_space<vmem>>, %arg12: memref<32x128xf32, #tpu.memory_space<vmem>>, %arg13: memref<32x128xf32, #tpu.memory_space<vmem>>, %arg14: memref<32x128xf32, #tpu.memory_space<vmem>>) attributes {dimension_semantics = [#tpu.dimension_semantics<arbitrary>], iteration_bounds = array<i64: 1>, scalar_prefetch = 0 : i64, scratch_operands = 0 : i64, tpu.core_type = #tpu.core_type<tc>, window_params = [{pipeline_mode = #tpu.pipeline_mode<synchronous>, transform_indices = @transform_0, window_bounds = array<i64: 32, 256>}, {pipeline_mode = #tpu.pipeline_mode<synchronous>, transform_indices = @transform_1, window_bounds = array<i64: 32, 256>}, {pipeline_mode = #tpu.pipeline_mode<synchronous>, transform_indices = @transform_2, window_bounds = array<i64: 32, 256>}, {pipeline_mode = #tpu.pipeline_mode<synchronous>, transform_indices = @transform_3, window_bounds = array<i64: 32, 256>}, {pipeline_mode = #tpu.pipeline_mode<synchronous>, transform_indices = @transform_4, window_bounds = array<i64: 256, 128>}, {pipeline_mode = #tpu.pipeline_mode<synchronous>, transform_indices = @transform_5, window_bounds = array<i64: 256, 128>}, {pipeline_mode = #tpu.pipeline_mode<synchronous>, transform_indices = @transform_6, window_bounds = array<i64: 256, 128>}, {pipeline_mode = #tpu.pipeline_mode<synchronous>, transform_indices = @transform_7, window_bounds = array<i64: 256, 128>}, {pipeline_mode = #tpu.pipeline_mode<synchronous>, transform_indices = @transform_8, window_bounds = array<i64: 32, 1>}, {pipeline_mode = #tpu.pipeline_mode<synchronous>, transform_indices = @transform_9, window_bounds = array<i64: 32, 1>}, {pipeline_mode = #tpu.pipeline_mode<synchronous>, transform_indices = @transform_10, window_bounds = array<i64: 32, 128>}, {pipeline_mode = #tpu.pipeline_mode<synchronous>, transform_indices = @transform_11, window_bounds = array<i64: 32, 128>}, {pipeline_mode = #tpu.pipeline_mode<synchronous>, transform_indices = @transform_12, window_bounds = array<i64: 32, 128>}, {pipeline_mode = #tpu.pipeline_mode<synchronous>, transform_indices = @transform_13, window_bounds = array<i64: 32, 128>}]} {
    %c0 = arith.constant 0 : index
    %c0_0 = arith.constant 0 : index
    %0 = vector.load %arg1[%c0, %c0_0] : memref<32x256xbf16, #tpu.memory_space<vmem>>, vector<32x256xbf16>
    %c0_1 = arith.constant 0 : index
    %c0_2 = arith.constant 0 : index
    %1 = vector.load %arg5[%c0_1, %c0_2] : memref<256x128xbf16, #tpu.memory_space<vmem>>, vector<256x128xbf16>
    %cst = arith.constant dense<0.000000e+00> : vector<32x128xf32>
    %2 = tpu.matmul %0, %1, %cst {dimension_numbers = #tpu.dot_dimension_numbers<[1], [0], [0], [1], [0, 0, 1, 1], [], []>} : vector<32x256xbf16>, vector<256x128xbf16>, vector<32x128xf32> -> vector<32x128xf32>
    %c0_3 = arith.constant 0 : index
    %c0_4 = arith.constant 0 : index
    %3 = vector.load %arg2[%c0_3, %c0_4] : memref<32x256xbf16, #tpu.memory_space<vmem>>, vector<32x256xbf16>
    %c0_5 = arith.constant 0 : index
    %c0_6 = arith.constant 0 : index
    %4 = vector.load %arg6[%c0_5, %c0_6] : memref<256x128xbf16, #tpu.memory_space<vmem>>, vector<256x128xbf16>
    %cst_7 = arith.constant dense<0.000000e+00> : vector<32x128xf32>
    %5 = tpu.matmul %3, %4, %cst_7 {dimension_numbers = #tpu.dot_dimension_numbers<[1], [0], [0], [1], [0, 0, 1, 1], [], []>} : vector<32x256xbf16>, vector<256x128xbf16>, vector<32x128xf32> -> vector<32x128xf32>
    %c0_8 = arith.constant 0 : index
    %c0_9 = arith.constant 0 : index
    %6 = vector.load %arg3[%c0_8, %c0_9] : memref<32x256xbf16, #tpu.memory_space<vmem>>, vector<32x256xbf16>
    %c0_10 = arith.constant 0 : index
    %c0_11 = arith.constant 0 : index
    %7 = vector.load %arg7[%c0_10, %c0_11] : memref<256x128xbf16, #tpu.memory_space<vmem>>, vector<256x128xbf16>
    %cst_12 = arith.constant dense<0.000000e+00> : vector<32x128xf32>
    %8 = tpu.matmul %6, %7, %cst_12 {dimension_numbers = #tpu.dot_dimension_numbers<[1], [0], [0], [1], [0, 0, 1, 1], [], []>} : vector<32x256xbf16>, vector<256x128xbf16>, vector<32x128xf32> -> vector<32x128xf32>
    %c0_13 = arith.constant 0 : index
    %c0_14 = arith.constant 0 : index
    %9 = vector.load %arg4[%c0_13, %c0_14] : memref<32x256xbf16, #tpu.memory_space<vmem>>, vector<32x256xbf16>
    %c0_15 = arith.constant 0 : index
    %c0_16 = arith.constant 0 : index
    %10 = vector.load %arg8[%c0_15, %c0_16] : memref<256x128xbf16, #tpu.memory_space<vmem>>, vector<256x128xbf16>
    %cst_17 = arith.constant dense<0.000000e+00> : vector<32x128xf32>
    %11 = tpu.matmul %9, %10, %cst_17 {dimension_numbers = #tpu.dot_dimension_numbers<[1], [0], [0], [1], [0, 0, 1, 1], [], []>} : vector<32x256xbf16>, vector<256x128xbf16>, vector<32x128xf32> -> vector<32x128xf32>
    %12 = tpu.iota {dimensions = array<i32: 1>} : vector<1x128xi32>
    %c8_i32 = arith.constant 8 : i32
    %13 = vector.broadcast %c8_i32 : i32 to vector<1x128xi32>
    %14 = arith.cmpi slt, %12, %13 : vector<1x128xi32>
    %cst_18 = arith.constant 0.000000e+00 : f32
    %15 = vector.shape_cast %14 : vector<1x128xi1> to vector<1x128xi1>
    %16 = vector.broadcast %15 : vector<1x128xi1> to vector<32x128xi1>
    %17 = vector.broadcast %cst_18 : f32 to vector<32x128xf32>
    %18 = arith.select %16, %2, %17 : vector<32x128xi1>, vector<32x128xf32>
    %cst_19 = arith.constant dense<0.000000e+00> : vector<32xf32>
    %19 = vector.multi_reduction <add>, %18, %cst_19 [1] : vector<32x128xf32> to vector<32xf32>
    %20 = vector.shape_cast %19 : vector<32xf32> to vector<32x1xf32>
    %cst_20 = arith.constant 0.000000e+00 : f32
    %21 = vector.broadcast %cst_20 : f32 to vector<32x1xf32>
    %22 = arith.addf %21, %20 : vector<32x1xf32>
    %23 = arith.mulf %18, %18 : vector<32x128xf32>
    %cst_21 = arith.constant dense<0.000000e+00> : vector<32xf32>
    %24 = vector.multi_reduction <add>, %23, %cst_21 [1] : vector<32x128xf32> to vector<32xf32>
    %25 = vector.shape_cast %24 : vector<32xf32> to vector<32x1xf32>
    %cst_22 = arith.constant 0.000000e+00 : f32
    %26 = vector.broadcast %cst_22 : f32 to vector<32x1xf32>
    %27 = arith.addf %26, %25 : vector<32x1xf32>
    %cst_23 = arith.constant 0.000000e+00 : f32
    %28 = vector.shape_cast %14 : vector<1x128xi1> to vector<1x128xi1>
    %29 = vector.broadcast %28 : vector<1x128xi1> to vector<32x128xi1>
    %30 = vector.broadcast %cst_23 : f32 to vector<32x128xf32>
    %31 = arith.select %29, %5, %30 : vector<32x128xi1>, vector<32x128xf32>
    %cst_24 = arith.constant dense<0.000000e+00> : vector<32xf32>
    %32 = vector.multi_reduction <add>, %31, %cst_24 [1] : vector<32x128xf32> to vector<32xf32>
    %33 = vector.shape_cast %32 : vector<32xf32> to vector<32x1xf32>
    %34 = arith.addf %22, %33 : vector<32x1xf32>
    %35 = arith.mulf %31, %31 : vector<32x128xf32>
    %cst_25 = arith.constant dense<0.000000e+00> : vector<32xf32>
    %36 = vector.multi_reduction <add>, %35, %cst_25 [1] : vector<32x128xf32> to vector<32xf32>
    %37 = vector.shape_cast %36 : vector<32xf32> to vector<32x1xf32>
    %38 = arith.addf %27, %37 : vector<32x1xf32>
    %cst_26 = arith.constant 0.000000e+00 : f32
    %39 = vector.shape_cast %14 : vector<1x128xi1> to vector<1x128xi1>
    %40 = vector.broadcast %39 : vector<1x128xi1> to vector<32x128xi1>
    %41 = vector.broadcast %cst_26 : f32 to vector<32x128xf32>
    %42 = arith.select %40, %8, %41 : vector<32x128xi1>, vector<32x128xf32>
    %cst_27 = arith.constant dense<0.000000e+00> : vector<32xf32>
    %43 = vector.multi_reduction <add>, %42, %cst_27 [1] : vector<32x128xf32> to vector<32xf32>
    %44 = vector.shape_cast %43 : vector<32xf32> to vector<32x1xf32>
    %45 = arith.addf %34, %44 : vector<32x1xf32>
    %46 = arith.mulf %42, %42 : vector<32x128xf32>
    %cst_28 = arith.constant dense<0.000000e+00> : vector<32xf32>
    %47 = vector.multi_reduction <add>, %46, %cst_28 [1] : vector<32x128xf32> to vector<32xf32>
    %48 = vector.shape_cast %47 : vector<32xf32> to vector<32x1xf32>
    %49 = arith.addf %38, %48 : vector<32x1xf32>
    %cst_29 = arith.constant 0.000000e+00 : f32
    %50 = vector.shape_cast %14 : vector<1x128xi1> to vector<1x128xi1>
    %51 = vector.broadcast %50 : vector<1x128xi1> to vector<32x128xi1>
    %52 = vector.broadcast %cst_29 : f32 to vector<32x128xf32>
    %53 = arith.select %51, %11, %52 : vector<32x128xi1>, vector<32x128xf32>
    %cst_30 = arith.constant dense<0.000000e+00> : vector<32xf32>
    %54 = vector.multi_reduction <add>, %53, %cst_30 [1] : vector<32x128xf32> to vector<32xf32>
    %55 = vector.shape_cast %54 : vector<32xf32> to vector<32x1xf32>
    %56 = arith.addf %45, %55 : vector<32x1xf32>
    %57 = arith.mulf %53, %53 : vector<32x128xf32>
    %cst_31 = arith.constant dense<0.000000e+00> : vector<32xf32>
    %58 = vector.multi_reduction <add>, %57, %cst_31 [1] : vector<32x128xf32> to vector<32xf32>
    %59 = vector.shape_cast %58 : vector<32xf32> to vector<32x1xf32>
    %60 = arith.addf %49, %59 : vector<32x1xf32>
    %cst_32 = arith.constant 3.200000e+01 : f32
    %61 = vector.broadcast %cst_32 : f32 to vector<32x1xf32>
    %62 = arith.divf %56, %61 : vector<32x1xf32>
    %cst_33 = arith.constant 3.200000e+01 : f32
    %63 = vector.broadcast %cst_33 : f32 to vector<32x1xf32>
    %64 = arith.divf %60, %63 : vector<32x1xf32>
    %65 = arith.mulf %62, %62 : vector<32x1xf32>
    %66 = arith.subf %64, %65 : vector<32x1xf32>
    %cst_34 = arith.constant 0.000000e+00 : f32
    %67 = vector.broadcast %cst_34 : f32 to vector<32x1xf32>
    %68 = arith.maximumf %66, %67 : vector<32x1xf32>
    %c0_35 = arith.constant 0 : index
    %c0_36 = arith.constant 0 : index
    %69 = vector.load %arg9[%c0_35, %c0_36] : memref<32x1xf32, #tpu.memory_space<vmem>>, vector<32x1xf32>
    %cst_37 = arith.constant 9.99999974E-6 : f32
    %70 = vector.broadcast %cst_37 : f32 to vector<32x1xf32>
    %71 = arith.addf %68, %70 : vector<32x1xf32>
    %72 = math.rsqrt %71 : vector<32x1xf32>
    %73 = arith.mulf %69, %72 : vector<32x1xf32>
    %c0_38 = arith.constant 0 : index
    %c0_39 = arith.constant 0 : index
    %74 = vector.load %arg10[%c0_38, %c0_39] : memref<32x1xf32, #tpu.memory_space<vmem>>, vector<32x1xf32>
    %75 = arith.mulf %62, %73 : vector<32x1xf32>
    %76 = arith.subf %74, %75 : vector<32x1xf32>
    %77 = vector.broadcast %73 : vector<32x1xf32> to vector<32x128xf32>
    %78 = arith.mulf %2, %77 : vector<32x128xf32>
    %79 = vector.broadcast %76 : vector<32x1xf32> to vector<32x128xf32>
    %80 = arith.addf %78, %79 : vector<32x128xf32>
    %cst_40 = arith.constant 0.000000e+00 : f32
    %81 = vector.broadcast %cst_40 : f32 to vector<32x128xf32>
    %82 = arith.cmpf oge, %80, %81 : vector<32x128xf32>
    %cst_41 = arith.constant 2.000000e-01 : f32
    %83 = vector.broadcast %cst_41 : f32 to vector<32x128xf32>
    %84 = arith.mulf %83, %80 : vector<32x128xf32>
    %85 = arith.select %82, %80, %84 : vector<32x128xi1>, vector<32x128xf32>
    %c0_42 = arith.constant 0 : index
    %c0_43 = arith.constant 0 : index
    %86 = vector.load %arg11[%c0_42, %c0_43] : memref<32x128xf32, #tpu.memory_space<vmem>>, vector<32x128xf32>
    tpu.vector_store %arg11[%c0_42, %c0_43], %85 {strides = array<i32>} : memref<32x128xf32, #tpu.memory_space<vmem>>, vector<32x128xf32>,
    %87 = vector.broadcast %73 : vector<32x1xf32> to vector<32x128xf32>
    %88 = arith.mulf %5, %87 : vector<32x128xf32>
    %89 = vector.broadcast %76 : vector<32x1xf32> to vector<32x128xf32>
    %90 = arith.addf %88, %89 : vector<32x128xf32>
    %cst_44 = arith.constant 0.000000e+00 : f32
    %91 = vector.broadcast %cst_44 : f32 to vector<32x128xf32>
    %92 = arith.cmpf oge, %90, %91 : vector<32x128xf32>
    %cst_45 = arith.constant 2.000000e-01 : f32
    %93 = vector.broadcast %cst_45 : f32 to vector<32x128xf32>
    %94 = arith.mulf %93, %90 : vector<32x128xf32>
    %95 = arith.select %92, %90, %94 : vector<32x128xi1>, vector<32x128xf32>
    %c0_46 = arith.constant 0 : index
    %c0_47 = arith.constant 0 : index
    %96 = vector.load %arg12[%c0_46, %c0_47] : memref<32x128xf32, #tpu.memory_space<vmem>>, vector<32x128xf32>
    tpu.vector_store %arg12[%c0_46, %c0_47], %95 {strides = array<i32>} : memref<32x128xf32, #tpu.memory_space<vmem>>, vector<32x128xf32>,
    %97 = vector.broadcast %73 : vector<32x1xf32> to vector<32x128xf32>
    %98 = arith.mulf %8, %97 : vector<32x128xf32>
    %99 = vector.broadcast %76 : vector<32x1xf32> to vector<32x128xf32>
    %100 = arith.addf %98, %99 : vector<32x128xf32>
    %cst_48 = arith.constant 0.000000e+00 : f32
    %101 = vector.broadcast %cst_48 : f32 to vector<32x128xf32>
    %102 = arith.cmpf oge, %100, %101 : vector<32x128xf32>
    %cst_49 = arith.constant 2.000000e-01 : f32
    %103 = vector.broadcast %cst_49 : f32 to vector<32x128xf32>
    %104 = arith.mulf %103, %100 : vector<32x128xf32>
    %105 = arith.select %102, %100, %104 : vector<32x128xi1>, vector<32x128xf32>
    %c0_50 = arith.constant 0 : index
    %c0_51 = arith.constant 0 : index
    %106 = vector.load %arg13[%c0_50, %c0_51] : memref<32x128xf32, #tpu.memory_space<vmem>>, vector<32x128xf32>
    tpu.vector_store %arg13[%c0_50, %c0_51], %105 {strides = array<i32>} : memref<32x128xf32, #tpu.memory_space<vmem>>, vector<32x128xf32>,
    %107 = vector.broadcast %73 : vector<32x1xf32> to vector<32x128xf32>
    %108 = arith.mulf %11, %107 : vector<32x128xf32>
    %109 = vector.broadcast %76 : vector<32x1xf32> to vector<32x128xf32>
    %110 = arith.addf %108, %109 : vector<32x128xf32>
    %cst_52 = arith.constant 0.000000e+00 : f32
    %111 = vector.broadcast %cst_52 : f32 to vector<32x128xf32>
    %112 = arith.cmpf oge, %110, %111 : vector<32x128xf32>
    %cst_53 = arith.constant 2.000000e-01 : f32
    %113 = vector.broadcast %cst_53 : f32 to vector<32x128xf32>
    %114 = arith.mulf %113, %110 : vector<32x128xf32>
    %115 = arith.select %112, %110, %114 : vector<32x128xi1>, vector<32x128xf32>
    %c0_54 = arith.constant 0 : index
    %c0_55 = arith.constant 0 : index
    %116 = vector.load %arg14[%c0_54, %c0_55] : memref<32x128xf32, #tpu.memory_space<vmem>>, vector<32x128xf32>
    tpu.vector_store %arg14[%c0_54, %c0_55], %115 {strides = array<i32>} : memref<32x128xf32, #tpu.memory_space<vmem>>, vector<32x128xf32>,
    return
  }
  func.func @transform_0(%arg0: i32) -> (i32, i32) {
    %c0_i32 = arith.constant 0 : i32
    %c0_i32_0 = arith.constant 0 : i32
    %c0_i32_1 = arith.constant 0 : i32
    return %c0_i32, %c0_i32_0 : i32, i32
  }
  func.func @transform_1(%arg0: i32) -> (i32, i32) {
    %c0_i32 = arith.constant 0 : i32
    %c0_i32_0 = arith.constant 0 : i32
    %c0_i32_1 = arith.constant 0 : i32
    return %c0_i32, %c0_i32_0 : i32, i32
  }
  func.func @transform_2(%arg0: i32) -> (i32, i32) {
    %c0_i32 = arith.constant 0 : i32
    %c0_i32_0 = arith.constant 0 : i32
    %c0_i32_1 = arith.constant 0 : i32
    return %c0_i32, %c0_i32_0 : i32, i32
  }
  func.func @transform_3(%arg0: i32) -> (i32, i32) {
    %c0_i32 = arith.constant 0 : i32
    %c0_i32_0 = arith.constant 0 : i32
    %c0_i32_1 = arith.constant 0 : i32
    return %c0_i32, %c0_i32_0 : i32, i32
  }
  func.func @transform_4(%arg0: i32) -> (i32, i32) {
    %c0_i32 = arith.constant 0 : i32
    %c0_i32_0 = arith.constant 0 : i32
    %c0_i32_1 = arith.constant 0 : i32
    return %c0_i32, %c0_i32_0 : i32, i32
  }
  func.func @transform_5(%arg0: i32) -> (i32, i32) {
    %c0_i32 = arith.constant 0 : i32
    %c0_i32_0 = arith.constant 0 : i32
    %c0_i32_1 = arith.constant 0 : i32
    return %c0_i32, %c0_i32_0 : i32, i32
  }
  func.func @transform_6(%arg0: i32) -> (i32, i32) {
    %c0_i32 = arith.constant 0 : i32
    %c0_i32_0 = arith.constant 0 : i32
    %c0_i32_1 = arith.constant 0 : i32
    return %c0_i32, %c0_i32_0 : i32, i32
  }
  func.func @transform_7(%arg0: i32) -> (i32, i32) {
    %c0_i32 = arith.constant 0 : i32
    %c0_i32_0 = arith.constant 0 : i32
    %c0_i32_1 = arith.constant 0 : i32
    return %c0_i32, %c0_i32_0 : i32, i32
  }
  func.func @transform_8(%arg0: i32) -> (i32, i32) {
    %c0_i32 = arith.constant 0 : i32
    %c0_i32_0 = arith.constant 0 : i32
    %c0_i32_1 = arith.constant 0 : i32
    return %c0_i32, %c0_i32_0 : i32, i32
  }
  func.func @transform_9(%arg0: i32) -> (i32, i32) {
    %c0_i32 = arith.constant 0 : i32
    %c0_i32_0 = arith.constant 0 : i32
    %c0_i32_1 = arith.constant 0 : i32
    return %c0_i32, %c0_i32_0 : i32, i32
  }
  func.func @transform_10(%arg0: i32) -> (i32, i32) {
    %c0_i32 = arith.constant 0 : i32
    %c0_i32_0 = arith.constant 0 : i32
    %c0_i32_1 = arith.constant 0 : i32
    return %c0_i32, %c0_i32_0 : i32, i32
  }
  func.func @transform_11(%arg0: i32) -> (i32, i32) {
    %c0_i32 = arith.constant 0 : i32
    %c0_i32_0 = arith.constant 0 : i32
    %c0_i32_1 = arith.constant 0 : i32
    return %c0_i32, %c0_i32_0 : i32, i32
  }
  func.func @transform_12(%arg0: i32) -> (i32, i32) {
    %c0_i32 = arith.constant 0 : i32
    %c0_i32_0 = arith.constant 0 : i32
    %c0_i32_1 = arith.constant 0 : i32
    return %c0_i32, %c0_i32_0 : i32, i32
  }
  func.func @transform_13(%arg0: i32) -> (i32, i32) {
    %c0_i32 = arith.constant 0 : i32
    %c0_i32_0 = arith.constant 0 : i32
    %c0_i32_1 = arith.constant 0 : i32
    return %c0_i32, %c0_i32_0 : i32, i32
  }
}

module attributes {stable_mosaic.version = 11 : i64} {
  func.func @_ct_bn_lrelu_kernel(%arg0: i32, %arg1: memref<16x128xbf16, #tpu.memory_space<vmem>>, %arg2: memref<16x128xbf16, #tpu.memory_space<vmem>>, %arg3: memref<16x128xbf16, #tpu.memory_space<vmem>>, %arg4: memref<16x128xbf16, #tpu.memory_space<vmem>>, %arg5: memref<128x128xbf16, #tpu.memory_space<vmem>>, %arg6: memref<128x128xbf16, #tpu.memory_space<vmem>>, %arg7: memref<128x128xbf16, #tpu.memory_space<vmem>>, %arg8: memref<128x128xbf16, #tpu.memory_space<vmem>>, %arg9: memref<16x1xf32, #tpu.memory_space<vmem>>, %arg10: memref<16x1xf32, #tpu.memory_space<vmem>>, %arg11: memref<16x128xf32, #tpu.memory_space<vmem>>, %arg12: memref<16x128xf32, #tpu.memory_space<vmem>>, %arg13: memref<16x128xf32, #tpu.memory_space<vmem>>, %arg14: memref<16x128xf32, #tpu.memory_space<vmem>>) attributes {dimension_semantics = [#tpu.dimension_semantics<arbitrary>], iteration_bounds = array<i64: 1>, scalar_prefetch = 0 : i64, scratch_operands = 0 : i64, tpu.core_type = #tpu.core_type<tc>, window_params = [{pipeline_mode = #tpu.pipeline_mode<synchronous>, transform_indices = @transform_0, window_bounds = array<i64: 16, 128>}, {pipeline_mode = #tpu.pipeline_mode<synchronous>, transform_indices = @transform_1, window_bounds = array<i64: 16, 128>}, {pipeline_mode = #tpu.pipeline_mode<synchronous>, transform_indices = @transform_2, window_bounds = array<i64: 16, 128>}, {pipeline_mode = #tpu.pipeline_mode<synchronous>, transform_indices = @transform_3, window_bounds = array<i64: 16, 128>}, {pipeline_mode = #tpu.pipeline_mode<synchronous>, transform_indices = @transform_4, window_bounds = array<i64: 128, 128>}, {pipeline_mode = #tpu.pipeline_mode<synchronous>, transform_indices = @transform_5, window_bounds = array<i64: 128, 128>}, {pipeline_mode = #tpu.pipeline_mode<synchronous>, transform_indices = @transform_6, window_bounds = array<i64: 128, 128>}, {pipeline_mode = #tpu.pipeline_mode<synchronous>, transform_indices = @transform_7, window_bounds = array<i64: 128, 128>}, {pipeline_mode = #tpu.pipeline_mode<synchronous>, transform_indices = @transform_8, window_bounds = array<i64: 16, 1>}, {pipeline_mode = #tpu.pipeline_mode<synchronous>, transform_indices = @transform_9, window_bounds = array<i64: 16, 1>}, {pipeline_mode = #tpu.pipeline_mode<synchronous>, transform_indices = @transform_10, window_bounds = array<i64: 16, 128>}, {pipeline_mode = #tpu.pipeline_mode<synchronous>, transform_indices = @transform_11, window_bounds = array<i64: 16, 128>}, {pipeline_mode = #tpu.pipeline_mode<synchronous>, transform_indices = @transform_12, window_bounds = array<i64: 16, 128>}, {pipeline_mode = #tpu.pipeline_mode<synchronous>, transform_indices = @transform_13, window_bounds = array<i64: 16, 128>}]} {
    %c0 = arith.constant 0 : index
    %c0_0 = arith.constant 0 : index
    %0 = vector.load %arg1[%c0, %c0_0] : memref<16x128xbf16, #tpu.memory_space<vmem>>, vector<16x128xbf16>
    %c0_1 = arith.constant 0 : index
    %c0_2 = arith.constant 0 : index
    %1 = vector.load %arg5[%c0_1, %c0_2] : memref<128x128xbf16, #tpu.memory_space<vmem>>, vector<128x128xbf16>
    %cst = arith.constant dense<0.000000e+00> : vector<16x128xf32>
    %2 = tpu.matmul %0, %1, %cst {dimension_numbers = #tpu.dot_dimension_numbers<[1], [0], [0], [1], [0, 0, 1, 1], [], []>} : vector<16x128xbf16>, vector<128x128xbf16>, vector<16x128xf32> -> vector<16x128xf32>
    %c0_3 = arith.constant 0 : index
    %c0_4 = arith.constant 0 : index
    %3 = vector.load %arg2[%c0_3, %c0_4] : memref<16x128xbf16, #tpu.memory_space<vmem>>, vector<16x128xbf16>
    %c0_5 = arith.constant 0 : index
    %c0_6 = arith.constant 0 : index
    %4 = vector.load %arg6[%c0_5, %c0_6] : memref<128x128xbf16, #tpu.memory_space<vmem>>, vector<128x128xbf16>
    %cst_7 = arith.constant dense<0.000000e+00> : vector<16x128xf32>
    %5 = tpu.matmul %3, %4, %cst_7 {dimension_numbers = #tpu.dot_dimension_numbers<[1], [0], [0], [1], [0, 0, 1, 1], [], []>} : vector<16x128xbf16>, vector<128x128xbf16>, vector<16x128xf32> -> vector<16x128xf32>
    %c0_8 = arith.constant 0 : index
    %c0_9 = arith.constant 0 : index
    %6 = vector.load %arg3[%c0_8, %c0_9] : memref<16x128xbf16, #tpu.memory_space<vmem>>, vector<16x128xbf16>
    %c0_10 = arith.constant 0 : index
    %c0_11 = arith.constant 0 : index
    %7 = vector.load %arg7[%c0_10, %c0_11] : memref<128x128xbf16, #tpu.memory_space<vmem>>, vector<128x128xbf16>
    %cst_12 = arith.constant dense<0.000000e+00> : vector<16x128xf32>
    %8 = tpu.matmul %6, %7, %cst_12 {dimension_numbers = #tpu.dot_dimension_numbers<[1], [0], [0], [1], [0, 0, 1, 1], [], []>} : vector<16x128xbf16>, vector<128x128xbf16>, vector<16x128xf32> -> vector<16x128xf32>
    %c0_13 = arith.constant 0 : index
    %c0_14 = arith.constant 0 : index
    %9 = vector.load %arg4[%c0_13, %c0_14] : memref<16x128xbf16, #tpu.memory_space<vmem>>, vector<16x128xbf16>
    %c0_15 = arith.constant 0 : index
    %c0_16 = arith.constant 0 : index
    %10 = vector.load %arg8[%c0_15, %c0_16] : memref<128x128xbf16, #tpu.memory_space<vmem>>, vector<128x128xbf16>
    %cst_17 = arith.constant dense<0.000000e+00> : vector<16x128xf32>
    %11 = tpu.matmul %9, %10, %cst_17 {dimension_numbers = #tpu.dot_dimension_numbers<[1], [0], [0], [1], [0, 0, 1, 1], [], []>} : vector<16x128xbf16>, vector<128x128xbf16>, vector<16x128xf32> -> vector<16x128xf32>
    %12 = tpu.iota {dimensions = array<i32: 1>} : vector<1x128xi32>
    %c32_i32 = arith.constant 32 : i32
    %13 = vector.broadcast %c32_i32 : i32 to vector<1x128xi32>
    %14 = arith.cmpi slt, %12, %13 : vector<1x128xi32>
    %cst_18 = arith.constant 0.000000e+00 : f32
    %15 = vector.shape_cast %14 : vector<1x128xi1> to vector<1x128xi1>
    %16 = vector.broadcast %15 : vector<1x128xi1> to vector<16x128xi1>
    %17 = vector.broadcast %cst_18 : f32 to vector<16x128xf32>
    %18 = arith.select %16, %2, %17 : vector<16x128xi1>, vector<16x128xf32>
    %cst_19 = arith.constant dense<0.000000e+00> : vector<16xf32>
    %19 = vector.multi_reduction <add>, %18, %cst_19 [1] : vector<16x128xf32> to vector<16xf32>
    %20 = vector.shape_cast %19 : vector<16xf32> to vector<16x1xf32>
    %cst_20 = arith.constant 0.000000e+00 : f32
    %21 = vector.broadcast %cst_20 : f32 to vector<16x1xf32>
    %22 = arith.addf %21, %20 : vector<16x1xf32>
    %23 = arith.mulf %18, %18 : vector<16x128xf32>
    %cst_21 = arith.constant dense<0.000000e+00> : vector<16xf32>
    %24 = vector.multi_reduction <add>, %23, %cst_21 [1] : vector<16x128xf32> to vector<16xf32>
    %25 = vector.shape_cast %24 : vector<16xf32> to vector<16x1xf32>
    %cst_22 = arith.constant 0.000000e+00 : f32
    %26 = vector.broadcast %cst_22 : f32 to vector<16x1xf32>
    %27 = arith.addf %26, %25 : vector<16x1xf32>
    %cst_23 = arith.constant 0.000000e+00 : f32
    %28 = vector.shape_cast %14 : vector<1x128xi1> to vector<1x128xi1>
    %29 = vector.broadcast %28 : vector<1x128xi1> to vector<16x128xi1>
    %30 = vector.broadcast %cst_23 : f32 to vector<16x128xf32>
    %31 = arith.select %29, %5, %30 : vector<16x128xi1>, vector<16x128xf32>
    %cst_24 = arith.constant dense<0.000000e+00> : vector<16xf32>
    %32 = vector.multi_reduction <add>, %31, %cst_24 [1] : vector<16x128xf32> to vector<16xf32>
    %33 = vector.shape_cast %32 : vector<16xf32> to vector<16x1xf32>
    %34 = arith.addf %22, %33 : vector<16x1xf32>
    %35 = arith.mulf %31, %31 : vector<16x128xf32>
    %cst_25 = arith.constant dense<0.000000e+00> : vector<16xf32>
    %36 = vector.multi_reduction <add>, %35, %cst_25 [1] : vector<16x128xf32> to vector<16xf32>
    %37 = vector.shape_cast %36 : vector<16xf32> to vector<16x1xf32>
    %38 = arith.addf %27, %37 : vector<16x1xf32>
    %cst_26 = arith.constant 0.000000e+00 : f32
    %39 = vector.shape_cast %14 : vector<1x128xi1> to vector<1x128xi1>
    %40 = vector.broadcast %39 : vector<1x128xi1> to vector<16x128xi1>
    %41 = vector.broadcast %cst_26 : f32 to vector<16x128xf32>
    %42 = arith.select %40, %8, %41 : vector<16x128xi1>, vector<16x128xf32>
    %cst_27 = arith.constant dense<0.000000e+00> : vector<16xf32>
    %43 = vector.multi_reduction <add>, %42, %cst_27 [1] : vector<16x128xf32> to vector<16xf32>
    %44 = vector.shape_cast %43 : vector<16xf32> to vector<16x1xf32>
    %45 = arith.addf %34, %44 : vector<16x1xf32>
    %46 = arith.mulf %42, %42 : vector<16x128xf32>
    %cst_28 = arith.constant dense<0.000000e+00> : vector<16xf32>
    %47 = vector.multi_reduction <add>, %46, %cst_28 [1] : vector<16x128xf32> to vector<16xf32>
    %48 = vector.shape_cast %47 : vector<16xf32> to vector<16x1xf32>
    %49 = arith.addf %38, %48 : vector<16x1xf32>
    %cst_29 = arith.constant 0.000000e+00 : f32
    %50 = vector.shape_cast %14 : vector<1x128xi1> to vector<1x128xi1>
    %51 = vector.broadcast %50 : vector<1x128xi1> to vector<16x128xi1>
    %52 = vector.broadcast %cst_29 : f32 to vector<16x128xf32>
    %53 = arith.select %51, %11, %52 : vector<16x128xi1>, vector<16x128xf32>
    %cst_30 = arith.constant dense<0.000000e+00> : vector<16xf32>
    %54 = vector.multi_reduction <add>, %53, %cst_30 [1] : vector<16x128xf32> to vector<16xf32>
    %55 = vector.shape_cast %54 : vector<16xf32> to vector<16x1xf32>
    %56 = arith.addf %45, %55 : vector<16x1xf32>
    %57 = arith.mulf %53, %53 : vector<16x128xf32>
    %cst_31 = arith.constant dense<0.000000e+00> : vector<16xf32>
    %58 = vector.multi_reduction <add>, %57, %cst_31 [1] : vector<16x128xf32> to vector<16xf32>
    %59 = vector.shape_cast %58 : vector<16xf32> to vector<16x1xf32>
    %60 = arith.addf %49, %59 : vector<16x1xf32>
    %cst_32 = arith.constant 1.280000e+02 : f32
    %61 = vector.broadcast %cst_32 : f32 to vector<16x1xf32>
    %62 = arith.divf %56, %61 : vector<16x1xf32>
    %cst_33 = arith.constant 1.280000e+02 : f32
    %63 = vector.broadcast %cst_33 : f32 to vector<16x1xf32>
    %64 = arith.divf %60, %63 : vector<16x1xf32>
    %65 = arith.mulf %62, %62 : vector<16x1xf32>
    %66 = arith.subf %64, %65 : vector<16x1xf32>
    %cst_34 = arith.constant 0.000000e+00 : f32
    %67 = vector.broadcast %cst_34 : f32 to vector<16x1xf32>
    %68 = arith.maximumf %66, %67 : vector<16x1xf32>
    %c0_35 = arith.constant 0 : index
    %c0_36 = arith.constant 0 : index
    %69 = vector.load %arg9[%c0_35, %c0_36] : memref<16x1xf32, #tpu.memory_space<vmem>>, vector<16x1xf32>
    %cst_37 = arith.constant 9.99999974E-6 : f32
    %70 = vector.broadcast %cst_37 : f32 to vector<16x1xf32>
    %71 = arith.addf %68, %70 : vector<16x1xf32>
    %72 = math.rsqrt %71 : vector<16x1xf32>
    %73 = arith.mulf %69, %72 : vector<16x1xf32>
    %c0_38 = arith.constant 0 : index
    %c0_39 = arith.constant 0 : index
    %74 = vector.load %arg10[%c0_38, %c0_39] : memref<16x1xf32, #tpu.memory_space<vmem>>, vector<16x1xf32>
    %75 = arith.mulf %62, %73 : vector<16x1xf32>
    %76 = arith.subf %74, %75 : vector<16x1xf32>
    %77 = vector.broadcast %73 : vector<16x1xf32> to vector<16x128xf32>
    %78 = arith.mulf %2, %77 : vector<16x128xf32>
    %79 = vector.broadcast %76 : vector<16x1xf32> to vector<16x128xf32>
    %80 = arith.addf %78, %79 : vector<16x128xf32>
    %cst_40 = arith.constant 0.000000e+00 : f32
    %81 = vector.broadcast %cst_40 : f32 to vector<16x128xf32>
    %82 = arith.cmpf oge, %80, %81 : vector<16x128xf32>
    %cst_41 = arith.constant 2.000000e-01 : f32
    %83 = vector.broadcast %cst_41 : f32 to vector<16x128xf32>
    %84 = arith.mulf %83, %80 : vector<16x128xf32>
    %85 = arith.select %82, %80, %84 : vector<16x128xi1>, vector<16x128xf32>
    %c0_42 = arith.constant 0 : index
    %c0_43 = arith.constant 0 : index
    %86 = vector.load %arg11[%c0_42, %c0_43] : memref<16x128xf32, #tpu.memory_space<vmem>>, vector<16x128xf32>
    tpu.vector_store %arg11[%c0_42, %c0_43], %85 {strides = array<i32>} : memref<16x128xf32, #tpu.memory_space<vmem>>, vector<16x128xf32>,
    %87 = vector.broadcast %73 : vector<16x1xf32> to vector<16x128xf32>
    %88 = arith.mulf %5, %87 : vector<16x128xf32>
    %89 = vector.broadcast %76 : vector<16x1xf32> to vector<16x128xf32>
    %90 = arith.addf %88, %89 : vector<16x128xf32>
    %cst_44 = arith.constant 0.000000e+00 : f32
    %91 = vector.broadcast %cst_44 : f32 to vector<16x128xf32>
    %92 = arith.cmpf oge, %90, %91 : vector<16x128xf32>
    %cst_45 = arith.constant 2.000000e-01 : f32
    %93 = vector.broadcast %cst_45 : f32 to vector<16x128xf32>
    %94 = arith.mulf %93, %90 : vector<16x128xf32>
    %95 = arith.select %92, %90, %94 : vector<16x128xi1>, vector<16x128xf32>
    %c0_46 = arith.constant 0 : index
    %c0_47 = arith.constant 0 : index
    %96 = vector.load %arg12[%c0_46, %c0_47] : memref<16x128xf32, #tpu.memory_space<vmem>>, vector<16x128xf32>
    tpu.vector_store %arg12[%c0_46, %c0_47], %95 {strides = array<i32>} : memref<16x128xf32, #tpu.memory_space<vmem>>, vector<16x128xf32>,
    %97 = vector.broadcast %73 : vector<16x1xf32> to vector<16x128xf32>
    %98 = arith.mulf %8, %97 : vector<16x128xf32>
    %99 = vector.broadcast %76 : vector<16x1xf32> to vector<16x128xf32>
    %100 = arith.addf %98, %99 : vector<16x128xf32>
    %cst_48 = arith.constant 0.000000e+00 : f32
    %101 = vector.broadcast %cst_48 : f32 to vector<16x128xf32>
    %102 = arith.cmpf oge, %100, %101 : vector<16x128xf32>
    %cst_49 = arith.constant 2.000000e-01 : f32
    %103 = vector.broadcast %cst_49 : f32 to vector<16x128xf32>
    %104 = arith.mulf %103, %100 : vector<16x128xf32>
    %105 = arith.select %102, %100, %104 : vector<16x128xi1>, vector<16x128xf32>
    %c0_50 = arith.constant 0 : index
    %c0_51 = arith.constant 0 : index
    %106 = vector.load %arg13[%c0_50, %c0_51] : memref<16x128xf32, #tpu.memory_space<vmem>>, vector<16x128xf32>
    tpu.vector_store %arg13[%c0_50, %c0_51], %105 {strides = array<i32>} : memref<16x128xf32, #tpu.memory_space<vmem>>, vector<16x128xf32>,
    %107 = vector.broadcast %73 : vector<16x1xf32> to vector<16x128xf32>
    %108 = arith.mulf %11, %107 : vector<16x128xf32>
    %109 = vector.broadcast %76 : vector<16x1xf32> to vector<16x128xf32>
    %110 = arith.addf %108, %109 : vector<16x128xf32>
    %cst_52 = arith.constant 0.000000e+00 : f32
    %111 = vector.broadcast %cst_52 : f32 to vector<16x128xf32>
    %112 = arith.cmpf oge, %110, %111 : vector<16x128xf32>
    %cst_53 = arith.constant 2.000000e-01 : f32
    %113 = vector.broadcast %cst_53 : f32 to vector<16x128xf32>
    %114 = arith.mulf %113, %110 : vector<16x128xf32>
    %115 = arith.select %112, %110, %114 : vector<16x128xi1>, vector<16x128xf32>
    %c0_54 = arith.constant 0 : index
    %c0_55 = arith.constant 0 : index
    %116 = vector.load %arg14[%c0_54, %c0_55] : memref<16x128xf32, #tpu.memory_space<vmem>>, vector<16x128xf32>
    tpu.vector_store %arg14[%c0_54, %c0_55], %115 {strides = array<i32>} : memref<16x128xf32, #tpu.memory_space<vmem>>, vector<16x128xf32>,
    return
  }
  func.func @transform_0(%arg0: i32) -> (i32, i32) {
    %c0_i32 = arith.constant 0 : i32
    %c0_i32_0 = arith.constant 0 : i32
    %c0_i32_1 = arith.constant 0 : i32
    return %c0_i32, %c0_i32_0 : i32, i32
  }
  func.func @transform_1(%arg0: i32) -> (i32, i32) {
    %c0_i32 = arith.constant 0 : i32
    %c0_i32_0 = arith.constant 0 : i32
    %c0_i32_1 = arith.constant 0 : i32
    return %c0_i32, %c0_i32_0 : i32, i32
  }
  func.func @transform_2(%arg0: i32) -> (i32, i32) {
    %c0_i32 = arith.constant 0 : i32
    %c0_i32_0 = arith.constant 0 : i32
    %c0_i32_1 = arith.constant 0 : i32
    return %c0_i32, %c0_i32_0 : i32, i32
  }
  func.func @transform_3(%arg0: i32) -> (i32, i32) {
    %c0_i32 = arith.constant 0 : i32
    %c0_i32_0 = arith.constant 0 : i32
    %c0_i32_1 = arith.constant 0 : i32
    return %c0_i32, %c0_i32_0 : i32, i32
  }
  func.func @transform_4(%arg0: i32) -> (i32, i32) {
    %c0_i32 = arith.constant 0 : i32
    %c0_i32_0 = arith.constant 0 : i32
    %c0_i32_1 = arith.constant 0 : i32
    return %c0_i32, %c0_i32_0 : i32, i32
  }
  func.func @transform_5(%arg0: i32) -> (i32, i32) {
    %c0_i32 = arith.constant 0 : i32
    %c0_i32_0 = arith.constant 0 : i32
    %c0_i32_1 = arith.constant 0 : i32
    return %c0_i32, %c0_i32_0 : i32, i32
  }
  func.func @transform_6(%arg0: i32) -> (i32, i32) {
    %c0_i32 = arith.constant 0 : i32
    %c0_i32_0 = arith.constant 0 : i32
    %c0_i32_1 = arith.constant 0 : i32
    return %c0_i32, %c0_i32_0 : i32, i32
  }
  func.func @transform_7(%arg0: i32) -> (i32, i32) {
    %c0_i32 = arith.constant 0 : i32
    %c0_i32_0 = arith.constant 0 : i32
    %c0_i32_1 = arith.constant 0 : i32
    return %c0_i32, %c0_i32_0 : i32, i32
  }
  func.func @transform_8(%arg0: i32) -> (i32, i32) {
    %c0_i32 = arith.constant 0 : i32
    %c0_i32_0 = arith.constant 0 : i32
    %c0_i32_1 = arith.constant 0 : i32
    return %c0_i32, %c0_i32_0 : i32, i32
  }
  func.func @transform_9(%arg0: i32) -> (i32, i32) {
    %c0_i32 = arith.constant 0 : i32
    %c0_i32_0 = arith.constant 0 : i32
    %c0_i32_1 = arith.constant 0 : i32
    return %c0_i32, %c0_i32_0 : i32, i32
  }
  func.func @transform_10(%arg0: i32) -> (i32, i32) {
    %c0_i32 = arith.constant 0 : i32
    %c0_i32_0 = arith.constant 0 : i32
    %c0_i32_1 = arith.constant 0 : i32
    return %c0_i32, %c0_i32_0 : i32, i32
  }
  func.func @transform_11(%arg0: i32) -> (i32, i32) {
    %c0_i32 = arith.constant 0 : i32
    %c0_i32_0 = arith.constant 0 : i32
    %c0_i32_1 = arith.constant 0 : i32
    return %c0_i32, %c0_i32_0 : i32, i32
  }
  func.func @transform_12(%arg0: i32) -> (i32, i32) {
    %c0_i32 = arith.constant 0 : i32
    %c0_i32_0 = arith.constant 0 : i32
    %c0_i32_1 = arith.constant 0 : i32
    return %c0_i32, %c0_i32_0 : i32, i32
  }
  func.func @transform_13(%arg0: i32) -> (i32, i32) {
    %c0_i32 = arith.constant 0 : i32
    %c0_i32_0 = arith.constant 0 : i32
    %c0_i32_1 = arith.constant 0 : i32
    return %c0_i32, %c0_i32_0 : i32, i32
  }
}

module attributes {stable_mosaic.version = 11 : i64} {
  func.func @_ct_bn_lrelu_kernel(%arg0: i32, %arg1: memref<8x64xbf16, #tpu.memory_space<vmem>>, %arg2: memref<8x64xbf16, #tpu.memory_space<vmem>>, %arg3: memref<8x64xbf16, #tpu.memory_space<vmem>>, %arg4: memref<8x64xbf16, #tpu.memory_space<vmem>>, %arg5: memref<64x128xbf16, #tpu.memory_space<vmem>>, %arg6: memref<64x128xbf16, #tpu.memory_space<vmem>>, %arg7: memref<64x128xbf16, #tpu.memory_space<vmem>>, %arg8: memref<64x128xbf16, #tpu.memory_space<vmem>>, %arg9: memref<8x1xf32, #tpu.memory_space<vmem>>, %arg10: memref<8x1xf32, #tpu.memory_space<vmem>>, %arg11: memref<8x128xf32, #tpu.memory_space<vmem>>, %arg12: memref<8x128xf32, #tpu.memory_space<vmem>>, %arg13: memref<8x128xf32, #tpu.memory_space<vmem>>, %arg14: memref<8x128xf32, #tpu.memory_space<vmem>>) attributes {dimension_semantics = [#tpu.dimension_semantics<arbitrary>], iteration_bounds = array<i64: 1>, scalar_prefetch = 0 : i64, scratch_operands = 0 : i64, tpu.core_type = #tpu.core_type<tc>, window_params = [{pipeline_mode = #tpu.pipeline_mode<synchronous>, transform_indices = @transform_0, window_bounds = array<i64: 8, 64>}, {pipeline_mode = #tpu.pipeline_mode<synchronous>, transform_indices = @transform_1, window_bounds = array<i64: 8, 64>}, {pipeline_mode = #tpu.pipeline_mode<synchronous>, transform_indices = @transform_2, window_bounds = array<i64: 8, 64>}, {pipeline_mode = #tpu.pipeline_mode<synchronous>, transform_indices = @transform_3, window_bounds = array<i64: 8, 64>}, {pipeline_mode = #tpu.pipeline_mode<synchronous>, transform_indices = @transform_4, window_bounds = array<i64: 64, 128>}, {pipeline_mode = #tpu.pipeline_mode<synchronous>, transform_indices = @transform_5, window_bounds = array<i64: 64, 128>}, {pipeline_mode = #tpu.pipeline_mode<synchronous>, transform_indices = @transform_6, window_bounds = array<i64: 64, 128>}, {pipeline_mode = #tpu.pipeline_mode<synchronous>, transform_indices = @transform_7, window_bounds = array<i64: 64, 128>}, {pipeline_mode = #tpu.pipeline_mode<synchronous>, transform_indices = @transform_8, window_bounds = array<i64: 8, 1>}, {pipeline_mode = #tpu.pipeline_mode<synchronous>, transform_indices = @transform_9, window_bounds = array<i64: 8, 1>}, {pipeline_mode = #tpu.pipeline_mode<synchronous>, transform_indices = @transform_10, window_bounds = array<i64: 8, 128>}, {pipeline_mode = #tpu.pipeline_mode<synchronous>, transform_indices = @transform_11, window_bounds = array<i64: 8, 128>}, {pipeline_mode = #tpu.pipeline_mode<synchronous>, transform_indices = @transform_12, window_bounds = array<i64: 8, 128>}, {pipeline_mode = #tpu.pipeline_mode<synchronous>, transform_indices = @transform_13, window_bounds = array<i64: 8, 128>}]} {
    %c0 = arith.constant 0 : index
    %c0_0 = arith.constant 0 : index
    %0 = vector.load %arg1[%c0, %c0_0] : memref<8x64xbf16, #tpu.memory_space<vmem>>, vector<8x64xbf16>
    %c0_1 = arith.constant 0 : index
    %c0_2 = arith.constant 0 : index
    %1 = vector.load %arg5[%c0_1, %c0_2] : memref<64x128xbf16, #tpu.memory_space<vmem>>, vector<64x128xbf16>
    %cst = arith.constant dense<0.000000e+00> : vector<8x128xf32>
    %2 = tpu.matmul %0, %1, %cst {dimension_numbers = #tpu.dot_dimension_numbers<[1], [0], [0], [1], [0, 0, 1, 1], [], []>} : vector<8x64xbf16>, vector<64x128xbf16>, vector<8x128xf32> -> vector<8x128xf32>
    %c0_3 = arith.constant 0 : index
    %c0_4 = arith.constant 0 : index
    %3 = vector.load %arg2[%c0_3, %c0_4] : memref<8x64xbf16, #tpu.memory_space<vmem>>, vector<8x64xbf16>
    %c0_5 = arith.constant 0 : index
    %c0_6 = arith.constant 0 : index
    %4 = vector.load %arg6[%c0_5, %c0_6] : memref<64x128xbf16, #tpu.memory_space<vmem>>, vector<64x128xbf16>
    %cst_7 = arith.constant dense<0.000000e+00> : vector<8x128xf32>
    %5 = tpu.matmul %3, %4, %cst_7 {dimension_numbers = #tpu.dot_dimension_numbers<[1], [0], [0], [1], [0, 0, 1, 1], [], []>} : vector<8x64xbf16>, vector<64x128xbf16>, vector<8x128xf32> -> vector<8x128xf32>
    %c0_8 = arith.constant 0 : index
    %c0_9 = arith.constant 0 : index
    %6 = vector.load %arg3[%c0_8, %c0_9] : memref<8x64xbf16, #tpu.memory_space<vmem>>, vector<8x64xbf16>
    %c0_10 = arith.constant 0 : index
    %c0_11 = arith.constant 0 : index
    %7 = vector.load %arg7[%c0_10, %c0_11] : memref<64x128xbf16, #tpu.memory_space<vmem>>, vector<64x128xbf16>
    %cst_12 = arith.constant dense<0.000000e+00> : vector<8x128xf32>
    %8 = tpu.matmul %6, %7, %cst_12 {dimension_numbers = #tpu.dot_dimension_numbers<[1], [0], [0], [1], [0, 0, 1, 1], [], []>} : vector<8x64xbf16>, vector<64x128xbf16>, vector<8x128xf32> -> vector<8x128xf32>
    %c0_13 = arith.constant 0 : index
    %c0_14 = arith.constant 0 : index
    %9 = vector.load %arg4[%c0_13, %c0_14] : memref<8x64xbf16, #tpu.memory_space<vmem>>, vector<8x64xbf16>
    %c0_15 = arith.constant 0 : index
    %c0_16 = arith.constant 0 : index
    %10 = vector.load %arg8[%c0_15, %c0_16] : memref<64x128xbf16, #tpu.memory_space<vmem>>, vector<64x128xbf16>
    %cst_17 = arith.constant dense<0.000000e+00> : vector<8x128xf32>
    %11 = tpu.matmul %9, %10, %cst_17 {dimension_numbers = #tpu.dot_dimension_numbers<[1], [0], [0], [1], [0, 0, 1, 1], [], []>} : vector<8x64xbf16>, vector<64x128xbf16>, vector<8x128xf32> -> vector<8x128xf32>
    %12 = tpu.iota {dimensions = array<i32: 1>} : vector<1x128xi32>
    %c128_i32 = arith.constant 128 : i32
    %13 = vector.broadcast %c128_i32 : i32 to vector<1x128xi32>
    %14 = arith.cmpi slt, %12, %13 : vector<1x128xi32>
    %cst_18 = arith.constant 0.000000e+00 : f32
    %15 = vector.shape_cast %14 : vector<1x128xi1> to vector<1x128xi1>
    %16 = vector.broadcast %15 : vector<1x128xi1> to vector<8x128xi1>
    %17 = vector.broadcast %cst_18 : f32 to vector<8x128xf32>
    %18 = arith.select %16, %2, %17 : vector<8x128xi1>, vector<8x128xf32>
    %cst_19 = arith.constant dense<0.000000e+00> : vector<8xf32>
    %19 = vector.multi_reduction <add>, %18, %cst_19 [1] : vector<8x128xf32> to vector<8xf32>
    %20 = vector.shape_cast %19 : vector<8xf32> to vector<8x1xf32>
    %cst_20 = arith.constant 0.000000e+00 : f32
    %21 = vector.broadcast %cst_20 : f32 to vector<8x1xf32>
    %22 = arith.addf %21, %20 : vector<8x1xf32>
    %23 = arith.mulf %18, %18 : vector<8x128xf32>
    %cst_21 = arith.constant dense<0.000000e+00> : vector<8xf32>
    %24 = vector.multi_reduction <add>, %23, %cst_21 [1] : vector<8x128xf32> to vector<8xf32>
    %25 = vector.shape_cast %24 : vector<8xf32> to vector<8x1xf32>
    %cst_22 = arith.constant 0.000000e+00 : f32
    %26 = vector.broadcast %cst_22 : f32 to vector<8x1xf32>
    %27 = arith.addf %26, %25 : vector<8x1xf32>
    %cst_23 = arith.constant 0.000000e+00 : f32
    %28 = vector.shape_cast %14 : vector<1x128xi1> to vector<1x128xi1>
    %29 = vector.broadcast %28 : vector<1x128xi1> to vector<8x128xi1>
    %30 = vector.broadcast %cst_23 : f32 to vector<8x128xf32>
    %31 = arith.select %29, %5, %30 : vector<8x128xi1>, vector<8x128xf32>
    %cst_24 = arith.constant dense<0.000000e+00> : vector<8xf32>
    %32 = vector.multi_reduction <add>, %31, %cst_24 [1] : vector<8x128xf32> to vector<8xf32>
    %33 = vector.shape_cast %32 : vector<8xf32> to vector<8x1xf32>
    %34 = arith.addf %22, %33 : vector<8x1xf32>
    %35 = arith.mulf %31, %31 : vector<8x128xf32>
    %cst_25 = arith.constant dense<0.000000e+00> : vector<8xf32>
    %36 = vector.multi_reduction <add>, %35, %cst_25 [1] : vector<8x128xf32> to vector<8xf32>
    %37 = vector.shape_cast %36 : vector<8xf32> to vector<8x1xf32>
    %38 = arith.addf %27, %37 : vector<8x1xf32>
    %cst_26 = arith.constant 0.000000e+00 : f32
    %39 = vector.shape_cast %14 : vector<1x128xi1> to vector<1x128xi1>
    %40 = vector.broadcast %39 : vector<1x128xi1> to vector<8x128xi1>
    %41 = vector.broadcast %cst_26 : f32 to vector<8x128xf32>
    %42 = arith.select %40, %8, %41 : vector<8x128xi1>, vector<8x128xf32>
    %cst_27 = arith.constant dense<0.000000e+00> : vector<8xf32>
    %43 = vector.multi_reduction <add>, %42, %cst_27 [1] : vector<8x128xf32> to vector<8xf32>
    %44 = vector.shape_cast %43 : vector<8xf32> to vector<8x1xf32>
    %45 = arith.addf %34, %44 : vector<8x1xf32>
    %46 = arith.mulf %42, %42 : vector<8x128xf32>
    %cst_28 = arith.constant dense<0.000000e+00> : vector<8xf32>
    %47 = vector.multi_reduction <add>, %46, %cst_28 [1] : vector<8x128xf32> to vector<8xf32>
    %48 = vector.shape_cast %47 : vector<8xf32> to vector<8x1xf32>
    %49 = arith.addf %38, %48 : vector<8x1xf32>
    %cst_29 = arith.constant 0.000000e+00 : f32
    %50 = vector.shape_cast %14 : vector<1x128xi1> to vector<1x128xi1>
    %51 = vector.broadcast %50 : vector<1x128xi1> to vector<8x128xi1>
    %52 = vector.broadcast %cst_29 : f32 to vector<8x128xf32>
    %53 = arith.select %51, %11, %52 : vector<8x128xi1>, vector<8x128xf32>
    %cst_30 = arith.constant dense<0.000000e+00> : vector<8xf32>
    %54 = vector.multi_reduction <add>, %53, %cst_30 [1] : vector<8x128xf32> to vector<8xf32>
    %55 = vector.shape_cast %54 : vector<8xf32> to vector<8x1xf32>
    %56 = arith.addf %45, %55 : vector<8x1xf32>
    %57 = arith.mulf %53, %53 : vector<8x128xf32>
    %cst_31 = arith.constant dense<0.000000e+00> : vector<8xf32>
    %58 = vector.multi_reduction <add>, %57, %cst_31 [1] : vector<8x128xf32> to vector<8xf32>
    %59 = vector.shape_cast %58 : vector<8xf32> to vector<8x1xf32>
    %60 = arith.addf %49, %59 : vector<8x1xf32>
    %cst_32 = arith.constant 5.120000e+02 : f32
    %61 = vector.broadcast %cst_32 : f32 to vector<8x1xf32>
    %62 = arith.divf %56, %61 : vector<8x1xf32>
    %cst_33 = arith.constant 5.120000e+02 : f32
    %63 = vector.broadcast %cst_33 : f32 to vector<8x1xf32>
    %64 = arith.divf %60, %63 : vector<8x1xf32>
    %65 = arith.mulf %62, %62 : vector<8x1xf32>
    %66 = arith.subf %64, %65 : vector<8x1xf32>
    %cst_34 = arith.constant 0.000000e+00 : f32
    %67 = vector.broadcast %cst_34 : f32 to vector<8x1xf32>
    %68 = arith.maximumf %66, %67 : vector<8x1xf32>
    %c0_35 = arith.constant 0 : index
    %c0_36 = arith.constant 0 : index
    %69 = vector.load %arg9[%c0_35, %c0_36] : memref<8x1xf32, #tpu.memory_space<vmem>>, vector<8x1xf32>
    %cst_37 = arith.constant 9.99999974E-6 : f32
    %70 = vector.broadcast %cst_37 : f32 to vector<8x1xf32>
    %71 = arith.addf %68, %70 : vector<8x1xf32>
    %72 = math.rsqrt %71 : vector<8x1xf32>
    %73 = arith.mulf %69, %72 : vector<8x1xf32>
    %c0_38 = arith.constant 0 : index
    %c0_39 = arith.constant 0 : index
    %74 = vector.load %arg10[%c0_38, %c0_39] : memref<8x1xf32, #tpu.memory_space<vmem>>, vector<8x1xf32>
    %75 = arith.mulf %62, %73 : vector<8x1xf32>
    %76 = arith.subf %74, %75 : vector<8x1xf32>
    %77 = vector.broadcast %73 : vector<8x1xf32> to vector<8x128xf32>
    %78 = arith.mulf %2, %77 : vector<8x128xf32>
    %79 = vector.broadcast %76 : vector<8x1xf32> to vector<8x128xf32>
    %80 = arith.addf %78, %79 : vector<8x128xf32>
    %cst_40 = arith.constant 0.000000e+00 : f32
    %81 = vector.broadcast %cst_40 : f32 to vector<8x128xf32>
    %82 = arith.cmpf oge, %80, %81 : vector<8x128xf32>
    %cst_41 = arith.constant 2.000000e-01 : f32
    %83 = vector.broadcast %cst_41 : f32 to vector<8x128xf32>
    %84 = arith.mulf %83, %80 : vector<8x128xf32>
    %85 = arith.select %82, %80, %84 : vector<8x128xi1>, vector<8x128xf32>
    %c0_42 = arith.constant 0 : index
    %c0_43 = arith.constant 0 : index
    %86 = vector.load %arg11[%c0_42, %c0_43] : memref<8x128xf32, #tpu.memory_space<vmem>>, vector<8x128xf32>
    tpu.vector_store %arg11[%c0_42, %c0_43], %85 {strides = array<i32>} : memref<8x128xf32, #tpu.memory_space<vmem>>, vector<8x128xf32>,
    %87 = vector.broadcast %73 : vector<8x1xf32> to vector<8x128xf32>
    %88 = arith.mulf %5, %87 : vector<8x128xf32>
    %89 = vector.broadcast %76 : vector<8x1xf32> to vector<8x128xf32>
    %90 = arith.addf %88, %89 : vector<8x128xf32>
    %cst_44 = arith.constant 0.000000e+00 : f32
    %91 = vector.broadcast %cst_44 : f32 to vector<8x128xf32>
    %92 = arith.cmpf oge, %90, %91 : vector<8x128xf32>
    %cst_45 = arith.constant 2.000000e-01 : f32
    %93 = vector.broadcast %cst_45 : f32 to vector<8x128xf32>
    %94 = arith.mulf %93, %90 : vector<8x128xf32>
    %95 = arith.select %92, %90, %94 : vector<8x128xi1>, vector<8x128xf32>
    %c0_46 = arith.constant 0 : index
    %c0_47 = arith.constant 0 : index
    %96 = vector.load %arg12[%c0_46, %c0_47] : memref<8x128xf32, #tpu.memory_space<vmem>>, vector<8x128xf32>
    tpu.vector_store %arg12[%c0_46, %c0_47], %95 {strides = array<i32>} : memref<8x128xf32, #tpu.memory_space<vmem>>, vector<8x128xf32>,
    %97 = vector.broadcast %73 : vector<8x1xf32> to vector<8x128xf32>
    %98 = arith.mulf %8, %97 : vector<8x128xf32>
    %99 = vector.broadcast %76 : vector<8x1xf32> to vector<8x128xf32>
    %100 = arith.addf %98, %99 : vector<8x128xf32>
    %cst_48 = arith.constant 0.000000e+00 : f32
    %101 = vector.broadcast %cst_48 : f32 to vector<8x128xf32>
    %102 = arith.cmpf oge, %100, %101 : vector<8x128xf32>
    %cst_49 = arith.constant 2.000000e-01 : f32
    %103 = vector.broadcast %cst_49 : f32 to vector<8x128xf32>
    %104 = arith.mulf %103, %100 : vector<8x128xf32>
    %105 = arith.select %102, %100, %104 : vector<8x128xi1>, vector<8x128xf32>
    %c0_50 = arith.constant 0 : index
    %c0_51 = arith.constant 0 : index
    %106 = vector.load %arg13[%c0_50, %c0_51] : memref<8x128xf32, #tpu.memory_space<vmem>>, vector<8x128xf32>
    tpu.vector_store %arg13[%c0_50, %c0_51], %105 {strides = array<i32>} : memref<8x128xf32, #tpu.memory_space<vmem>>, vector<8x128xf32>,
    %107 = vector.broadcast %73 : vector<8x1xf32> to vector<8x128xf32>
    %108 = arith.mulf %11, %107 : vector<8x128xf32>
    %109 = vector.broadcast %76 : vector<8x1xf32> to vector<8x128xf32>
    %110 = arith.addf %108, %109 : vector<8x128xf32>
    %cst_52 = arith.constant 0.000000e+00 : f32
    %111 = vector.broadcast %cst_52 : f32 to vector<8x128xf32>
    %112 = arith.cmpf oge, %110, %111 : vector<8x128xf32>
    %cst_53 = arith.constant 2.000000e-01 : f32
    %113 = vector.broadcast %cst_53 : f32 to vector<8x128xf32>
    %114 = arith.mulf %113, %110 : vector<8x128xf32>
    %115 = arith.select %112, %110, %114 : vector<8x128xi1>, vector<8x128xf32>
    %c0_54 = arith.constant 0 : index
    %c0_55 = arith.constant 0 : index
    %116 = vector.load %arg14[%c0_54, %c0_55] : memref<8x128xf32, #tpu.memory_space<vmem>>, vector<8x128xf32>
    tpu.vector_store %arg14[%c0_54, %c0_55], %115 {strides = array<i32>} : memref<8x128xf32, #tpu.memory_space<vmem>>, vector<8x128xf32>,
    return
  }
  func.func @transform_0(%arg0: i32) -> (i32, i32) {
    %c0_i32 = arith.constant 0 : i32
    %c0_i32_0 = arith.constant 0 : i32
    %c0_i32_1 = arith.constant 0 : i32
    return %c0_i32, %c0_i32_0 : i32, i32
  }
  func.func @transform_1(%arg0: i32) -> (i32, i32) {
    %c0_i32 = arith.constant 0 : i32
    %c0_i32_0 = arith.constant 0 : i32
    %c0_i32_1 = arith.constant 0 : i32
    return %c0_i32, %c0_i32_0 : i32, i32
  }
  func.func @transform_2(%arg0: i32) -> (i32, i32) {
    %c0_i32 = arith.constant 0 : i32
    %c0_i32_0 = arith.constant 0 : i32
    %c0_i32_1 = arith.constant 0 : i32
    return %c0_i32, %c0_i32_0 : i32, i32
  }
  func.func @transform_3(%arg0: i32) -> (i32, i32) {
    %c0_i32 = arith.constant 0 : i32
    %c0_i32_0 = arith.constant 0 : i32
    %c0_i32_1 = arith.constant 0 : i32
    return %c0_i32, %c0_i32_0 : i32, i32
  }
  func.func @transform_4(%arg0: i32) -> (i32, i32) {
    %c0_i32 = arith.constant 0 : i32
    %c0_i32_0 = arith.constant 0 : i32
    %c0_i32_1 = arith.constant 0 : i32
    return %c0_i32, %c0_i32_0 : i32, i32
  }
  func.func @transform_5(%arg0: i32) -> (i32, i32) {
    %c0_i32 = arith.constant 0 : i32
    %c0_i32_0 = arith.constant 0 : i32
    %c0_i32_1 = arith.constant 0 : i32
    return %c0_i32, %c0_i32_0 : i32, i32
  }
  func.func @transform_6(%arg0: i32) -> (i32, i32) {
    %c0_i32 = arith.constant 0 : i32
    %c0_i32_0 = arith.constant 0 : i32
    %c0_i32_1 = arith.constant 0 : i32
    return %c0_i32, %c0_i32_0 : i32, i32
  }
  func.func @transform_7(%arg0: i32) -> (i32, i32) {
    %c0_i32 = arith.constant 0 : i32
    %c0_i32_0 = arith.constant 0 : i32
    %c0_i32_1 = arith.constant 0 : i32
    return %c0_i32, %c0_i32_0 : i32, i32
  }
  func.func @transform_8(%arg0: i32) -> (i32, i32) {
    %c0_i32 = arith.constant 0 : i32
    %c0_i32_0 = arith.constant 0 : i32
    %c0_i32_1 = arith.constant 0 : i32
    return %c0_i32, %c0_i32_0 : i32, i32
  }
  func.func @transform_9(%arg0: i32) -> (i32, i32) {
    %c0_i32 = arith.constant 0 : i32
    %c0_i32_0 = arith.constant 0 : i32
    %c0_i32_1 = arith.constant 0 : i32
    return %c0_i32, %c0_i32_0 : i32, i32
  }
  func.func @transform_10(%arg0: i32) -> (i32, i32) {
    %c0_i32 = arith.constant 0 : i32
    %c0_i32_0 = arith.constant 0 : i32
    %c0_i32_1 = arith.constant 0 : i32
    return %c0_i32, %c0_i32_0 : i32, i32
  }
  func.func @transform_11(%arg0: i32) -> (i32, i32) {
    %c0_i32 = arith.constant 0 : i32
    %c0_i32_0 = arith.constant 0 : i32
    %c0_i32_1 = arith.constant 0 : i32
    return %c0_i32, %c0_i32_0 : i32, i32
  }
  func.func @transform_12(%arg0: i32) -> (i32, i32) {
    %c0_i32 = arith.constant 0 : i32
    %c0_i32_0 = arith.constant 0 : i32
    %c0_i32_1 = arith.constant 0 : i32
    return %c0_i32, %c0_i32_0 : i32, i32
  }
  func.func @transform_13(%arg0: i32) -> (i32, i32) {
    %c0_i32 = arith.constant 0 : i32
    %c0_i32_0 = arith.constant 0 : i32
    %c0_i32_1 = arith.constant 0 : i32
    return %c0_i32, %c0_i32_0 : i32, i32
  }
}

module attributes {stable_mosaic.version = 11 : i64} {
  func.func @_ct_bn_lrelu_kernel(%arg0: i32, %arg1: memref<8x32xbf16, #tpu.memory_space<vmem>>, %arg2: memref<8x32xbf16, #tpu.memory_space<vmem>>, %arg3: memref<8x32xbf16, #tpu.memory_space<vmem>>, %arg4: memref<8x32xbf16, #tpu.memory_space<vmem>>, %arg5: memref<32x512xbf16, #tpu.memory_space<vmem>>, %arg6: memref<32x512xbf16, #tpu.memory_space<vmem>>, %arg7: memref<32x512xbf16, #tpu.memory_space<vmem>>, %arg8: memref<32x512xbf16, #tpu.memory_space<vmem>>, %arg9: memref<8x1xf32, #tpu.memory_space<vmem>>, %arg10: memref<8x1xf32, #tpu.memory_space<vmem>>, %arg11: memref<8x512xf32, #tpu.memory_space<vmem>>, %arg12: memref<8x512xf32, #tpu.memory_space<vmem>>, %arg13: memref<8x512xf32, #tpu.memory_space<vmem>>, %arg14: memref<8x512xf32, #tpu.memory_space<vmem>>) attributes {dimension_semantics = [#tpu.dimension_semantics<arbitrary>], iteration_bounds = array<i64: 1>, scalar_prefetch = 0 : i64, scratch_operands = 0 : i64, tpu.core_type = #tpu.core_type<tc>, window_params = [{pipeline_mode = #tpu.pipeline_mode<synchronous>, transform_indices = @transform_0, window_bounds = array<i64: 8, 32>}, {pipeline_mode = #tpu.pipeline_mode<synchronous>, transform_indices = @transform_1, window_bounds = array<i64: 8, 32>}, {pipeline_mode = #tpu.pipeline_mode<synchronous>, transform_indices = @transform_2, window_bounds = array<i64: 8, 32>}, {pipeline_mode = #tpu.pipeline_mode<synchronous>, transform_indices = @transform_3, window_bounds = array<i64: 8, 32>}, {pipeline_mode = #tpu.pipeline_mode<synchronous>, transform_indices = @transform_4, window_bounds = array<i64: 32, 512>}, {pipeline_mode = #tpu.pipeline_mode<synchronous>, transform_indices = @transform_5, window_bounds = array<i64: 32, 512>}, {pipeline_mode = #tpu.pipeline_mode<synchronous>, transform_indices = @transform_6, window_bounds = array<i64: 32, 512>}, {pipeline_mode = #tpu.pipeline_mode<synchronous>, transform_indices = @transform_7, window_bounds = array<i64: 32, 512>}, {pipeline_mode = #tpu.pipeline_mode<synchronous>, transform_indices = @transform_8, window_bounds = array<i64: 8, 1>}, {pipeline_mode = #tpu.pipeline_mode<synchronous>, transform_indices = @transform_9, window_bounds = array<i64: 8, 1>}, {pipeline_mode = #tpu.pipeline_mode<synchronous>, transform_indices = @transform_10, window_bounds = array<i64: 8, 512>}, {pipeline_mode = #tpu.pipeline_mode<synchronous>, transform_indices = @transform_11, window_bounds = array<i64: 8, 512>}, {pipeline_mode = #tpu.pipeline_mode<synchronous>, transform_indices = @transform_12, window_bounds = array<i64: 8, 512>}, {pipeline_mode = #tpu.pipeline_mode<synchronous>, transform_indices = @transform_13, window_bounds = array<i64: 8, 512>}]} {
    %c0 = arith.constant 0 : index
    %c0_0 = arith.constant 0 : index
    %0 = vector.load %arg1[%c0, %c0_0] : memref<8x32xbf16, #tpu.memory_space<vmem>>, vector<8x32xbf16>
    %c0_1 = arith.constant 0 : index
    %c0_2 = arith.constant 0 : index
    %1 = vector.load %arg5[%c0_1, %c0_2] : memref<32x512xbf16, #tpu.memory_space<vmem>>, vector<32x512xbf16>
    %cst = arith.constant dense<0.000000e+00> : vector<8x512xf32>
    %2 = tpu.matmul %0, %1, %cst {dimension_numbers = #tpu.dot_dimension_numbers<[1], [0], [0], [1], [0, 0, 1, 1], [], []>} : vector<8x32xbf16>, vector<32x512xbf16>, vector<8x512xf32> -> vector<8x512xf32>
    %c0_3 = arith.constant 0 : index
    %c0_4 = arith.constant 0 : index
    %3 = vector.load %arg2[%c0_3, %c0_4] : memref<8x32xbf16, #tpu.memory_space<vmem>>, vector<8x32xbf16>
    %c0_5 = arith.constant 0 : index
    %c0_6 = arith.constant 0 : index
    %4 = vector.load %arg6[%c0_5, %c0_6] : memref<32x512xbf16, #tpu.memory_space<vmem>>, vector<32x512xbf16>
    %cst_7 = arith.constant dense<0.000000e+00> : vector<8x512xf32>
    %5 = tpu.matmul %3, %4, %cst_7 {dimension_numbers = #tpu.dot_dimension_numbers<[1], [0], [0], [1], [0, 0, 1, 1], [], []>} : vector<8x32xbf16>, vector<32x512xbf16>, vector<8x512xf32> -> vector<8x512xf32>
    %c0_8 = arith.constant 0 : index
    %c0_9 = arith.constant 0 : index
    %6 = vector.load %arg3[%c0_8, %c0_9] : memref<8x32xbf16, #tpu.memory_space<vmem>>, vector<8x32xbf16>
    %c0_10 = arith.constant 0 : index
    %c0_11 = arith.constant 0 : index
    %7 = vector.load %arg7[%c0_10, %c0_11] : memref<32x512xbf16, #tpu.memory_space<vmem>>, vector<32x512xbf16>
    %cst_12 = arith.constant dense<0.000000e+00> : vector<8x512xf32>
    %8 = tpu.matmul %6, %7, %cst_12 {dimension_numbers = #tpu.dot_dimension_numbers<[1], [0], [0], [1], [0, 0, 1, 1], [], []>} : vector<8x32xbf16>, vector<32x512xbf16>, vector<8x512xf32> -> vector<8x512xf32>
    %c0_13 = arith.constant 0 : index
    %c0_14 = arith.constant 0 : index
    %9 = vector.load %arg4[%c0_13, %c0_14] : memref<8x32xbf16, #tpu.memory_space<vmem>>, vector<8x32xbf16>
    %c0_15 = arith.constant 0 : index
    %c0_16 = arith.constant 0 : index
    %10 = vector.load %arg8[%c0_15, %c0_16] : memref<32x512xbf16, #tpu.memory_space<vmem>>, vector<32x512xbf16>
    %cst_17 = arith.constant dense<0.000000e+00> : vector<8x512xf32>
    %11 = tpu.matmul %9, %10, %cst_17 {dimension_numbers = #tpu.dot_dimension_numbers<[1], [0], [0], [1], [0, 0, 1, 1], [], []>} : vector<8x32xbf16>, vector<32x512xbf16>, vector<8x512xf32> -> vector<8x512xf32>
    %12 = tpu.iota {dimensions = array<i32: 1>} : vector<1x512xi32>
    %c512_i32 = arith.constant 512 : i32
    %13 = vector.broadcast %c512_i32 : i32 to vector<1x512xi32>
    %14 = arith.cmpi slt, %12, %13 : vector<1x512xi32>
    %cst_18 = arith.constant 0.000000e+00 : f32
    %15 = vector.shape_cast %14 : vector<1x512xi1> to vector<1x512xi1>
    %16 = vector.broadcast %15 : vector<1x512xi1> to vector<8x512xi1>
    %17 = vector.broadcast %cst_18 : f32 to vector<8x512xf32>
    %18 = arith.select %16, %2, %17 : vector<8x512xi1>, vector<8x512xf32>
    %cst_19 = arith.constant dense<0.000000e+00> : vector<8xf32>
    %19 = vector.multi_reduction <add>, %18, %cst_19 [1] : vector<8x512xf32> to vector<8xf32>
    %20 = vector.shape_cast %19 : vector<8xf32> to vector<8x1xf32>
    %cst_20 = arith.constant 0.000000e+00 : f32
    %21 = vector.broadcast %cst_20 : f32 to vector<8x1xf32>
    %22 = arith.addf %21, %20 : vector<8x1xf32>
    %23 = arith.mulf %18, %18 : vector<8x512xf32>
    %cst_21 = arith.constant dense<0.000000e+00> : vector<8xf32>
    %24 = vector.multi_reduction <add>, %23, %cst_21 [1] : vector<8x512xf32> to vector<8xf32>
    %25 = vector.shape_cast %24 : vector<8xf32> to vector<8x1xf32>
    %cst_22 = arith.constant 0.000000e+00 : f32
    %26 = vector.broadcast %cst_22 : f32 to vector<8x1xf32>
    %27 = arith.addf %26, %25 : vector<8x1xf32>
    %cst_23 = arith.constant 0.000000e+00 : f32
    %28 = vector.shape_cast %14 : vector<1x512xi1> to vector<1x512xi1>
    %29 = vector.broadcast %28 : vector<1x512xi1> to vector<8x512xi1>
    %30 = vector.broadcast %cst_23 : f32 to vector<8x512xf32>
    %31 = arith.select %29, %5, %30 : vector<8x512xi1>, vector<8x512xf32>
    %cst_24 = arith.constant dense<0.000000e+00> : vector<8xf32>
    %32 = vector.multi_reduction <add>, %31, %cst_24 [1] : vector<8x512xf32> to vector<8xf32>
    %33 = vector.shape_cast %32 : vector<8xf32> to vector<8x1xf32>
    %34 = arith.addf %22, %33 : vector<8x1xf32>
    %35 = arith.mulf %31, %31 : vector<8x512xf32>
    %cst_25 = arith.constant dense<0.000000e+00> : vector<8xf32>
    %36 = vector.multi_reduction <add>, %35, %cst_25 [1] : vector<8x512xf32> to vector<8xf32>
    %37 = vector.shape_cast %36 : vector<8xf32> to vector<8x1xf32>
    %38 = arith.addf %27, %37 : vector<8x1xf32>
    %cst_26 = arith.constant 0.000000e+00 : f32
    %39 = vector.shape_cast %14 : vector<1x512xi1> to vector<1x512xi1>
    %40 = vector.broadcast %39 : vector<1x512xi1> to vector<8x512xi1>
    %41 = vector.broadcast %cst_26 : f32 to vector<8x512xf32>
    %42 = arith.select %40, %8, %41 : vector<8x512xi1>, vector<8x512xf32>
    %cst_27 = arith.constant dense<0.000000e+00> : vector<8xf32>
    %43 = vector.multi_reduction <add>, %42, %cst_27 [1] : vector<8x512xf32> to vector<8xf32>
    %44 = vector.shape_cast %43 : vector<8xf32> to vector<8x1xf32>
    %45 = arith.addf %34, %44 : vector<8x1xf32>
    %46 = arith.mulf %42, %42 : vector<8x512xf32>
    %cst_28 = arith.constant dense<0.000000e+00> : vector<8xf32>
    %47 = vector.multi_reduction <add>, %46, %cst_28 [1] : vector<8x512xf32> to vector<8xf32>
    %48 = vector.shape_cast %47 : vector<8xf32> to vector<8x1xf32>
    %49 = arith.addf %38, %48 : vector<8x1xf32>
    %cst_29 = arith.constant 0.000000e+00 : f32
    %50 = vector.shape_cast %14 : vector<1x512xi1> to vector<1x512xi1>
    %51 = vector.broadcast %50 : vector<1x512xi1> to vector<8x512xi1>
    %52 = vector.broadcast %cst_29 : f32 to vector<8x512xf32>
    %53 = arith.select %51, %11, %52 : vector<8x512xi1>, vector<8x512xf32>
    %cst_30 = arith.constant dense<0.000000e+00> : vector<8xf32>
    %54 = vector.multi_reduction <add>, %53, %cst_30 [1] : vector<8x512xf32> to vector<8xf32>
    %55 = vector.shape_cast %54 : vector<8xf32> to vector<8x1xf32>
    %56 = arith.addf %45, %55 : vector<8x1xf32>
    %57 = arith.mulf %53, %53 : vector<8x512xf32>
    %cst_31 = arith.constant dense<0.000000e+00> : vector<8xf32>
    %58 = vector.multi_reduction <add>, %57, %cst_31 [1] : vector<8x512xf32> to vector<8xf32>
    %59 = vector.shape_cast %58 : vector<8xf32> to vector<8x1xf32>
    %60 = arith.addf %49, %59 : vector<8x1xf32>
    %cst_32 = arith.constant 2.048000e+03 : f32
    %61 = vector.broadcast %cst_32 : f32 to vector<8x1xf32>
    %62 = arith.divf %56, %61 : vector<8x1xf32>
    %cst_33 = arith.constant 2.048000e+03 : f32
    %63 = vector.broadcast %cst_33 : f32 to vector<8x1xf32>
    %64 = arith.divf %60, %63 : vector<8x1xf32>
    %65 = arith.mulf %62, %62 : vector<8x1xf32>
    %66 = arith.subf %64, %65 : vector<8x1xf32>
    %cst_34 = arith.constant 0.000000e+00 : f32
    %67 = vector.broadcast %cst_34 : f32 to vector<8x1xf32>
    %68 = arith.maximumf %66, %67 : vector<8x1xf32>
    %c0_35 = arith.constant 0 : index
    %c0_36 = arith.constant 0 : index
    %69 = vector.load %arg9[%c0_35, %c0_36] : memref<8x1xf32, #tpu.memory_space<vmem>>, vector<8x1xf32>
    %cst_37 = arith.constant 9.99999974E-6 : f32
    %70 = vector.broadcast %cst_37 : f32 to vector<8x1xf32>
    %71 = arith.addf %68, %70 : vector<8x1xf32>
    %72 = math.rsqrt %71 : vector<8x1xf32>
    %73 = arith.mulf %69, %72 : vector<8x1xf32>
    %c0_38 = arith.constant 0 : index
    %c0_39 = arith.constant 0 : index
    %74 = vector.load %arg10[%c0_38, %c0_39] : memref<8x1xf32, #tpu.memory_space<vmem>>, vector<8x1xf32>
    %75 = arith.mulf %62, %73 : vector<8x1xf32>
    %76 = arith.subf %74, %75 : vector<8x1xf32>
    %77 = vector.broadcast %73 : vector<8x1xf32> to vector<8x512xf32>
    %78 = arith.mulf %2, %77 : vector<8x512xf32>
    %79 = vector.broadcast %76 : vector<8x1xf32> to vector<8x512xf32>
    %80 = arith.addf %78, %79 : vector<8x512xf32>
    %cst_40 = arith.constant 0.000000e+00 : f32
    %81 = vector.broadcast %cst_40 : f32 to vector<8x512xf32>
    %82 = arith.cmpf oge, %80, %81 : vector<8x512xf32>
    %cst_41 = arith.constant 2.000000e-01 : f32
    %83 = vector.broadcast %cst_41 : f32 to vector<8x512xf32>
    %84 = arith.mulf %83, %80 : vector<8x512xf32>
    %85 = arith.select %82, %80, %84 : vector<8x512xi1>, vector<8x512xf32>
    %c0_42 = arith.constant 0 : index
    %c0_43 = arith.constant 0 : index
    %86 = vector.load %arg11[%c0_42, %c0_43] : memref<8x512xf32, #tpu.memory_space<vmem>>, vector<8x512xf32>
    tpu.vector_store %arg11[%c0_42, %c0_43], %85 {strides = array<i32>} : memref<8x512xf32, #tpu.memory_space<vmem>>, vector<8x512xf32>,
    %87 = vector.broadcast %73 : vector<8x1xf32> to vector<8x512xf32>
    %88 = arith.mulf %5, %87 : vector<8x512xf32>
    %89 = vector.broadcast %76 : vector<8x1xf32> to vector<8x512xf32>
    %90 = arith.addf %88, %89 : vector<8x512xf32>
    %cst_44 = arith.constant 0.000000e+00 : f32
    %91 = vector.broadcast %cst_44 : f32 to vector<8x512xf32>
    %92 = arith.cmpf oge, %90, %91 : vector<8x512xf32>
    %cst_45 = arith.constant 2.000000e-01 : f32
    %93 = vector.broadcast %cst_45 : f32 to vector<8x512xf32>
    %94 = arith.mulf %93, %90 : vector<8x512xf32>
    %95 = arith.select %92, %90, %94 : vector<8x512xi1>, vector<8x512xf32>
    %c0_46 = arith.constant 0 : index
    %c0_47 = arith.constant 0 : index
    %96 = vector.load %arg12[%c0_46, %c0_47] : memref<8x512xf32, #tpu.memory_space<vmem>>, vector<8x512xf32>
    tpu.vector_store %arg12[%c0_46, %c0_47], %95 {strides = array<i32>} : memref<8x512xf32, #tpu.memory_space<vmem>>, vector<8x512xf32>,
    %97 = vector.broadcast %73 : vector<8x1xf32> to vector<8x512xf32>
    %98 = arith.mulf %8, %97 : vector<8x512xf32>
    %99 = vector.broadcast %76 : vector<8x1xf32> to vector<8x512xf32>
    %100 = arith.addf %98, %99 : vector<8x512xf32>
    %cst_48 = arith.constant 0.000000e+00 : f32
    %101 = vector.broadcast %cst_48 : f32 to vector<8x512xf32>
    %102 = arith.cmpf oge, %100, %101 : vector<8x512xf32>
    %cst_49 = arith.constant 2.000000e-01 : f32
    %103 = vector.broadcast %cst_49 : f32 to vector<8x512xf32>
    %104 = arith.mulf %103, %100 : vector<8x512xf32>
    %105 = arith.select %102, %100, %104 : vector<8x512xi1>, vector<8x512xf32>
    %c0_50 = arith.constant 0 : index
    %c0_51 = arith.constant 0 : index
    %106 = vector.load %arg13[%c0_50, %c0_51] : memref<8x512xf32, #tpu.memory_space<vmem>>, vector<8x512xf32>
    tpu.vector_store %arg13[%c0_50, %c0_51], %105 {strides = array<i32>} : memref<8x512xf32, #tpu.memory_space<vmem>>, vector<8x512xf32>,
    %107 = vector.broadcast %73 : vector<8x1xf32> to vector<8x512xf32>
    %108 = arith.mulf %11, %107 : vector<8x512xf32>
    %109 = vector.broadcast %76 : vector<8x1xf32> to vector<8x512xf32>
    %110 = arith.addf %108, %109 : vector<8x512xf32>
    %cst_52 = arith.constant 0.000000e+00 : f32
    %111 = vector.broadcast %cst_52 : f32 to vector<8x512xf32>
    %112 = arith.cmpf oge, %110, %111 : vector<8x512xf32>
    %cst_53 = arith.constant 2.000000e-01 : f32
    %113 = vector.broadcast %cst_53 : f32 to vector<8x512xf32>
    %114 = arith.mulf %113, %110 : vector<8x512xf32>
    %115 = arith.select %112, %110, %114 : vector<8x512xi1>, vector<8x512xf32>
    %c0_54 = arith.constant 0 : index
    %c0_55 = arith.constant 0 : index
    %116 = vector.load %arg14[%c0_54, %c0_55] : memref<8x512xf32, #tpu.memory_space<vmem>>, vector<8x512xf32>
    tpu.vector_store %arg14[%c0_54, %c0_55], %115 {strides = array<i32>} : memref<8x512xf32, #tpu.memory_space<vmem>>, vector<8x512xf32>,
    return
  }
  func.func @transform_0(%arg0: i32) -> (i32, i32) {
    %c0_i32 = arith.constant 0 : i32
    %c0_i32_0 = arith.constant 0 : i32
    %c0_i32_1 = arith.constant 0 : i32
    return %c0_i32, %c0_i32_0 : i32, i32
  }
  func.func @transform_1(%arg0: i32) -> (i32, i32) {
    %c0_i32 = arith.constant 0 : i32
    %c0_i32_0 = arith.constant 0 : i32
    %c0_i32_1 = arith.constant 0 : i32
    return %c0_i32, %c0_i32_0 : i32, i32
  }
  func.func @transform_2(%arg0: i32) -> (i32, i32) {
    %c0_i32 = arith.constant 0 : i32
    %c0_i32_0 = arith.constant 0 : i32
    %c0_i32_1 = arith.constant 0 : i32
    return %c0_i32, %c0_i32_0 : i32, i32
  }
  func.func @transform_3(%arg0: i32) -> (i32, i32) {
    %c0_i32 = arith.constant 0 : i32
    %c0_i32_0 = arith.constant 0 : i32
    %c0_i32_1 = arith.constant 0 : i32
    return %c0_i32, %c0_i32_0 : i32, i32
  }
  func.func @transform_4(%arg0: i32) -> (i32, i32) {
    %c0_i32 = arith.constant 0 : i32
    %c0_i32_0 = arith.constant 0 : i32
    %c0_i32_1 = arith.constant 0 : i32
    return %c0_i32, %c0_i32_0 : i32, i32
  }
  func.func @transform_5(%arg0: i32) -> (i32, i32) {
    %c0_i32 = arith.constant 0 : i32
    %c0_i32_0 = arith.constant 0 : i32
    %c0_i32_1 = arith.constant 0 : i32
    return %c0_i32, %c0_i32_0 : i32, i32
  }
  func.func @transform_6(%arg0: i32) -> (i32, i32) {
    %c0_i32 = arith.constant 0 : i32
    %c0_i32_0 = arith.constant 0 : i32
    %c0_i32_1 = arith.constant 0 : i32
    return %c0_i32, %c0_i32_0 : i32, i32
  }
  func.func @transform_7(%arg0: i32) -> (i32, i32) {
    %c0_i32 = arith.constant 0 : i32
    %c0_i32_0 = arith.constant 0 : i32
    %c0_i32_1 = arith.constant 0 : i32
    return %c0_i32, %c0_i32_0 : i32, i32
  }
  func.func @transform_8(%arg0: i32) -> (i32, i32) {
    %c0_i32 = arith.constant 0 : i32
    %c0_i32_0 = arith.constant 0 : i32
    %c0_i32_1 = arith.constant 0 : i32
    return %c0_i32, %c0_i32_0 : i32, i32
  }
  func.func @transform_9(%arg0: i32) -> (i32, i32) {
    %c0_i32 = arith.constant 0 : i32
    %c0_i32_0 = arith.constant 0 : i32
    %c0_i32_1 = arith.constant 0 : i32
    return %c0_i32, %c0_i32_0 : i32, i32
  }
  func.func @transform_10(%arg0: i32) -> (i32, i32) {
    %c0_i32 = arith.constant 0 : i32
    %c0_i32_0 = arith.constant 0 : i32
    %c0_i32_1 = arith.constant 0 : i32
    return %c0_i32, %c0_i32_0 : i32, i32
  }
  func.func @transform_11(%arg0: i32) -> (i32, i32) {
    %c0_i32 = arith.constant 0 : i32
    %c0_i32_0 = arith.constant 0 : i32
    %c0_i32_1 = arith.constant 0 : i32
    return %c0_i32, %c0_i32_0 : i32, i32
  }
  func.func @transform_12(%arg0: i32) -> (i32, i32) {
    %c0_i32 = arith.constant 0 : i32
    %c0_i32_0 = arith.constant 0 : i32
    %c0_i32_1 = arith.constant 0 : i32
    return %c0_i32, %c0_i32_0 : i32, i32
  }
  func.func @transform_13(%arg0: i32) -> (i32, i32) {
    %c0_i32 = arith.constant 0 : i32
    %c0_i32_0 = arith.constant 0 : i32
    %c0_i32_1 = arith.constant 0 : i32
    return %c0_i32, %c0_i32_0 : i32, i32
  }
}

module attributes {stable_mosaic.version = 11 : i64} {
  func.func @_conv_tanh_kernel(%arg0: i32, %arg1: memref<8x72xbf16, #tpu.memory_space<vmem>>, %arg2: memref<72x1024xbf16, #tpu.memory_space<vmem>>, %arg3: memref<8x1xf32, #tpu.memory_space<vmem>>, %arg4: memref<8x1024xf32, #tpu.memory_space<vmem>>) attributes {dimension_semantics = [#tpu.dimension_semantics<parallel>], iteration_bounds = array<i64: 2>, scalar_prefetch = 0 : i64, scratch_operands = 0 : i64, tpu.core_type = #tpu.core_type<tc>, window_params = [{pipeline_mode = #tpu.pipeline_mode<synchronous>, transform_indices = @transform_0, window_bounds = array<i64: 8, 72>}, {transform_indices = @transform_1, window_bounds = array<i64: 72, 1024>}, {pipeline_mode = #tpu.pipeline_mode<synchronous>, transform_indices = @transform_2, window_bounds = array<i64: 8, 1>}, {transform_indices = @transform_3, window_bounds = array<i64: 8, 1024>}]} {
    %c0 = arith.constant 0 : index
    %c0_0 = arith.constant 0 : index
    %0 = vector.load %arg1[%c0, %c0_0] : memref<8x72xbf16, #tpu.memory_space<vmem>>, vector<8x72xbf16>
    %c0_1 = arith.constant 0 : index
    %c0_2 = arith.constant 0 : index
    %1 = vector.load %arg2[%c0_1, %c0_2] : memref<72x1024xbf16, #tpu.memory_space<vmem>>, vector<72x1024xbf16>
    %cst = arith.constant dense<0.000000e+00> : vector<8x1024xf32>
    %2 = tpu.matmul %0, %1, %cst {dimension_numbers = #tpu.dot_dimension_numbers<[1], [0], [0], [1], [0, 0, 1, 1], [], []>} : vector<8x72xbf16>, vector<72x1024xbf16>, vector<8x1024xf32> -> vector<8x1024xf32>
    %c0_3 = arith.constant 0 : index
    %c0_4 = arith.constant 0 : index
    %3 = vector.load %arg3[%c0_3, %c0_4] : memref<8x1xf32, #tpu.memory_space<vmem>>, vector<8x1xf32>
    %4 = vector.broadcast %3 : vector<8x1xf32> to vector<8x1024xf32>
    %5 = arith.addf %2, %4 : vector<8x1024xf32>
    %6 = math.tanh %5 : vector<8x1024xf32>
    %c0_5 = arith.constant 0 : index
    %c0_6 = arith.constant 0 : index
    %7 = vector.load %arg4[%c0_5, %c0_6] : memref<8x1024xf32, #tpu.memory_space<vmem>>, vector<8x1024xf32>
    tpu.vector_store %arg4[%c0_5, %c0_6], %6 {strides = array<i32>} : memref<8x1024xf32, #tpu.memory_space<vmem>>, vector<8x1024xf32>,
    return
  }
  func.func @transform_0(%arg0: i32) -> (i32, i32) {
    %c0_i32 = arith.constant 0 : i32
    %c0_i32_0 = arith.constant 0 : i32
    %c0_i32_1 = arith.constant 0 : i32
    return %c0_i32, %c0_i32_0 : i32, i32
  }
  func.func @transform_1(%arg0: i32) -> (i32, i32) {
    %c0_i32 = arith.constant 0 : i32
    %c0_i32_0 = arith.constant 0 : i32
    return %c0_i32, %arg0 : i32, i32
  }
  func.func @transform_2(%arg0: i32) -> (i32, i32) {
    %c0_i32 = arith.constant 0 : i32
    %c0_i32_0 = arith.constant 0 : i32
    %c0_i32_1 = arith.constant 0 : i32
    return %c0_i32, %c0_i32_0 : i32, i32
  }
  func.func @transform_3(%arg0: i32) -> (i32, i32) {
    %c0_i32 = arith.constant 0 : i32
    %c0_i32_0 = arith.constant 0 : i32
    return %c0_i32, %arg0 : i32, i32
  }
}

</mosaic_0001>

<bundles_post_ra>
// kernel: generator_b_forward.7
= control target key start
LH: loop header
LB: loop body
LE: loop exit
PB: predicated region body
PF: predicated region fallthrough
CT: control target
= control target key end

     0   :  { %v694_v0 = vmov 0   ;;  %vm335_vm0 = vcmask 261120   ;;  %s1004_s2 = inlined_call_operand.vmem [shape: f32[256,1], index: 2, kind: input, shape index: {}]   ;;  %s1005_s1 = inlined_call_operand.vmem [shape: bf16[32,128], index: 1, kind: input, shape index: {}]   ;;  %s1006_s0 = inlined_call_operand.vmem [shape: bf16[256,32], index: 0, kind: input, shape index: {}]   ;;  %s1007_s3 = inlined_call_operand.vmem [shape: f32[256,128], index: 3, kind: output, shape index: {}]  }
   0x1   :  { %675 = vset.pattern.permute.xlu1 %v694_v0  ;;  %674 = vset.pattern.permute.xlu0 %v694_v0  ;;  %v53_v1 = vld [vmem:[%s1004_s2 + $0x10] sm:$0xff]  ;;  %v51_v2 = vld [vmem:[%s1004_s2] sm:$0xff]  ;;  %v676_v3 = vld [vmem:[%s1005_s1 + $0x8] sm:$0xff]  }
   0x2   :  { %95 = vperm.xlu1 %675, %v53_v1   ;;  %85 = vperm.xlu0 %674, %v51_v2   ;;  %v54_v4 = vld [vmem:[%s1004_s2 + $0x18] sm:$0xff]  ;;  %v52_v5 = vld [vmem:[%s1004_s2 + $0x8] sm:$0xff]  ;;  %v677_v6 = vld [vmem:[%s1005_s1] sm:$0xff]  }
   0x3   :  { %633 = vmatprep.subr.bf16.mxu0 %v676_v3  ;;  %669 = vmatprep.subr.bf16.mxu1 %v676_v3  ;;  %v56_v7 = vld [vmem:[%s1004_s2 + $0x28] sm:$0xff]  ;;  %v55_v8 = vld [vmem:[%s1004_s2 + $0x20] sm:$0xff]  ;;  %v58_v13 = vld [vmem:[%s1004_s2 + $0x38] sm:$0xff] }
   0x4   :  { %634 = vmatpush3.bf16.msra.mxu0 %v676_v3  ;;  %671 = vmatpush3.bf16.msra.mxu1 %v676_v3  ;;  %v678_v9 = vld [vmem:[%s1006_s0] sm:$0xff]   ;;  %v680_v11 = vld [vmem:[%s1006_s0 + $0x8] sm:$0xff]   ;;  %v57_v14 = vld [vmem:[%s1004_s2 + $0x30] sm:$0xff] }
   0x5   :  { %v679_v10 = vld [vmem:[%s1006_s0 + $0x40] sm:$0xff]   ;;  %635 = vmatprep.subr.bf16.mxu0 %v677_v6  ;;  %670 = vmatprep.subr.bf16.mxu1 %v677_v6  ;;  %v681_v12 = vld [vmem:[%s1006_s0 + $0x48] sm:$0xff]   ;;  %v682_v15 = vld [vmem:[%s1006_s0 + $0x10] sm:$0xff]  }
   0x6   :  { %100 = vperm.xlu1 %675, %v54_v4   ;;  %90 = vperm.xlu0 %674, %v52_v5   ;;  %v683_v16 = vld [vmem:[%s1006_s0 + $0x50] sm:$0xff]   ;;  %v60_v17 = vld [vmem:[%s1004_s2 + $0x48] sm:$0xff]  ;;  %v59_v18 = vld [vmem:[%s1004_s2 + $0x40] sm:$0xff] }
   0x7   :  { %637 = vmatprep.mubr.msk.bf16.mxu0 %vm335_vm0, %v678_v9  ;;  %653 = vmatprep.mubr.msk.bf16.mxu1 %vm335_vm0, %v679_v10  ;;  %v684_v19 = vld [vmem:[%s1006_s0 + $0x18] sm:$0xff]   ;;  %v686_v21 = vld [vmem:[%s1006_s0 + $0x20] sm:$0xff]   ;;  %v61_v24 = vld [vmem:[%s1004_s2 + $0x50] sm:$0xff] }
   0x8   :  { %636 = vmatpush3.bf16.msra.mxu0 %v677_v6  ;;  %672 = vmatpush3.bf16.msra.mxu1 %v677_v6  ;;  %v685_v20 = vld [vmem:[%s1006_s0 + $0x58] sm:$0xff]   ;;  %v687_v22 = vld [vmem:[%s1006_s0 + $0x60] sm:$0xff]   ;;  %v64_v25 = vld [vmem:[%s1004_s2 + $0x68] sm:$0xff] }
   0x9   :  { %v62_v23 = vld [vmem:[%s1004_s2 + $0x58] sm:$0xff]  ;;  %v63_v26 = vld [vmem:[%s1004_s2 + $0x60] sm:$0xff]  ;;  %v688_v27 = vld [vmem:[%s1006_s0 + $0x28] sm:$0xff]  }
   0xa   :  { %110 = vperm.xlu1 %675, %v56_v7   ;;  %105 = vperm.xlu0 %674, %v55_v8   ;;  %v689_v28 = vld [vmem:[%s1006_s0 + $0x68] sm:$0xff]   ;;  %v690_v29 = vld [vmem:[%s1006_s0 + $0x30] sm:$0xff]   ;;  %v66_v31 = vld [vmem:[%s1004_s2 + $0x78] sm:$0xff] }
   0xb   :  { %638 = vmatmul.mubr.msk.bf16.vlgmr.msra.gmra.mxu0 %vm335_vm0, %v680_v11  ;;  %654 = vmatmul.mubr.msk.bf16.vlgmr.msra.gmra.mxu1 %vm335_vm0, %v681_v12  ;;  %v691_v30 = vld [vmem:[%s1006_s0 + $0x70] sm:$0xff]   ;;  %v68_v33 = vld [vmem:[%s1004_s2 + $0x88] sm:$0xff]  ;;  %v67_v34 = vld [vmem:[%s1004_s2 + $0x80] sm:$0xff] }
   0xc   :  { %641 = vmatprep.mubr.msk.bf16.mxu0 %vm335_vm0, %v682_v15  ;;  %657 = vmatprep.mubr.msk.bf16.mxu1 %vm335_vm0, %v683_v16  ;;  %v65_v32 = vld [vmem:[%s1004_s2 + $0x70] sm:$0xff]  ;;  %v692_v35 = vld [vmem:[%s1006_s0 + $0x38] sm:$0xff]   ;;  %v72_v39 = vld [vmem:[%s1004_s2 + $0xa8] sm:$0xff] }
   0xd   :  { %v693_v36 = vld [vmem:[%s1006_s0 + $0x78] sm:$0xff]   ;;  %v69_v38 = vld [vmem:[%s1004_s2 + $0x90] sm:$0xff]  ;;  %v71_v40 = vld [vmem:[%s1004_s2 + $0xa0] sm:$0xff] }
   0xe   :  { %120 = vperm.xlu1 %675, %v58_v13   ;;  %115 = vperm.xlu0 %674, %v57_v14   ;;  %v70_v37 = vld [vmem:[%s1004_s2 + $0x98] sm:$0xff]  ;;  %v73_v42 = vld [vmem:[%s1004_s2 + $0xb0] sm:$0xff]  ;;  %v76_v43 = vld [vmem:[%s1004_s2 + $0xc8] sm:$0xff] }
   0xf   :  { %v74_v41 = vld [vmem:[%s1004_s2 + $0xb8] sm:$0xff]  ;;  %v75_v44 = vld [vmem:[%s1004_s2 + $0xc0] sm:$0xff]  ;;  %v77_v46 = vld [vmem:[%s1004_s2 + $0xd0] sm:$0xff] }
  0x10   :  { %v78_v45 = vld [vmem:[%s1004_s2 + $0xd8] sm:$0xff]  ;;  %v80_v47 = vld [vmem:[%s1004_s2 + $0xe8] sm:$0xff]  ;;  %v79_v48 = vld [vmem:[%s1004_s2 + $0xe0] sm:$0xff] }
  0x11   :  { %v82_v49 = vld [vmem:[%s1004_s2 + $0xf8] sm:$0xff]  ;;  %v81_v50 = vld [vmem:[%s1004_s2 + $0xf0] sm:$0xff] }
  0x12   :  { %130 = vperm.xlu1 %675, %v60_v17   ;;  %125 = vperm.xlu0 %674, %v59_v18  }
  0x13   :  { %642 = vmatmul.mubr.msk.bf16.gmra.mxu0 %vm335_vm0, %v684_v19  ;;  %658 = vmatmul.mubr.msk.bf16.gmra.mxu1 %vm335_vm0, %v685_v20 }
  0x14   :  { %645 = vmatprep.mubr.msk.bf16.mxu0 %vm335_vm0, %v686_v21  ;;  %661 = vmatprep.mubr.msk.bf16.mxu1 %vm335_vm0, %v687_v22 }
  0x16   :  { %140 = vperm.xlu1 %675, %v62_v23   ;;  %135 = vperm.xlu0 %674, %v61_v24  }
  0x1a   :  { %150 = vperm.xlu1 %675, %v64_v25   ;;  %145 = vperm.xlu0 %674, %v63_v26  }
  0x1b   :  { %646 = vmatmul.mubr.msk.bf16.gmra.mxu0 %vm335_vm0, %v688_v27  ;;  %662 = vmatmul.mubr.msk.bf16.gmra.mxu1 %vm335_vm0, %v689_v28 }
  0x1c   :  { %649 = vmatprep.mubr.msk.bf16.mxu0 %vm335_vm0, %v690_v29  ;;  %665 = vmatprep.mubr.msk.bf16.mxu1 %vm335_vm0, %v691_v30 }
  0x1e   :  { %160 = vperm.xlu1 %675, %v66_v31   ;;  %155 = vperm.xlu0 %674, %v65_v32  }
  0x22   :  { %170 = vperm.xlu1 %675, %v68_v33   ;;  %165 = vperm.xlu0 %674, %v67_v34  }
  0x23   :  { %650 = vmatmul.mubr.msk.bf16.gmra.mxu0 %vm335_vm0, %v692_v35  ;;  %666 = vmatmul.mubr.msk.bf16.gmra.mxu1 %vm335_vm0, %v693_v36 }
  0x26   :  { %180 = vperm.xlu1 %675, %v70_v37   ;;  %175 = vperm.xlu0 %674, %v69_v38  }
  0x2a   :  { %190 = vperm.xlu1 %675, %v72_v39   ;;  %185 = vperm.xlu0 %674, %v71_v40  }
  0x2e   :  { %200 = vperm.xlu1 %675, %v74_v41   ;;  %195 = vperm.xlu0 %674, %v73_v42  }
  0x32   :  { %210 = vperm.xlu1 %675, %v76_v43   ;;  %205 = vperm.xlu0 %674, %v75_v44  }
  0x36   :  { %220 = vperm.xlu1 %675, %v78_v45   ;;  %215 = vperm.xlu0 %674, %v77_v46  }
  0x3a   :  { %230 = vperm.xlu1 %675, %v80_v47   ;;  %225 = vperm.xlu0 %674, %v79_v48  }
  0x3e   :  { %240 = vperm.xlu1 %675, %v82_v49   ;;  %235 = vperm.xlu0 %674, %v81_v50  }
  0x7d   :  { %v86_v51 = vpop.permute.xlu0 %85  ;;  %v96_v52 = vpop.permute.xlu1 %95 }
  0x81   :  { %v91_v53 = vpop.permute.xlu0 %90  ;;  %v101_v54 = vpop.permute.xlu1 %100 }
  0x85   :  { %v106_v55 = vpop.permute.xlu0 %105  ;;  %v881_v56 = vpop.permute.xlu1 %110 }
  0x89   :  { %v116_v57 = vpop.permute.xlu0 %115  ;;  %v121_v58 = vpop.permute.xlu1 %120 }
  0x8d   :  { %v883_v59 = vpop.permute.xlu0 %125  ;;  %v885_v60 = vpop.permute.xlu1 %130 }
  0x91   :  { %v887_v61 = vpop.permute.xlu0 %135  ;;  %v889_v62 = vpop.permute.xlu1 %140 }
  0x95   :  { %v891_v63 = vpop.permute.xlu0 %145  ;;  %v893_v0 = vpop.permute.xlu1 %150 }
  0x99   :  { %v895_v1 = vpop.permute.xlu0 %155  ;;  %v897_v2 = vpop.permute.xlu1 %160 }
  0x9d   :  { %v166_v3 = vpop.permute.xlu0 %165  ;;  %v171_v4 = vpop.permute.xlu1 %170 }
  0xa1   :  { %v176_v5 = vpop.permute.xlu0 %175  ;;  %v181_v6 = vpop.permute.xlu1 %180 }
  0xa5   :  { %v186_v7 = vpop.permute.xlu0 %185  ;;  %v191_v8 = vpop.permute.xlu1 %190 }
  0xa9   :  { %v196_v9 = vpop.permute.xlu0 %195  ;;  %v201_v16 = vpop.permute.xlu1 %200 }
  0xad   :  { %v206_v21 = vpop.permute.xlu0 %205  ;;  %v211_v30 = vpop.permute.xlu1 %210 }
  0xb1   :  { %v216_v35 = vpop.permute.xlu0 %215  ;;  %v221_v44 = vpop.permute.xlu1 %220 }
  0xb5   :  { %v226_v49 = vpop.permute.xlu0 %225 }
  0xcb   :  { %v639_v10 = vpop.f32.mrf.mxu0  ;;  %v655_v11 = vpop.f32.mrf.mxu1 }
  0xcc   :  { %v427_v12 = vadd.f32 %v639_v10, %v96_v52  ;;  %v491_v13 = vadd.f32 %v655_v11, %v176_v5 }
  0xcd   :  { %v418_v14 = vpop.f32.mrf.mxu0  ;;  %v482_v15 = vpop.f32.mrf.mxu1 }
  0xce   :  { %547 = vst [vmem:[%s1007_s3 + $0x10] sm:$0xff] %v427_v12  ;;  %563 = vst [vmem:[%s1007_s3 + $0x90] sm:$0xff] %v491_v13  ;;  %v419_v17 = vadd.f32 %v418_v14, %v86_v51  ;;  %v483_v18 = vadd.f32 %v482_v15, %v166_v3 }
  0xcf   :  { %v640_v19 = vpop.f32.mrf.mxu0  ;;  %v656_v20 = vpop.f32.mrf.mxu1 }
  0xd0   :  { %545 = vst [vmem:[%s1007_s3] sm:$0xff] %v419_v17  ;;  %561 = vst [vmem:[%s1007_s3 + $0x80] sm:$0xff] %v483_v18  ;;  %v430_v22 = vadd.f32 %v640_v19, %v101_v54  ;;  %v494_v23 = vadd.f32 %v656_v20, %v181_v6  ;;  %v236_v6 = vpop.permute.xlu0 %235 }
  0xd1   :  { %v421_v24 = vpop.f32.mrf.mxu0  ;;  %v485_v25 = vpop.f32.mrf.mxu1 }
  0xd2   :  { %548 = vst [vmem:[%s1007_s3 + $0x18] sm:$0xff] %v430_v22  ;;  %564 = vst [vmem:[%s1007_s3 + $0x98] sm:$0xff] %v494_v23  ;;  %v422_v26 = vadd.f32 %v421_v24, %v91_v53  ;;  %v486_v27 = vadd.f32 %v485_v25, %v171_v4 }
  0xd3   :  { %v643_v28 = vpop.f32.mrf.mxu0  ;;  %v659_v29 = vpop.f32.mrf.mxu1 }
  0xd4   :  { %546 = vst [vmem:[%s1007_s3 + $0x8] sm:$0xff] %v422_v26  ;;  %562 = vst [vmem:[%s1007_s3 + $0x88] sm:$0xff] %v486_v27  ;;  %v443_v31 = vadd.f32 %v643_v28, %v116_v57  ;;  %v507_v32 = vadd.f32 %v659_v29, %v196_v9 }
  0xd5   :  { %v434_v33 = vpop.f32.mrf.mxu0  ;;  %v498_v34 = vpop.f32.mrf.mxu1 }
  0xd6   :  { %551 = vst [vmem:[%s1007_s3 + $0x30] sm:$0xff] %v443_v31  ;;  %567 = vst [vmem:[%s1007_s3 + $0xb0] sm:$0xff] %v507_v32  ;;  %v435_v36 = vadd.f32 %v434_v33, %v106_v55  ;;  %v499_v37 = vadd.f32 %v498_v34, %v186_v7 }
  0xd7   :  { %v644_v38 = vpop.f32.mrf.mxu0  ;;  %v660_v39 = vpop.f32.mrf.mxu1 }
  0xd8   :  { %549 = vst [vmem:[%s1007_s3 + $0x20] sm:$0xff] %v435_v36  ;;  %565 = vst [vmem:[%s1007_s3 + $0xa0] sm:$0xff] %v499_v37  ;;  %v446_v40 = vadd.f32 %v644_v38, %v121_v58  ;;  %v510_v41 = vadd.f32 %v660_v39, %v201_v16  ;;  %v231_v58 = vpop.permute.xlu1 %230 }
  0xd9   :  { %v437_v42 = vpop.f32.mrf.mxu0  ;;  %v501_v43 = vpop.f32.mrf.mxu1 }
  0xda   :  { %552 = vst [vmem:[%s1007_s3 + $0x38] sm:$0xff] %v446_v40  ;;  %568 = vst [vmem:[%s1007_s3 + $0xb8] sm:$0xff] %v510_v41  ;;  %v438_v45 = vadd.f32 %v437_v42, %v881_v56  ;;  %v502_v46 = vadd.f32 %v501_v43, %v191_v8 }
  0xdb   :  { %v647_v47 = vpop.f32.mrf.mxu0  ;;  %v663_v48 = vpop.f32.mrf.mxu1 }
  0xdc   :  { %550 = vst [vmem:[%s1007_s3 + $0x28] sm:$0xff] %v438_v45  ;;  %566 = vst [vmem:[%s1007_s3 + $0xa8] sm:$0xff] %v502_v46  ;;  %v459_v50 = vadd.f32 %v647_v47, %v887_v61  ;;  %v523_v51 = vadd.f32 %v663_v48, %v216_v35  ;;  %v241_v13 = vpop.permute.xlu1 %240 }
  0xdd   :  { %v450_v52 = vpop.f32.mrf.mxu0  ;;  %v514_v53 = vpop.f32.mrf.mxu1 }
  0xde   :  { %555 = vst [vmem:[%s1007_s3 + $0x50] sm:$0xff] %v459_v50  ;;  %571 = vst [vmem:[%s1007_s3 + $0xd0] sm:$0xff] %v523_v51  ;;  %v451_v54 = vadd.f32 %v450_v52, %v883_v59  ;;  %v515_v55 = vadd.f32 %v514_v53, %v206_v21 }
  0xdf   :  { %v648_v56 = vpop.f32.mrf.mxu0  ;;  %v664_v57 = vpop.f32.mrf.mxu1 }
  0xe0   :  { %553 = vst [vmem:[%s1007_s3 + $0x40] sm:$0xff] %v451_v54  ;;  %569 = vst [vmem:[%s1007_s3 + $0xc0] sm:$0xff] %v515_v55  ;;  %v462_v61 = vadd.f32 %v648_v56, %v889_v62  ;;  %v526_v3 = vadd.f32 %v664_v57, %v221_v44 }
  0xe1   :  { %v453_v4 = vpop.f32.mrf.mxu0  ;;  %v517_v5 = vpop.f32.mrf.mxu1 }
  0xe2   :  { %556 = vst [vmem:[%s1007_s3 + $0x58] sm:$0xff] %v462_v61  ;;  %572 = vst [vmem:[%s1007_s3 + $0xd8] sm:$0xff] %v526_v3  ;;  %v454_v59 = vadd.f32 %v453_v4, %v885_v60  ;;  %v518_v7 = vadd.f32 %v517_v5, %v211_v30 }
  0xe3   :  { %v651_v8 = vpop.f32.mrf.mxu0  ;;  %v667_v9 = vpop.f32.mrf.mxu1 }
  0xe4   :  { %554 = vst [vmem:[%s1007_s3 + $0x48] sm:$0xff] %v454_v59  ;;  %570 = vst [vmem:[%s1007_s3 + $0xc8] sm:$0xff] %v518_v7  ;;  %v475_v62 = vadd.f32 %v651_v8, %v895_v1  ;;  %v539_v10 = vadd.f32 %v667_v9, %v236_v6 }
  0xe5   :  { %v466_v11 = vpop.f32.mrf.mxu0  ;;  %v530_v12 = vpop.f32.mrf.mxu1 }
  0xe6   :  { %559 = vst [vmem:[%s1007_s3 + $0x70] sm:$0xff] %v475_v62  ;;  %575 = vst [vmem:[%s1007_s3 + $0xf0] sm:$0xff] %v539_v10  ;;  %v467_v60 = vadd.f32 %v466_v11, %v891_v63  ;;  %v531_v14 = vadd.f32 %v530_v12, %v226_v49 }
  0xe7   :  { %v652_v15 = vpop.f32.mrf.mxu0  ;;  %v668_v16 = vpop.f32.mrf.mxu1 }
  0xe8   :  { %557 = vst [vmem:[%s1007_s3 + $0x60] sm:$0xff] %v467_v60  ;;  %573 = vst [vmem:[%s1007_s3 + $0xe0] sm:$0xff] %v531_v14  ;;  %v478_v1 = vadd.f32 %v652_v15, %v897_v2  ;;  %v542_v17 = vadd.f32 %v668_v16, %v241_v13 }
  0xe9   :  { %v469_v18 = vpop.f32.mrf.mxu0  ;;  %v533_v19 = vpop.f32.mrf.mxu1 }
  0xea   :  { %560 = vst [vmem:[%s1007_s3 + $0x78] sm:$0xff] %v478_v1  ;;  %576 = vst [vmem:[%s1007_s3 + $0xf8] sm:$0xff] %v542_v17  ;;  %v470_v63 = vadd.f32 %v469_v18, %v893_v0  ;;  %v534_v20 = vadd.f32 %v533_v19, %v231_v58 }
  0xec   :  { %558 = vst [vmem:[%s1007_s3 + $0x68] sm:$0xff] %v470_v63  ;;  %574 = vst [vmem:[%s1007_s3 + $0xe8] sm:$0xff] %v534_v20 }

// kernel: generator_b_forward.8
= control target key start
LH: loop header
LB: loop body
LE: loop exit
PB: predicated region body
PF: predicated region fallthrough
CT: control target
= control target key end

     0   :  { %v22_v0 = vlaneseq  ;;  %v299_v26 = vmov 0   ;;  %s496_s0 = inlined_call_operand.vmem [shape: f32[64,128], index: 0, kind: input, shape index: {}]   ;;  %s497_s1 = inlined_call_operand.vmem [shape: f32[64,1], index: 1, kind: input, shape index: {}]   ;;  %s498_s2 = inlined_call_operand.vmem [shape: f32[64,1], index: 2, kind: input, shape index: {}]   ;;  %s499_s3 = inlined_call_operand.vmem [shape: f32[64,128], index: 3, kind: output, shape index: {}]  }
   0x1   :  { %v323_v1 = vld [vmem:[%s496_s0 + $0x10] sm:$0xff]  ;;  %v328_v3 = vld [vmem:[%s496_s0] sm:$0xff]  ;;  %v333_v4 = vld [vmem:[%s496_s0 + $0x18] sm:$0xff]  ;;  %282 = vset.pattern.permute.xlu1 %v299_v26  ;;  %281 = vset.pattern.permute.xlu0 %v299_v26 }
   0x2   :  { %v23_v2 = vand.u32 127, %v22_v0  ;;  %v338_v5 = vld [vmem:[%s496_s0 + $0x8] sm:$0xff]  ;;  %v356_v11 = vld [vmem:[%s496_s0 + $0x20] sm:$0xff]  ;;  %v365_v14 = vld [vmem:[%s496_s0 + $0x38] sm:$0xff] }
   0x3   :  { %v351_v10 = vld [vmem:[%s496_s0 + $0x28] sm:$0xff]  ;;  %v370_v15 = vld [vmem:[%s496_s0 + $0x30] sm:$0xff] }
   0x4   :  { %vm24_vm0 = vcmp.lt.s32.totalorder %v23_v2, 8 }
   0x5   :  { %v29_v6 = vsel %vm24_vm0, %v323_v1, 0.0  ;;  %v27_v7 = vsel %vm24_vm0, %v328_v3, 0.0  ;;  %v30_v8 = vsel %vm24_vm0, %v333_v4, 0.0  ;;  %v28_v9 = vsel %vm24_vm0, %v338_v5, 0.0 }
   0x6   :  { %39 = vadd.xlane.f32.xlu1 %v29_v6  ;;  %35 = vadd.xlane.f32.xlu0 %v27_v7  ;;  %v32_v12 = vsel %vm24_vm0, %v351_v10, 0.0  ;;  %v31_v13 = vsel %vm24_vm0, %v356_v11, 0.0  ;;  %v34_v16 = vsel %vm24_vm0, %v365_v14, 0.0  ;;  %v33_v17 = vsel %vm24_vm0, %v370_v15, 0.0 }
   0x7   :  { %v61_v18 = vmul.f32 %v28_v9, %v28_v9  ;;  %v60_v19 = vmul.f32 %v27_v7, %v27_v7  ;;  %v63_v20 = vmul.f32 %v30_v8, %v30_v8  ;;  %v62_v21 = vmul.f32 %v29_v6, %v29_v6 }
   0x8   :  { %v65_v22 = vmul.f32 %v32_v12, %v32_v12  ;;  %v64_v23 = vmul.f32 %v31_v13, %v31_v13  ;;  %v67_v24 = vmul.f32 %v34_v16, %v34_v16  ;;  %v66_v25 = vmul.f32 %v33_v17, %v33_v17 }
   0xa   :  { %41 = vadd.xlane.f32.xlu1 %v30_v8  ;;  %37 = vadd.xlane.f32.xlu0 %v28_v9 }
   0xe   :  { %45 = vadd.xlane.f32.xlu1 %v32_v12  ;;  %43 = vadd.xlane.f32.xlu0 %v31_v13 }
  0x12   :  { %49 = vadd.xlane.f32.xlu1 %v34_v16  ;;  %47 = vadd.xlane.f32.xlu0 %v33_v17 }
  0x16   :  { %70 = vadd.xlane.f32.xlu1 %v61_v18  ;;  %68 = vadd.xlane.f32.xlu0 %v60_v19 }
  0x1a   :  { %74 = vadd.xlane.f32.xlu1 %v63_v20  ;;  %72 = vadd.xlane.f32.xlu0 %v62_v21 }
  0x1e   :  { %78 = vadd.xlane.f32.xlu1 %v65_v22  ;;  %76 = vadd.xlane.f32.xlu0 %v64_v23 }
  0x22   :  { %82 = vadd.xlane.f32.xlu1 %v67_v24  ;;  %80 = vadd.xlane.f32.xlu0 %v66_v25 }
  0x8f   :  { %v40_v27 = vpop.xlane.xlu1 %39  ;;  %v36_v28 = vpop.xlane.xlu0 %35 }
  0x90   :  { %v376_v35 = vmul.f32 0.125, %v36_v28  ;;  %v380_v37 = vmul.f32 0.125, %v40_v27 }
  0x92   :  { %v92_v41 = vmul.f32 %v376_v35, %v376_v35  ;;  %v94_v47 = vmul.f32 %v380_v37, %v380_v37 }
  0x93   :  { %v42_v29 = vpop.xlane.xlu1 %41  ;;  %v38_v30 = vpop.xlane.xlu0 %37 }
  0x94   :  { %v378_v36 = vmul.f32 0.125, %v38_v30  ;;  %v382_v38 = vmul.f32 0.125, %v42_v29 }
  0x96   :  { %v93_v42 = vmul.f32 %v378_v36, %v378_v36  ;;  %v95_v48 = vmul.f32 %v382_v38, %v382_v38 }
  0x97   :  { %v46_v31 = vpop.xlane.xlu1 %45  ;;  %v44_v32 = vpop.xlane.xlu0 %43 }
  0x98   :  { %v392_v49 = vmul.f32 0.125, %v46_v31  ;;  %v394_v56 = vmul.f32 0.125, %v44_v32 }
  0x9a   :  { %v97_v61 = vmul.f32 %v392_v49, %v392_v49  ;;  %v96_v8 = vmul.f32 %v394_v56, %v394_v56 }
  0x9b   :  { %v50_v33 = vpop.xlane.xlu1 %49  ;;  %v48_v34 = vpop.xlane.xlu0 %47 }
  0x9c   :  { %v398_v62 = vmul.f32 0.125, %v50_v33  ;;  %v402_v9 = vmul.f32 0.125, %v48_v34  ;;  %v117_v34 = vld [vmem:[%s497_s1 + $0x8] sm:$0xff] }
  0x9e   :  { %v99_v18 = vmul.f32 %v398_v62, %v398_v62  ;;  %v98_v25 = vmul.f32 %v402_v9, %v402_v9 }
  0x9f   :  { %v71_v39 = vpop.xlane.xlu1 %70  ;;  %v69_v40 = vpop.xlane.xlu0 %68 }
  0xa0   :  { %v85_v43 = vmul.f32 0.125, %v71_v39  ;;  %v84_v44 = vmul.f32 0.125, %v69_v40  ;;  %v116_v39 = vld [vmem:[%s497_s1] sm:$0xff] }
  0xa2   :  { %v101_v45 = vsub.f32 %v85_v43, %v93_v42  ;;  %v100_v46 = vsub.f32 %v84_v44, %v92_v41 }
  0xa3   :  { %v75_v50 = vpop.xlane.xlu1 %74  ;;  %v73_v51 = vpop.xlane.xlu0 %72 }
  0xa4   :  { %v109_v52 = vmax.f32 %v101_v45, 0.0  ;;  %v108_v53 = vmax.f32 %v100_v46, 0.0  ;;  %v87_v54 = vmul.f32 0.125, %v75_v50  ;;  %v86_v55 = vmul.f32 0.125, %v73_v51  ;;  %v149_v45 = vld [vmem:[%s498_s2 + $0x8] sm:$0xff]  ;;  %v119_v46 = vld [vmem:[%s497_s1 + $0x18] sm:$0xff] }
  0xa6   :  { %v125_v57 = vadd.f32 1e-05, %v109_v52  ;;  %v124_v58 = vadd.f32 1e-05, %v108_v53  ;;  %v103_v59 = vsub.f32 %v87_v54, %v95_v48  ;;  %v102_v60 = vsub.f32 %v86_v55, %v94_v47  ;;  %v118_v48 = vld [vmem:[%s497_s1 + $0x10] sm:$0xff]  ;;  %v151_v55 = vld [vmem:[%s498_s2 + $0x18] sm:$0xff] }
  0xa7   :  { %v79_v63 = vpop.xlane.xlu1 %78  ;;  %v77_v0 = vpop.xlane.xlu0 %76 }
  0xa8   :  { %283 = vrsqrt.f32 %v125_v57  ;;  %v111_v2 = vmax.f32 %v103_v59, 0.0  ;;  %v110_v6 = vmax.f32 %v102_v60, 0.0  ;;  %v89_v7 = vmul.f32 0.125, %v79_v63  ;;  %v121_v57 = vld [vmem:[%s497_s1 + $0x28] sm:$0xff]  ;;  %v123_v63 = vld [vmem:[%s497_s1 + $0x38] sm:$0xff] }
  0xa9   :  { %285 = vrsqrt.f32 %v124_v58  ;;  %v88_v12 = vmul.f32 0.125, %v77_v0 }
  0xaa   :  { %v127_v13 = vadd.f32 1e-05, %v111_v2  ;;  %v126_v16 = vadd.f32 1e-05, %v110_v6  ;;  %v105_v17 = vsub.f32 %v89_v7, %v97_v61  ;;  %v153_v61 = vld [vmem:[%s498_s2 + $0x28] sm:$0xff] }
  0xab   :  { %v104_v19 = vsub.f32 %v88_v12, %v96_v8  ;;  %v83_v20 = vpop.xlane.xlu1 %82  ;;  %v81_v21 = vpop.xlane.xlu0 %80 }
  0xac   :  { %287 = vrsqrt.f32 %v127_v13  ;;  %v113_v22 = vmax.f32 %v105_v17, 0.0  ;;  %v91_v23 = vmul.f32 0.125, %v83_v20  ;;  %v90_v24 = vmul.f32 0.125, %v81_v21  ;;  %v155_v13 = vld [vmem:[%s498_s2 + $0x38] sm:$0xff]  ;;  %v148_v21 = vld [vmem:[%s498_s2] sm:$0xff] }
  0xad   :  { %289 = vrsqrt.f32 %v126_v16  ;;  %v112_v26 = vmax.f32 %v104_v19, 0.0 }
  0xae   :  { %v129_v27 = vadd.f32 1e-05, %v113_v22  ;;  %v107_v28 = vsub.f32 %v91_v23, %v99_v18  ;;  %v106_v30 = vsub.f32 %v90_v24, %v98_v25  ;;  %v122_v18 = vld [vmem:[%s497_s1 + $0x30] sm:$0xff] }
  0xaf   :  { %v128_v29 = vadd.f32 1e-05, %v112_v26  ;;  %v150_v23 = vld [vmem:[%s498_s2 + $0x10] sm:$0xff] }
  0xb0   :  { %291 = vrsqrt.f32 %v129_v27  ;;  %v115_v31 = vmax.f32 %v107_v28, 0.0  ;;  %v114_v33 = vmax.f32 %v106_v30, 0.0 }
  0xb1   :  { %293 = vrsqrt.f32 %v128_v29 }
  0xb2   :  { %v131_v32 = vadd.f32 1e-05, %v115_v31  ;;  %v130_v43 = vadd.f32 1e-05, %v114_v33 }
  0xb4   :  { %295 = vrsqrt.f32 %v131_v32 }
  0xb5   :  { %v284_v40 = vpop.eup %283  ;;  %297 = vrsqrt.f32 %v130_v43 }
  0xb6   :  { %v286_v41 = vpop.eup %285  ;;  %v141_v42 = vmul.f32 %v284_v40, %v117_v34 }
  0xb7   :  { %v140_v44 = vmul.f32 %v286_v41, %v116_v39 }
  0xb8   :  { %179 = vperm.xlu1 %282, %v141_v42   ;;  %v157_v47 = vmul.f32 %v141_v42, %v378_v36 }
  0xb9   :  { %v288_v50 = vpop.eup %287  ;;  %174 = vperm.xlu0 %281, %v140_v44   ;;  %v156_v20 = vmul.f32 %v140_v44, %v376_v35  ;;  %v152_v35 = vld [vmem:[%s498_s2 + $0x20] sm:$0xff] }
  0xba   :  { %v290_v51 = vpop.eup %289  ;;  %v165_v52 = vsub.f32 %v149_v45, %v157_v47  ;;  %v143_v53 = vmul.f32 %v288_v50, %v119_v46 }
  0xbb   :  { %v142_v54 = vmul.f32 %v290_v51, %v118_v48 }
  0xbc   :  { %v159_v36 = vmul.f32 %v143_v53, %v382_v38  ;;  %v120_v38 = vld [vmem:[%s497_s1 + $0x20] sm:$0xff] }
  0xbd   :  { %v292_v58 = vpop.eup %291  ;;  %227 = vperm.xlu0 %281, %v165_v52   ;;  %184 = vperm.xlu1 %282, %v142_v54   ;;  %v158_v22 = vmul.f32 %v142_v54, %v380_v37  ;;  %v154_v37 = vld [vmem:[%s498_s2 + $0x30] sm:$0xff] }
  0xbe   :  { %v167_v59 = vsub.f32 %v151_v55, %v159_v36  ;;  %v145_v60 = vmul.f32 %v292_v58, %v121_v57  ;;  %v294_v0 = vpop.eup %293 }
  0xbf   :  { %v144_v12 = vmul.f32 %v294_v0, %v120_v38  ;;  %v166_v24 = vsub.f32 %v150_v23, %v158_v22 }
  0xc0   :  { %v161_v2 = vmul.f32 %v145_v60, %v392_v49 }
  0xc1   :  { %v296_v6 = vpop.eup %295  ;;  %237 = vperm.xlu0 %281, %v167_v59   ;;  %189 = vperm.xlu1 %282, %v143_v53   ;;  %v160_v25 = vmul.f32 %v144_v12, %v394_v56 }
  0xc2   :  { %v169_v7 = vsub.f32 %v153_v61, %v161_v2  ;;  %v147_v8 = vmul.f32 %v296_v6, %v123_v63  ;;  %v298_v49 = vpop.eup %297 }
  0xc3   :  { %v146_v19 = vmul.f32 %v298_v49, %v122_v18  ;;  %v168_v26 = vsub.f32 %v152_v35, %v160_v25 }
  0xc4   :  { %v163_v16 = vmul.f32 %v147_v8, %v398_v62  ;;  %v164_v62 = vsub.f32 %v148_v21, %v156_v20 }
  0xc5   :  { %247 = vperm.xlu0 %281, %v169_v7   ;;  %194 = vperm.xlu1 %282, %v144_v12   ;;  %v162_v27 = vmul.f32 %v146_v19, %v402_v9 }
  0xc6   :  { %v171_v17 = vsub.f32 %v155_v13, %v163_v16 }
  0xc7   :  { %v170_v28 = vsub.f32 %v154_v37, %v162_v27 }
  0xc9   :  { %257 = vperm.xlu0 %281, %v171_v17   ;;  %199 = vperm.xlu1 %282, %v145_v60  }
  0xcd   :  { %204 = vperm.xlu1 %282, %v146_v19  }
  0xd1   :  { %209 = vperm.xlu1 %282, %v147_v8  }
  0xd5   :  { %222 = vperm.xlu1 %282, %v164_v62  }
  0xd9   :  { %232 = vperm.xlu1 %282, %v166_v24  }
  0xdd   :  { %242 = vperm.xlu1 %282, %v168_v26  }
  0xe1   :  { %252 = vperm.xlu1 %282, %v170_v28  }
 0x133   :  { %v180_v29 = vpop.permute.xlu1 %179 }
 0x134   :  { %v175_v30 = vpop.permute.xlu0 %174  ;;  %v213_v31 = vmul.f32 %v180_v29, %v338_v5 }
 0x135   :  { %v212_v48 = vmul.f32 %v175_v30, %v328_v3 }
 0x138   :  { %v185_v56 = vpop.permute.xlu1 %184  ;;  %v228_v32 = vpop.permute.xlu0 %227 }
 0x139   :  { %v261_v33 = vadd.f32 %v228_v32, %v213_v31  ;;  %v214_v52 = vmul.f32 %v185_v56, %v323_v1 }
 0x13b   :  { %269 = vst [vmem:[%s499_s3 + $0x8] sm:$0xff] %v261_v33 }
 0x13c   :  { %v190_v34 = vpop.permute.xlu1 %189  ;;  %v238_v39 = vpop.permute.xlu0 %237 }
 0x13d   :  { %v215_v9 = vmul.f32 %v190_v34, %v333_v4 }
 0x13f   :  { %v263_v40 = vadd.f32 %v238_v39, %v215_v9 }
 0x140   :  { %v195_v41 = vpop.permute.xlu1 %194  ;;  %v248_v43 = vpop.permute.xlu0 %247 }
 0x141   :  { %271 = vst [vmem:[%s499_s3 + $0x18] sm:$0xff] %v263_v40 }
 0x144   :  { %v200_v42 = vpop.permute.xlu1 %199  ;;  %v258_v47 = vpop.permute.xlu0 %257 }
 0x145   :  { %v217_v5 = vmul.f32 %v200_v42, %v351_v10 }
 0x147   :  { %v265_v44 = vadd.f32 %v248_v43, %v217_v5 }
 0x148   :  { %v205_v45 = vpop.permute.xlu1 %204 }
 0x149   :  { %273 = vst [vmem:[%s499_s3 + $0x28] sm:$0xff] %v265_v44  ;;  %v218_v57 = vmul.f32 %v205_v45, %v370_v15 }
 0x14c   :  { %v210_v46 = vpop.permute.xlu1 %209 }
 0x14d   :  { %v219_v4 = vmul.f32 %v210_v46, %v365_v14  ;;  %v216_v14 = vmul.f32 %v195_v41, %v356_v11 }
 0x14f   :  { %v267_v50 = vadd.f32 %v258_v47, %v219_v4 }
 0x150   :  { %v223_v51 = vpop.permute.xlu1 %222 }
 0x151   :  { %275 = vst [vmem:[%s499_s3 + $0x38] sm:$0xff] %v267_v50  ;;  %v260_v10 = vadd.f32 %v223_v51, %v212_v48 }
 0x153   :  { %268 = vst [vmem:[%s499_s3] sm:$0xff] %v260_v10 }
 0x154   :  { %v233_v53 = vpop.permute.xlu1 %232 }
 0x155   :  { %v262_v54 = vadd.f32 %v233_v53, %v214_v52 }
 0x157   :  { %270 = vst [vmem:[%s499_s3 + $0x10] sm:$0xff] %v262_v54 }
 0x158   :  { %v243_v3 = vpop.permute.xlu1 %242 }
 0x159   :  { %v264_v55 = vadd.f32 %v243_v3, %v216_v14 }
 0x15b   :  { %272 = vst [vmem:[%s499_s3 + $0x20] sm:$0xff] %v264_v55 }
 0x15c   :  { %v253_v1 = vpop.permute.xlu1 %252 }
 0x15d   :  { %v266_v36 = vadd.f32 %v253_v1, %v218_v57 }
 0x15f   :  { %274 = vst [vmem:[%s499_s3 + $0x30] sm:$0xff] %v266_v36 }

// kernel: generator_b_forward.9
= control target key start
LH: loop header
LB: loop body
LE: loop exit
PB: predicated region body
PF: predicated region fallthrough
CT: control target
= control target key end

     0   :  { %s1961_s4 = inlined_call_operand.vmem [shape: bf16[256,128], index: 4, kind: input, shape index: {}]   ;;  %s1962_s5 = inlined_call_operand.vmem [shape: bf16[256,128], index: 5, kind: input, shape index: {}]   ;;  %s1963_s0 = inlined_call_operand.vmem [shape: bf16[32,256], index: 0, kind: input, shape index: {}]   ;;  %s1964_s1 = inlined_call_operand.vmem [shape: bf16[32,256], index: 1, kind: input, shape index: {}]   ;;  %s1965_s6 = inlined_call_operand.vmem [shape: bf16[256,128], index: 6, kind: input, shape index: {}]   ;;  %s1966_s7 = inlined_call_operand.vmem [shape: bf16[256,128], index: 7, kind: input, shape index: {}]   ;;  %s1967_s2 = inlined_call_operand.vmem [shape: bf16[32,256], index: 2, kind: input, shape index: {}]   ;;  %s1968_s3 = inlined_call_operand.vmem [shape: bf16[32,256], index: 3, kind: input, shape index: {}]   ;;  %s1969_s8 = inlined_call_operand.vmem [shape: f32[32,1], index: 8, kind: input, shape index: {}]   ;;  %s1970_s9 = inlined_call_operand.vmem [shape: f32[32,1], index: 9, kind: input, shape index: {}]   ;;  %s1971_s10 = inlined_call_operand.vmem [shape: f32[32,128], index: 10, kind: output, shape index: {0}]   ;;  %s1972_s11 = inlined_call_operand.vmem [shape: f32[32,128], index: 11, kind: output, shape index: {1}]   ;;  %s1973_s12 = inlined_call_operand.vmem [shape: f32[32,128], index: 12, kind: output, shape index: {2}]   ;;  %s1974_s13 = inlined_call_operand.vmem [shape: f32[32,128], index: 13, kind: output, shape index: {3}]  }
   0x1   :  { %v1373_v0 = vld [vmem:[%s1961_s4 + $0x78] sm:$0xff]   ;;  %v1377_v4 = vld [vmem:[%s1961_s4 + $0x70] sm:$0xff]   ;;  %v1381_v8 = vld [vmem:[%s1961_s4 + $0x68] sm:$0xff]  }
   0x2   :  { %v1374_v1 = vld [vmem:[%s1962_s5 + $0x78] sm:$0xff]   ;;  %1258 = vmatprep.subr.bf16.mxu0 %v1373_v0  ;;  %v1378_v5 = vld [vmem:[%s1962_s5 + $0x70] sm:$0xff]   ;;  %v1382_v9 = vld [vmem:[%s1962_s5 + $0x68] sm:$0xff]  }
   0x3   :  { %v1375_v2 = vld [vmem:[%s1961_s4 + $0x38] sm:$0xff]   ;;  %1286 = vmatprep.subr.bf16.mxu1 %v1374_v1  ;;  %v1379_v6 = vld [vmem:[%s1961_s4 + $0x30] sm:$0xff]   ;;  %v1383_v10 = vld [vmem:[%s1961_s4 + $0x28] sm:$0xff]  }
   0x4   :  { %v1376_v3 = vld [vmem:[%s1962_s5 + $0x38] sm:$0xff]   ;;  %1259 = vmatpush3.bf16.msra.mxu0 %v1375_v2  ;;  %v1380_v7 = vld [vmem:[%s1962_s5 + $0x30] sm:$0xff]   ;;  %v1384_v11 = vld [vmem:[%s1962_s5 + $0x28] sm:$0xff]  }
   0x5   :  { %1287 = vmatpush3.bf16.msra.mxu1 %v1376_v3  ;;  %1260 = vmatprep.subr.bf16.mxu0 %v1377_v4  ;;  %v1385_v12 = vld [vmem:[%s1961_s4 + $0x60] sm:$0xff]   ;;  %v1389_v16 = vld [vmem:[%s1961_s4 + $0x58] sm:$0xff]   ;;  %v1393_v20 = vld [vmem:[%s1961_s4 + $0x50] sm:$0xff]  }
   0x6   :  { %1288 = vmatprep.subr.bf16.mxu1 %v1378_v5  ;;  %v1386_v13 = vld [vmem:[%s1962_s5 + $0x60] sm:$0xff]   ;;  %v1390_v17 = vld [vmem:[%s1962_s5 + $0x58] sm:$0xff]   ;;  %v1394_v21 = vld [vmem:[%s1962_s5 + $0x50] sm:$0xff]  }
   0x7   :  { %v1387_v14 = vld [vmem:[%s1961_s4 + $0x20] sm:$0xff]   ;;  %v1391_v18 = vld [vmem:[%s1961_s4 + $0x18] sm:$0xff]   ;;  %v1395_v22 = vld [vmem:[%s1961_s4 + $0x10] sm:$0xff]  }
   0x8   :  { %1261 = vmatpush3.bf16.msra.mxu0 %v1379_v6  ;;  %v1388_v15 = vld [vmem:[%s1962_s5 + $0x20] sm:$0xff]   ;;  %v1392_v19 = vld [vmem:[%s1962_s5 + $0x18] sm:$0xff]   ;;  %v1396_v23 = vld [vmem:[%s1962_s5 + $0x10] sm:$0xff]  }
   0x9   :  { %1289 = vmatpush3.bf16.msra.mxu1 %v1380_v7  ;;  %1262 = vmatprep.subr.bf16.mxu0 %v1381_v8  ;;  %v1397_v24 = vld [vmem:[%s1961_s4 + $0x48] sm:$0xff]   ;;  %v1401_v28 = vld [vmem:[%s1961_s4 + $0x40] sm:$0xff]   ;;  %v1411_v36 = vld [vmem:[%s1965_s6 + $0x78] sm:$0xff]  }
   0xa   :  { %1290 = vmatprep.subr.bf16.mxu1 %v1382_v9  ;;  %v1398_v25 = vld [vmem:[%s1962_s5 + $0x48] sm:$0xff]   ;;  %v1402_v29 = vld [vmem:[%s1962_s5 + $0x40] sm:$0xff]   ;;  %v1412_v37 = vld [vmem:[%s1966_s7 + $0x78] sm:$0xff]  }
   0xb   :  { %v1399_v26 = vld [vmem:[%s1961_s4 + $0x8] sm:$0xff]   ;;  %v1403_v30 = vld [vmem:[%s1961_s4] sm:$0xff]   ;;  %v1413_v38 = vld [vmem:[%s1965_s6 + $0x38] sm:$0xff]  }
   0xc   :  { %1263 = vmatpush3.bf16.msra.mxu0 %v1383_v10  ;;  %v1400_v27 = vld [vmem:[%s1962_s5 + $0x8] sm:$0xff]   ;;  %v1404_v31 = vld [vmem:[%s1962_s5] sm:$0xff]   ;;  %v1414_v39 = vld [vmem:[%s1966_s7 + $0x38] sm:$0xff]  }
   0xd   :  { %1291 = vmatpush3.bf16.msra.mxu1 %v1384_v11  ;;  %1264 = vmatprep.subr.bf16.mxu0 %v1385_v12  ;;  %v1405_v32 = vld [vmem:[%s1963_s0] ss:$8 sps:$4 sm:$0xff]   ;;  %v1407_v33 = vld [vmem:[%s1963_s0 + $0x4] ss:$8 sps:$4 sm:$0xff]   ;;  %v1415_v40 = vld [vmem:[%s1965_s6 + $0x70] sm:$0xff]  }
   0xe   :  { %1292 = vmatprep.subr.bf16.mxu1 %v1386_v13  ;;  %v1408_v34 = vld [vmem:[%s1964_s1] ss:$8 sps:$4 sm:$0xff]   ;;  %v1410_v35 = vld [vmem:[%s1964_s1 + $0x4] ss:$8 sps:$4 sm:$0xff]   ;;  %224 = vmatprep.mubr.bf16.mxu0 %v1407_v33  ;;  %v1416_v41 = vld [vmem:[%s1966_s7 + $0x70] sm:$0xff]  }
   0xf   :  { %425 = vmatprep.mubr.bf16.mxu1 %v1410_v35  ;;  %v1417_v42 = vld [vmem:[%s1965_s6 + $0x30] sm:$0xff]   ;;  %v1419_v44 = vld [vmem:[%s1965_s6 + $0x68] sm:$0xff]   ;;  %v1423_v48 = vld [vmem:[%s1965_s6 + $0x60] sm:$0xff]  }
  0x10   :  { %1265 = vmatpush3.bf16.msra.mxu0 %v1387_v14  ;;  %v1418_v43 = vld [vmem:[%s1966_s7 + $0x30] sm:$0xff]   ;;  %v1420_v45 = vld [vmem:[%s1966_s7 + $0x68] sm:$0xff]   ;;  %v1424_v49 = vld [vmem:[%s1966_s7 + $0x60] sm:$0xff]  }
  0x11   :  { %1293 = vmatpush3.bf16.msra.mxu1 %v1388_v15  ;;  %1266 = vmatprep.subr.bf16.mxu0 %v1389_v16  ;;  %v1421_v46 = vld [vmem:[%s1965_s6 + $0x28] sm:$0xff]   ;;  %v1425_v50 = vld [vmem:[%s1963_s0 + $0x14] ss:$8 sps:$4 sm:$0xff]   ;;  %v1429_v52 = vld [vmem:[%s1965_s6 + $0x20] sm:$0xff]   ;;  %v844_v16 = vlaneseq }
  0x12   :  { %1294 = vmatprep.subr.bf16.mxu1 %v1390_v17  ;;  %v1422_v47 = vld [vmem:[%s1966_s7 + $0x28] sm:$0xff]   ;;  %v1427_v51 = vld [vmem:[%s1964_s1 + $0x14] ss:$8 sps:$4 sm:$0xff]   ;;  %v1430_v53 = vld [vmem:[%s1966_s7 + $0x20] sm:$0xff]  }
  0x13   :  { %v1431_v54 = vld [vmem:[%s1963_s0 + $0x10] ss:$8 sps:$4 sm:$0xff]   ;;  %v1441_v0 = vld [vmem:[%s1965_s6 + $0x48] sm:$0xff]   ;;  %v1445_v4 = vld [vmem:[%s1965_s6 + $0x40] sm:$0xff]   ;;  %v1780_v17 = vand.u32 127, %v844_v16 }
  0x14   :  { %1267 = vmatpush3.bf16.msra.mxu0 %v1391_v18  ;;  %v1432_v55 = vld [vmem:[%s1964_s1 + $0x10] ss:$8 sps:$4 sm:$0xff]   ;;  %v1442_v1 = vld [vmem:[%s1966_s7 + $0x48] sm:$0xff]   ;;  %v1446_v5 = vld [vmem:[%s1966_s7 + $0x40] sm:$0xff]  }
  0x15   :  { %1295 = vmatpush3.bf16.msra.mxu1 %v1392_v19  ;;  %1268 = vmatprep.subr.bf16.mxu0 %v1393_v20  ;;  %v1433_v56 = vld [vmem:[%s1965_s6 + $0x58] sm:$0xff]   ;;  %v1437_v60 = vld [vmem:[%s1965_s6 + $0x50] sm:$0xff]   ;;  %v1443_v2 = vld [vmem:[%s1965_s6 + $0x8] sm:$0xff]   ;;  %vm846_vm0 = vcmp.lt.s32.totalorder %v1780_v17, 8 }
  0x16   :  { %1296 = vmatprep.subr.bf16.mxu1 %v1394_v21  ;;  %v1434_v57 = vld [vmem:[%s1966_s7 + $0x58] sm:$0xff]   ;;  %v1438_v61 = vld [vmem:[%s1966_s7 + $0x50] sm:$0xff]   ;;  %v1444_v3 = vld [vmem:[%s1966_s7 + $0x8] sm:$0xff]  }
  0x17   :  { %v1435_v58 = vld [vmem:[%s1965_s6 + $0x18] sm:$0xff]   ;;  %v1439_v62 = vld [vmem:[%s1965_s6 + $0x10] sm:$0xff]   ;;  %v1447_v6 = vld [vmem:[%s1965_s6] sm:$0xff]  }
  0x18   :  { %1269 = vmatpush3.bf16.msra.mxu0 %v1395_v22  ;;  %v1436_v59 = vld [vmem:[%s1966_s7 + $0x18] sm:$0xff]   ;;  %v1440_v63 = vld [vmem:[%s1966_s7 + $0x10] sm:$0xff]   ;;  %v1448_v7 = vld [vmem:[%s1966_s7] sm:$0xff]  }
  0x19   :  { %1297 = vmatpush3.bf16.msra.mxu1 %v1396_v23  ;;  %1270 = vmatprep.subr.bf16.mxu0 %v1397_v24  ;;  %v1449_v8 = vld [vmem:[%s1967_s2] ss:$8 sps:$4 sm:$0xff]   ;;  %v1451_v9 = vld [vmem:[%s1967_s2 + $0x4] ss:$8 sps:$4 sm:$0xff]   ;;  %v1455_v12 = vld [vmem:[%s1967_s2 + $0x14] ss:$8 sps:$4 sm:$0xff]  }
  0x1a   :  { %1298 = vmatprep.subr.bf16.mxu1 %v1398_v25  ;;  %v1452_v10 = vld [vmem:[%s1968_s3] ss:$8 sps:$4 sm:$0xff]   ;;  %v1454_v11 = vld [vmem:[%s1968_s3 + $0x4] ss:$8 sps:$4 sm:$0xff]   ;;  %v1458_v13 = vld [vmem:[%s1968_s3 + $0x14] ss:$8 sps:$4 sm:$0xff]  }
  0x1b   :  { %v1457_v14 = vld [vmem:[%s1967_s2 + $0x10] ss:$8 sps:$4 sm:$0xff]  }
  0x1c   :  { %1271 = vmatpush3.bf16.msra.mxu0 %v1399_v26  ;;  %v1460_v15 = vld [vmem:[%s1968_s3 + $0x10] ss:$8 sps:$4 sm:$0xff]  }
  0x1d   :  { %1299 = vmatpush3.bf16.msra.mxu1 %v1400_v27  ;;  %1272 = vmatprep.subr.bf16.mxu0 %v1401_v28 }
  0x1e   :  { %1300 = vmatprep.subr.bf16.mxu1 %v1402_v29 }
  0x20   :  { %1273 = vmatpush3.bf16.msra.mxu0 %v1403_v30 }
  0x21   :  { %1301 = vmatpush3.bf16.msra.mxu1 %v1404_v31  ;;  %1314 = vmatprep.subr.bf16.mxu0 %v1411_v36 }
  0x22   :  { %1342 = vmatprep.subr.bf16.mxu1 %v1412_v37 }
  0x23   :  { %225 = vmatmul.mubr.bf16.vlgmr.msra.gmra.mxu0 %v1405_v32 }
  0x24   :  { %426 = vmatmul.mubr.bf16.vlgmr.msra.gmra.mxu1 %v1408_v34  ;;  %1315 = vmatpush3.bf16.msra.mxu0 %v1413_v38 }
  0x25   :  { %1343 = vmatpush3.bf16.msra.mxu1 %v1414_v39  ;;  %1316 = vmatprep.subr.bf16.mxu0 %v1415_v40 }
  0x26   :  { %1344 = vmatprep.subr.bf16.mxu1 %v1416_v41  ;;  %232 = vmatprep.mubr.bf16.mxu0 %v1425_v50 }
  0x27   :  { %433 = vmatprep.mubr.bf16.mxu1 %v1427_v51 }
  0x28   :  { %1317 = vmatpush3.bf16.msra.mxu0 %v1417_v42 }
  0x29   :  { %1345 = vmatpush3.bf16.msra.mxu1 %v1418_v43  ;;  %1318 = vmatprep.subr.bf16.mxu0 %v1419_v44 }
  0x2a   :  { %1346 = vmatprep.subr.bf16.mxu1 %v1420_v45 }
  0x2b   :  { %233 = vmatmul.mubr.bf16.gmra.mxu0 %v1431_v54 }
  0x2c   :  { %1319 = vmatpush3.bf16.msra.mxu0 %v1421_v46  ;;  %434 = vmatmul.mubr.bf16.gmra.mxu1 %v1432_v55 }
  0x2d   :  { %1347 = vmatpush3.bf16.msra.mxu1 %v1422_v47  ;;  %1320 = vmatprep.subr.bf16.mxu0 %v1423_v48 }
  0x2e   :  { %1348 = vmatprep.subr.bf16.mxu1 %v1424_v49  ;;  %626 = vmatprep.mubr.bf16.mxu0 %v1451_v9 }
  0x2f   :  { %827 = vmatprep.mubr.bf16.mxu1 %v1454_v11 }
  0x30   :  { %1321 = vmatpush3.bf16.msra.mxu0 %v1429_v52 }
  0x31   :  { %1349 = vmatpush3.bf16.msra.mxu1 %v1430_v53  ;;  %1322 = vmatprep.subr.bf16.mxu0 %v1433_v56 }
  0x32   :  { %1350 = vmatprep.subr.bf16.mxu1 %v1434_v57 }
  0x34   :  { %1323 = vmatpush3.bf16.msra.mxu0 %v1435_v58 }
  0x35   :  { %1351 = vmatpush3.bf16.msra.mxu1 %v1436_v59  ;;  %1324 = vmatprep.subr.bf16.mxu0 %v1437_v60 }
  0x36   :  { %1352 = vmatprep.subr.bf16.mxu1 %v1438_v61 }
  0x38   :  { %1325 = vmatpush3.bf16.msra.mxu0 %v1439_v62 }
  0x39   :  { %1353 = vmatpush3.bf16.msra.mxu1 %v1440_v63  ;;  %1326 = vmatprep.subr.bf16.mxu0 %v1441_v0 }
  0x3a   :  { %1354 = vmatprep.subr.bf16.mxu1 %v1442_v1 }
  0x3c   :  { %1327 = vmatpush3.bf16.msra.mxu0 %v1443_v2 }
  0x3d   :  { %1355 = vmatpush3.bf16.msra.mxu1 %v1444_v3  ;;  %1328 = vmatprep.subr.bf16.mxu0 %v1445_v4 }
  0x3e   :  { %1356 = vmatprep.subr.bf16.mxu1 %v1446_v5 }
  0x40   :  { %1329 = vmatpush3.bf16.msra.mxu0 %v1447_v6 }
  0x41   :  { %1357 = vmatpush3.bf16.msra.mxu1 %v1448_v7 }
  0x43   :  { %627 = vmatmul.mubr.bf16.vlgmr.msra.gmra.mxu0 %v1449_v8 }
  0x44   :  { %828 = vmatmul.mubr.bf16.vlgmr.msra.gmra.mxu1 %v1452_v10  ;;  %634 = vmatprep.mubr.bf16.mxu0 %v1455_v12 }
  0x45   :  { %835 = vmatprep.mubr.bf16.mxu1 %v1458_v13 }
  0x4b   :  { %635 = vmatmul.mubr.bf16.gmra.mxu0 %v1457_v14 }
  0x4c   :  { %836 = vmatmul.mubr.bf16.gmra.mxu1 %v1460_v15 }
  0xe3   :  { %v1274_v18 = vpop.f32.mrf.mxu0 }
  0xe4   :  { %v1302_v19 = vpop.f32.mrf.mxu1 }
  0xe5   :  { %v1275_v20 = vpop.f32.mrf.mxu0 }
  0xe6   :  { %v1783_v21 = vadd.f32 %v1275_v20, %v1274_v18  ;;  %v1303_v22 = vpop.f32.mrf.mxu1 }
  0xe7   :  { %v1277_v23 = vpop.f32.mrf.mxu0  ;;  %v1785_v24 = vadd.f32 %v1303_v22, %v1302_v19 }
  0xe8   :  { %v1305_v25 = vpop.f32.mrf.mxu1  ;;  %v849_v26 = vsel %vm846_vm0, %v1783_v21, 0.0 }
  0xe9   :  { %v1278_v27 = vpop.f32.mrf.mxu0  ;;  %853 = vadd.xlane.f32.xlu0 %v849_v26  ;;  %v881_v31 = vsel %vm846_vm0, %v1785_v24, 0.0  ;;  %v865_v34 = vmul.f32 %v849_v26, %v849_v26 }
  0xea   :  { %v1790_v28 = vadd.f32 %v1278_v27, %v1277_v23  ;;  %v1306_v29 = vpop.f32.mrf.mxu1  ;;  %v897_v36 = vmul.f32 %v881_v31, %v881_v31 }
  0xeb   :  { %v1792_v30 = vadd.f32 %v1306_v29, %v1305_v25  ;;  %v1280_v38 = vpop.f32.mrf.mxu0 }
  0xec   :  { %v850_v33 = vsel %vm846_vm0, %v1790_v28, 0.0  ;;  %v1308_v39 = vpop.f32.mrf.mxu1 }
  0xed   :  { %v882_v32 = vsel %vm846_vm0, %v1792_v30, 0.0  ;;  %885 = vadd.xlane.f32.xlu0 %v881_v31  ;;  %v866_v35 = vmul.f32 %v850_v33, %v850_v33  ;;  %v1281_v40 = vpop.f32.mrf.mxu0 }
  0xee   :  { %887 = vadd.xlane.f32.xlu1 %v882_v32  ;;  %v898_v37 = vmul.f32 %v882_v32, %v882_v32  ;;  %v1803_v41 = vadd.f32 %v1281_v40, %v1280_v38  ;;  %v1309_v42 = vpop.f32.mrf.mxu1 }
  0xef   :  { %v1805_v43 = vadd.f32 %v1309_v42, %v1308_v39  ;;  %v1283_v44 = vpop.f32.mrf.mxu0  ;;  %v1469_v39 = vmov 0  }
  0xf0   :  { %v1311_v45 = vpop.f32.mrf.mxu1  ;;  %v851_v46 = vsel %vm846_vm0, %v1803_v41, 0.0  ;;  %1371 = vset.pattern.permute.xlu0 %v1469_v39  ;;  %1372 = vset.pattern.permute.xlu1 %v1469_v39 }
  0xf1   :  { %869 = vadd.xlane.f32.xlu0 %v865_v34  ;;  %v1284_v47 = vpop.f32.mrf.mxu0  ;;  %v883_v50 = vsel %vm846_vm0, %v1805_v43, 0.0  ;;  %v867_v53 = vmul.f32 %v851_v46, %v851_v46 }
  0xf2   :  { %871 = vadd.xlane.f32.xlu1 %v866_v35  ;;  %v1810_v48 = vadd.f32 %v1284_v47, %v1283_v44  ;;  %v1312_v49 = vpop.f32.mrf.mxu1  ;;  %v899_v55 = vmul.f32 %v883_v50, %v883_v50 }
  0xf3   :  { %v1815_v51 = vadd.f32 %v1312_v49, %v1311_v45 }
  0xf4   :  { %v852_v52 = vsel %vm846_vm0, %v1810_v48, 0.0 }
  0xf5   :  { %901 = vadd.xlane.f32.xlu0 %v897_v36  ;;  %v884_v54 = vsel %vm846_vm0, %v1815_v51, 0.0  ;;  %v868_v56 = vmul.f32 %v852_v52, %v852_v52 }
  0xf6   :  { %903 = vadd.xlane.f32.xlu1 %v898_v37  ;;  %v900_v59 = vmul.f32 %v884_v54, %v884_v54 }
  0xf9   :  { %855 = vadd.xlane.f32.xlu0 %v850_v33 }
  0xfa   :  { %857 = vadd.xlane.f32.xlu1 %v851_v46 }
  0xfd   :  { %889 = vadd.xlane.f32.xlu0 %v883_v50 }
  0xfe   :  { %859 = vadd.xlane.f32.xlu1 %v852_v52 }
 0x101   :  { %873 = vadd.xlane.f32.xlu0 %v867_v53 }
 0x102   :  { %891 = vadd.xlane.f32.xlu1 %v884_v54 }
 0x103   :  { %v1330_v57 = vpop.f32.mrf.mxu0 }
 0x104   :  { %v1358_v58 = vpop.f32.mrf.mxu1 }
 0x105   :  { %905 = vadd.xlane.f32.xlu0 %v899_v55  ;;  %v1331_v60 = vpop.f32.mrf.mxu0 }
 0x106   :  { %875 = vadd.xlane.f32.xlu1 %v868_v56  ;;  %v1823_v61 = vadd.f32 %v1331_v60, %v1330_v57  ;;  %v1359_v62 = vpop.f32.mrf.mxu1 }
 0x107   :  { %v1333_v63 = vpop.f32.mrf.mxu0  ;;  %v1825_v0 = vadd.f32 %v1359_v62, %v1358_v58 }
 0x108   :  { %v1361_v1 = vpop.f32.mrf.mxu1  ;;  %v913_v2 = vsel %vm846_vm0, %v1823_v61, 0.0 }
 0x109   :  { %v1334_v3 = vpop.f32.mrf.mxu0  ;;  %917 = vadd.xlane.f32.xlu0 %v913_v2  ;;  %v945_v9 = vsel %vm846_vm0, %v1825_v0, 0.0  ;;  %v929_v12 = vmul.f32 %v913_v2, %v913_v2 }
 0x10a   :  { %907 = vadd.xlane.f32.xlu1 %v900_v59  ;;  %v1830_v4 = vadd.f32 %v1334_v3, %v1333_v63  ;;  %v1362_v5 = vpop.f32.mrf.mxu1  ;;  %v961_v18 = vmul.f32 %v945_v9, %v945_v9 }
 0x10b   :  { %v1336_v6 = vpop.f32.mrf.mxu0  ;;  %v1832_v7 = vadd.f32 %v1362_v5, %v1361_v1 }
 0x10c   :  { %v914_v8 = vsel %vm846_vm0, %v1830_v4, 0.0  ;;  %v1364_v11 = vpop.f32.mrf.mxu1 }
 0x10d   :  { %949 = vadd.xlane.f32.xlu0 %v945_v9  ;;  %v1337_v10 = vpop.f32.mrf.mxu0  ;;  %v946_v13 = vsel %vm846_vm0, %v1832_v7, 0.0  ;;  %v930_v16 = vmul.f32 %v914_v8, %v914_v8 }
 0x10e   :  { %919 = vadd.xlane.f32.xlu1 %v914_v8  ;;  %v1365_v15 = vpop.f32.mrf.mxu1  ;;  %v1843_v19 = vadd.f32 %v1337_v10, %v1336_v6  ;;  %v962_v23 = vmul.f32 %v946_v13, %v946_v13 }
 0x10f   :  { %v1339_v14 = vpop.f32.mrf.mxu0  ;;  %v1847_v26 = vadd.f32 %v1365_v15, %v1364_v11 }
 0x110   :  { %v1367_v22 = vpop.f32.mrf.mxu1  ;;  %v915_v27 = vsel %vm846_vm0, %v1843_v19, 0.0 }
 0x111   :  { %933 = vadd.xlane.f32.xlu0 %v929_v12  ;;  %v1340_v20 = vpop.f32.mrf.mxu0  ;;  %v947_v33 = vsel %vm846_vm0, %v1847_v26, 0.0  ;;  %v931_v34 = vmul.f32 %v915_v27, %v915_v27 }
 0x112   :  { %951 = vadd.xlane.f32.xlu1 %v946_v13  ;;  %v1845_v25 = vadd.f32 %v1340_v20, %v1339_v14  ;;  %v1368_v29 = vpop.f32.mrf.mxu1  ;;  %v963_v37 = vmul.f32 %v947_v33, %v947_v33 }
 0x113   :  { %v1852_v31 = vadd.f32 %v1368_v29, %v1367_v22 }
 0x114   :  { %v916_v32 = vsel %vm846_vm0, %v1845_v25, 0.0 }
 0x115   :  { %965 = vadd.xlane.f32.xlu0 %v961_v18  ;;  %v948_v35 = vsel %vm846_vm0, %v1852_v31, 0.0  ;;  %v932_v36 = vmul.f32 %v916_v32, %v916_v32 }
 0x116   :  { %935 = vadd.xlane.f32.xlu1 %v930_v16  ;;  %v964_v38 = vmul.f32 %v948_v35, %v948_v35 }
 0x119   :  { %921 = vadd.xlane.f32.xlu0 %v915_v27 }
 0x11a   :  { %967 = vadd.xlane.f32.xlu1 %v962_v23 }
 0x11d   :  { %953 = vadd.xlane.f32.xlu0 %v947_v33 }
 0x11e   :  { %923 = vadd.xlane.f32.xlu1 %v916_v32 }
 0x121   :  { %937 = vadd.xlane.f32.xlu0 %v931_v34 }
 0x122   :  { %955 = vadd.xlane.f32.xlu1 %v948_v35 }
 0x125   :  { %969 = vadd.xlane.f32.xlu0 %v963_v37 }
 0x126   :  { %939 = vadd.xlane.f32.xlu1 %v932_v36 }
 0x12a   :  { %971 = vadd.xlane.f32.xlu1 %v964_v38 }
 0x172   :  { %v854_v40 = vpop.xlane.xlu0 %853 }
 0x176   :  { %v886_v42 = vpop.xlane.xlu0 %885 }
 0x177   :  { %v888_v44 = vpop.xlane.xlu1 %887  ;;  %v893_v60 = vadd.f32 %v886_v42, %v854_v40 }
 0x17a   :  { %v870_v45 = vpop.xlane.xlu0 %869 }
 0x17b   :  { %v872_v46 = vpop.xlane.xlu1 %871 }
 0x17e   :  { %v902_v47 = vpop.xlane.xlu0 %901 }
 0x17f   :  { %v904_v49 = vpop.xlane.xlu1 %903  ;;  %v909_v8 = vadd.f32 %v902_v47, %v870_v45 }
 0x180   :  { %v910_v15 = vadd.f32 %v904_v49, %v872_v46 }
 0x182   :  { %v856_v17 = vpop.xlane.xlu0 %855 }
 0x183   :  { %v858_v50 = vpop.xlane.xlu1 %857  ;;  %v894_v2 = vadd.f32 %v888_v44, %v856_v17 }
 0x186   :  { %v890_v52 = vpop.xlane.xlu0 %889 }
 0x187   :  { %v860_v53 = vpop.xlane.xlu1 %859  ;;  %v895_v34 = vadd.f32 %v890_v52, %v858_v50 }
 0x18a   :  { %v874_v54 = vpop.xlane.xlu0 %873 }
 0x18b   :  { %v892_v55 = vpop.xlane.xlu1 %891 }
 0x18c   :  { %v896_v45 = vadd.f32 %v892_v55, %v860_v53 }
 0x18e   :  { %v906_v57 = vpop.xlane.xlu0 %905 }
 0x18f   :  { %v876_v56 = vpop.xlane.xlu1 %875 }
 0x192   :  { %v918_v59 = vpop.xlane.xlu0 %917 }
 0x193   :  { %v908_v58 = vpop.xlane.xlu1 %907  ;;  %v925_v1 = vadd.f32 %v918_v59, %v893_v60  ;;  %v911_v59 = vadd.f32 %v906_v57, %v874_v54  ;;  %v998_v54 = vld [vmem:[%s1969_s8] sm:$0xff] }
 0x196   :  { %v950_v63 = vpop.xlane.xlu0 %949 }
 0x197   :  { %v920_v62 = vpop.xlane.xlu1 %919  ;;  %v957_v3 = vadd.f32 %v950_v63, %v925_v1 }
 0x198   :  { %v926_v9 = vadd.f32 %v920_v62, %v894_v2 }
 0x199   :  { %v1863_v10 = vmul.f32 0.03125, %v957_v3  ;;  %v912_v3 = vadd.f32 %v908_v58, %v876_v56  ;;  %v999_v56 = vld [vmem:[%s1969_s8 + $0x8] sm:$0xff] }
 0x19a   :  { %v934_v6 = vpop.xlane.xlu0 %933 }
 0x19b   :  { %v952_v5 = vpop.xlane.xlu1 %951  ;;  %v941_v12 = vadd.f32 %v934_v6, %v909_v8  ;;  %v986_v18 = vmul.f32 %v1863_v10, %v1863_v10 }
 0x19c   :  { %v958_v11 = vadd.f32 %v952_v5, %v926_v9 }
 0x19e   :  { %v966_v14 = vpop.xlane.xlu0 %965  ;;  %v1867_v20 = vmul.f32 0.03125, %v958_v11 }
 0x19f   :  { %v936_v13 = vpop.xlane.xlu1 %935  ;;  %v973_v16 = vadd.f32 %v966_v14, %v941_v12 }
 0x1a0   :  { %v942_v22 = vadd.f32 %v936_v13, %v910_v15  ;;  %v987_v35 = vmul.f32 %v1867_v20, %v1867_v20 }
 0x1a1   :  { %v982_v23 = vmul.f32 0.03125, %v973_v16 }
 0x1a2   :  { %v922_v29 = vpop.xlane.xlu0 %921 }
 0x1a3   :  { %v968_v27 = vpop.xlane.xlu1 %967  ;;  %v990_v32 = vsub.f32 %v982_v23, %v986_v18  ;;  %v927_v44 = vadd.f32 %v922_v29, %v895_v34 }
 0x1a4   :  { %v974_v33 = vadd.f32 %v968_v27, %v942_v22 }
 0x1a5   :  { %v994_v36 = vmax.f32 %v990_v32, 0.0 }
 0x1a6   :  { %v983_v37 = vmul.f32 0.03125, %v974_v33  ;;  %v954_v39 = vpop.xlane.xlu0 %953  ;;  %v1014_v33 = vld [vmem:[%s1970_s9] sm:$0xff] }
 0x1a7   :  { %v924_v38 = vpop.xlane.xlu1 %923  ;;  %v1002_v40 = vadd.f32 1e-05, %v994_v36  ;;  %v959_v47 = vadd.f32 %v954_v39, %v927_v44 }
 0x1a8   :  { %v991_v42 = vsub.f32 %v983_v37, %v987_v35  ;;  %v928_v62 = vadd.f32 %v924_v38, %v896_v45  ;;  %v1000_v35 = vld [vmem:[%s1969_s8 + $0x10] sm:$0xff] }
 0x1a9   :  { %1461 = vrsqrt.f32 %v1002_v40  ;;  %v980_v50 = vmul.f32 0.03125, %v959_v47 }
 0x1aa   :  { %v995_v46 = vmax.f32 %v991_v42, 0.0  ;;  %v938_v17 = vpop.xlane.xlu0 %937  ;;  %v1001_v42 = vld [vmem:[%s1969_s8 + $0x18] sm:$0xff] }
 0x1ab   :  { %v956_v49 = vpop.xlane.xlu1 %955  ;;  %v943_v63 = vadd.f32 %v938_v17, %v911_v59  ;;  %v988_v6 = vmul.f32 %v980_v50, %v980_v50 }
 0x1ac   :  { %v1003_v60 = vadd.f32 1e-05, %v995_v46  ;;  %v960_v52 = vadd.f32 %v956_v49, %v928_v62  ;;  %v1016_v46 = vld [vmem:[%s1970_s9 + $0x10] sm:$0xff]  ;;  %v1017_v49 = vld [vmem:[%s1970_s9 + $0x18] sm:$0xff] }
 0x1ae   :  { %1463 = vrsqrt.f32 %v1003_v60  ;;  %v970_v2 = vpop.xlane.xlu0 %969  ;;  %v981_v8 = vmul.f32 0.03125, %v960_v52 }
 0x1af   :  { %v940_v1 = vpop.xlane.xlu1 %939  ;;  %v975_v5 = vadd.f32 %v970_v2, %v943_v63 }
 0x1b0   :  { %v944_v9 = vadd.f32 %v940_v1, %v912_v3  ;;  %v989_v57 = vmul.f32 %v981_v8, %v981_v8 }
 0x1b1   :  { %v984_v53 = vmul.f32 0.03125, %v975_v5 }
 0x1b3   :  { %v972_v55 = vpop.xlane.xlu1 %971  ;;  %v992_v11 = vsub.f32 %v984_v53, %v988_v6 }
 0x1b4   :  { %v976_v12 = vadd.f32 %v972_v55, %v944_v9 }
 0x1b5   :  { %v996_v13 = vmax.f32 %v992_v11, 0.0 }
 0x1b6   :  { %v985_v14 = vmul.f32 0.03125, %v976_v12  ;;  %v1462_v15 = vpop.eup %1461 }
 0x1b7   :  { %v1004_v16 = vadd.f32 1e-05, %v996_v13  ;;  %v1010_v22 = vmul.f32 %v1462_v15, %v998_v54 }
 0x1b8   :  { %v993_v18 = vsub.f32 %v985_v14, %v989_v57 }
 0x1b9   :  { %1465 = vrsqrt.f32 %v1004_v16  ;;  %1028 = vperm.xlu0 %1371, %v1010_v22   ;;  %v1018_v32 = vmul.f32 %v1010_v22, %v1863_v10  ;;  %v1015_v10 = vld [vmem:[%s1970_s9 + $0x8] sm:$0xff] }
 0x1ba   :  { %v997_v58 = vmax.f32 %v993_v18, 0.0 }
 0x1bb   :  { %v1464_v23 = vpop.eup %1463  ;;  %v1022_v34 = vsub.f32 %v1014_v33, %v1018_v32 }
 0x1bc   :  { %v1005_v27 = vadd.f32 1e-05, %v997_v58  ;;  %v1011_v29 = vmul.f32 %v1464_v23, %v999_v56 }
 0x1be   :  { %1033 = vperm.xlu1 %1372, %v1011_v29   ;;  %1467 = vrsqrt.f32 %v1005_v27  ;;  %v1019_v38 = vmul.f32 %v1011_v29, %v1867_v20 }
 0x1c0   :  { %v1023_v39 = vsub.f32 %v1015_v10, %v1019_v38 }
 0x1c2   :  { %1052 = vperm.xlu1 %1372, %v1022_v34  }
 0x1c6   :  { %v1466_v36 = vpop.eup %1465 }
 0x1c7   :  { %v1012_v37 = vmul.f32 %v1466_v36, %v1000_v35 }
 0x1c9   :  { %1038 = vperm.xlu1 %1372, %v1012_v37   ;;  %v1020_v45 = vmul.f32 %v1012_v37, %v980_v50 }
 0x1cb   :  { %v1468_v40 = vpop.eup %1467  ;;  %v1024_v20 = vsub.f32 %v1016_v46, %v1020_v45 }
 0x1cc   :  { %v1013_v44 = vmul.f32 %v1468_v40, %v1001_v42 }
 0x1cd   :  { %1057 = vperm.xlu1 %1372, %v1023_v39  }
 0x1ce   :  { %v1021_v47 = vmul.f32 %v1013_v44, %v981_v8 }
 0x1d0   :  { %v1025_v17 = vsub.f32 %v1017_v49, %v1021_v47 }
 0x1d1   :  { %1043 = vperm.xlu1 %1372, %v1013_v44  }
 0x1d5   :  { %1062 = vperm.xlu1 %1372, %v1024_v20  }
 0x1d9   :  { %1067 = vperm.xlu1 %1372, %v1025_v17  }
 0x234   :  { %v1029_v59 = vpop.permute.xlu0 %1028 }
 0x235   :  { %v1046_v62 = vmul.f32 %v1783_v21, %v1029_v59  ;;  %v1090_v50 = vmul.f32 %v1785_v24, %v1029_v59  ;;  %v1114_v52 = vmul.f32 %v1823_v61, %v1029_v59  ;;  %v1138_v63 = vmul.f32 %v1825_v0, %v1029_v59 }
 0x239   :  { %v1034_v60 = vpop.permute.xlu1 %1033 }
 0x23a   :  { %v1047_v12 = vmul.f32 %v1790_v28, %v1034_v60  ;;  %v1091_v54 = vmul.f32 %v1792_v30, %v1034_v60  ;;  %v1115_v57 = vmul.f32 %v1830_v4, %v1034_v60  ;;  %v1139_v13 = vmul.f32 %v1832_v7, %v1034_v60 }
 0x23d   :  { %v1053_v1 = vpop.permute.xlu1 %1052 }
 0x23e   :  { %v1070_v2 = vadd.f32 %v1053_v1, %v1046_v62  ;;  %v1094_v3 = vadd.f32 %v1090_v50, %v1053_v1  ;;  %v1118_v5 = vadd.f32 %v1114_v52, %v1053_v1  ;;  %v1142_v6 = vadd.f32 %v1138_v63, %v1053_v1 }
 0x240   :  { %vm1074_vm1 = vcmp.ge.f32.partialorder %v1070_v2, 0.0  ;;  %v1078_v8 = vmul.f32 0.2, %v1070_v2  ;;  %vm1098_vm2 = vcmp.ge.f32.partialorder %v1094_v3, 0.0  ;;  %v1102_v9 = vmul.f32 0.2, %v1094_v3 }
 0x241   :  { %vm1122_vm3 = vcmp.ge.f32.partialorder %v1118_v5, 0.0  ;;  %v1126_v53 = vmul.f32 0.2, %v1118_v5  ;;  %vm1146_vm4 = vcmp.ge.f32.partialorder %v1142_v6, 0.0  ;;  %v1150_v55 = vmul.f32 0.2, %v1142_v6 }
 0x242   :  { %v1082_v21 = vsel %vm1074_vm1, %v1070_v2, %v1078_v8  ;;  %v1106_v11 = vsel %vm1098_vm2, %v1094_v3, %v1102_v9 }
 0x243   :  { %1086 = vst [vmem:[%s1971_s10] sm:$0xff] %v1082_v21  ;;  %1110 = vst [vmem:[%s1972_s11] sm:$0xff] %v1106_v11  ;;  %v1130_v24 = vsel %vm1122_vm3, %v1118_v5, %v1126_v53  ;;  %v1154_v61 = vsel %vm1146_vm4, %v1142_v6, %v1150_v55 }
 0x244   :  { %1134 = vst [vmem:[%s1973_s12] sm:$0xff] %v1130_v24  ;;  %1158 = vst [vmem:[%s1974_s13] sm:$0xff] %v1154_v61  ;;  %v1039_v0 = vpop.permute.xlu1 %1038 }
 0x245   :  { %v1048_v32 = vmul.f32 %v1803_v41, %v1039_v0  ;;  %v1092_v33 = vmul.f32 %v1805_v43, %v1039_v0  ;;  %v1116_v34 = vmul.f32 %v1843_v19, %v1039_v0  ;;  %v1140_v35 = vmul.f32 %v1847_v26, %v1039_v0 }
 0x248   :  { %v1058_v14 = vpop.permute.xlu1 %1057 }
 0x249   :  { %v1071_v15 = vadd.f32 %v1058_v14, %v1047_v12  ;;  %v1095_v16 = vadd.f32 %v1091_v54, %v1058_v14  ;;  %v1119_v18 = vadd.f32 %v1115_v57, %v1058_v14  ;;  %v1143_v22 = vadd.f32 %v1139_v13, %v1058_v14 }
 0x24b   :  { %vm1075_vm5 = vcmp.ge.f32.partialorder %v1071_v15, 0.0  ;;  %v1079_v56 = vmul.f32 0.2, %v1071_v15  ;;  %vm1099_vm6 = vcmp.ge.f32.partialorder %v1095_v16, 0.0  ;;  %v1103_v58 = vmul.f32 0.2, %v1095_v16 }
 0x24c   :  { %vm1123_vm7 = vcmp.ge.f32.partialorder %v1119_v18, 0.0  ;;  %v1127_v23 = vmul.f32 0.2, %v1119_v18  ;;  %vm1147_vm8 = vcmp.ge.f32.partialorder %v1143_v22, 0.0  ;;  %v1151_v27 = vmul.f32 0.2, %v1143_v22  ;;  %v1044_v28 = vpop.permute.xlu1 %1043 }
 0x24d   :  { %v1083_v29 = vsel %vm1075_vm5, %v1071_v15, %v1079_v56  ;;  %v1107_v30 = vsel %vm1099_vm6, %v1095_v16, %v1103_v58  ;;  %v1049_v41 = vmul.f32 %v1810_v48, %v1044_v28  ;;  %v1093_v43 = vmul.f32 %v1815_v51, %v1044_v28 }
 0x24e   :  { %1087 = vst [vmem:[%s1971_s10 + $0x8] sm:$0xff] %v1083_v29  ;;  %1111 = vst [vmem:[%s1972_s11 + $0x8] sm:$0xff] %v1107_v30  ;;  %v1131_v4 = vsel %vm1123_vm7, %v1119_v18, %v1127_v23  ;;  %v1155_v7 = vsel %vm1147_vm8, %v1143_v22, %v1151_v27  ;;  %v1117_v19 = vmul.f32 %v1845_v25, %v1044_v28 }
 0x24f   :  { %1135 = vst [vmem:[%s1973_s12 + $0x8] sm:$0xff] %v1131_v4  ;;  %1159 = vst [vmem:[%s1974_s13 + $0x8] sm:$0xff] %v1155_v7  ;;  %v1141_v26 = vmul.f32 %v1852_v31, %v1044_v28 }
 0x250   :  { %v1063_v36 = vpop.permute.xlu1 %1062 }
 0x251   :  { %v1072_v37 = vadd.f32 %v1063_v36, %v1048_v32  ;;  %v1096_v38 = vadd.f32 %v1092_v33, %v1063_v36  ;;  %v1120_v10 = vadd.f32 %v1116_v34, %v1063_v36  ;;  %v1144_v39 = vadd.f32 %v1140_v35, %v1063_v36 }
 0x253   :  { %vm1076_vm9 = vcmp.ge.f32.partialorder %v1072_v37, 0.0  ;;  %v1080_v40 = vmul.f32 0.2, %v1072_v37  ;;  %vm1100_vm10 = vcmp.ge.f32.partialorder %v1096_v38, 0.0  ;;  %v1104_v42 = vmul.f32 0.2, %v1096_v38 }
 0x254   :  { %vm1124_vm11 = vcmp.ge.f32.partialorder %v1120_v10, 0.0  ;;  %v1128_v44 = vmul.f32 0.2, %v1120_v10  ;;  %vm1148_vm12 = vcmp.ge.f32.partialorder %v1144_v39, 0.0  ;;  %v1152_v45 = vmul.f32 0.2, %v1144_v39  ;;  %v1068_v46 = vpop.permute.xlu1 %1067 }
 0x255   :  { %v1084_v20 = vsel %vm1076_vm9, %v1072_v37, %v1080_v40  ;;  %v1108_v47 = vsel %vm1100_vm10, %v1096_v38, %v1104_v42  ;;  %v1073_v49 = vadd.f32 %v1068_v46, %v1049_v41  ;;  %v1097_v17 = vadd.f32 %v1093_v43, %v1068_v46 }
 0x256   :  { %1088 = vst [vmem:[%s1971_s10 + $0x10] sm:$0xff] %v1084_v20  ;;  %1112 = vst [vmem:[%s1972_s11 + $0x10] sm:$0xff] %v1108_v47  ;;  %v1132_v48 = vsel %vm1124_vm11, %v1120_v10, %v1128_v44  ;;  %v1156_v51 = vsel %vm1148_vm12, %v1144_v39, %v1152_v45  ;;  %v1121_v25 = vadd.f32 %v1117_v19, %v1068_v46 }
 0x257   :  { %v1145_v31 = vadd.f32 %v1141_v26, %v1068_v46  ;;  %1136 = vst [vmem:[%s1973_s12 + $0x10] sm:$0xff] %v1132_v48  ;;  %1160 = vst [vmem:[%s1974_s13 + $0x10] sm:$0xff] %v1156_v51  ;;  %vm1077_vm13 = vcmp.ge.f32.partialorder %v1073_v49, 0.0  ;;  %v1081_v59 = vmul.f32 0.2, %v1073_v49  ;;  %vm1101_vm14 = vcmp.ge.f32.partialorder %v1097_v17, 0.0 }
 0x258   :  { %v1105_v60 = vmul.f32 0.2, %v1097_v17  ;;  %vm1125_vm15 = vcmp.ge.f32.partialorder %v1121_v25, 0.0  ;;  %v1129_v62 = vmul.f32 0.2, %v1121_v25 }
 0x259   :  { %vm1149_vm0 = vcmp.ge.f32.partialorder %v1145_v31, 0.0  ;;  %v1153_v50 = vmul.f32 0.2, %v1145_v31  ;;  %v1085_v52 = vsel %vm1077_vm13, %v1073_v49, %v1081_v59 }
 0x25a   :  { %v1109_v63 = vsel %vm1101_vm14, %v1097_v17, %v1105_v60  ;;  %1089 = vst [vmem:[%s1971_s10 + $0x18] sm:$0xff] %v1085_v52  ;;  %v1133_v1 = vsel %vm1125_vm15, %v1121_v25, %v1129_v62 }
 0x25b   :  { %1113 = vst [vmem:[%s1972_s11 + $0x18] sm:$0xff] %v1109_v63  ;;  %v1157_v2 = vsel %vm1149_vm0, %v1145_v31, %v1153_v50  ;;  %1137 = vst [vmem:[%s1973_s12 + $0x18] sm:$0xff] %v1133_v1 }
 0x25c   :  { %1161 = vst [vmem:[%s1974_s13 + $0x18] sm:$0xff] %v1157_v2 }

// kernel: generator_b_forward.10
= control target key start
LH: loop header
LB: loop body
LE: loop exit
PB: predicated region body
PF: predicated region fallthrough
CT: control target
= control target key end

     0   :  { %v867_v0 = vmov 0.0   ;;  %vm868_vm0 = vmmov 0   ;;  %v492_v37 = vlaneseq  ;;  %s1164_s4 = inlined_call_operand.vmem [shape: bf16[128,128], index: 4, kind: input, shape index: {}]   ;;  %s1165_s5 = inlined_call_operand.vmem [shape: bf16[128,128], index: 5, kind: input, shape index: {}]   ;;  %s1166_s0 = inlined_call_operand.vmem [shape: bf16[16,128], index: 0, kind: input, shape index: {}]   ;;  %s1167_s1 = inlined_call_operand.vmem [shape: bf16[16,128], index: 1, kind: input, shape index: {}]   ;;  %s1168_s6 = inlined_call_operand.vmem [shape: bf16[128,128], index: 6, kind: input, shape index: {}]   ;;  %s1169_s7 = inlined_call_operand.vmem [shape: bf16[128,128], index: 7, kind: input, shape index: {}]   ;;  %s1170_s2 = inlined_call_operand.vmem [shape: bf16[16,128], index: 2, kind: input, shape index: {}]   ;;  %s1171_s3 = inlined_call_operand.vmem [shape: bf16[16,128], index: 3, kind: input, shape index: {}]   ;;  %s1172_s8 = inlined_call_operand.vmem [shape: f32[16,1], index: 8, kind: input, shape index: {}]   ;;  %s1173_s9 = inlined_call_operand.vmem [shape: f32[16,1], index: 9, kind: input, shape index: {}]   ;;  %s1174_s10 = inlined_call_operand.vmem [shape: f32[16,128], index: 10, kind: output, shape index: {0}]   ;;  %s1175_s11 = inlined_call_operand.vmem [shape: f32[16,128], index: 11, kind: output, shape index: {1}]   ;;  %s1176_s12 = inlined_call_operand.vmem [shape: f32[16,128], index: 12, kind: output, shape index: {2}]   ;;  %s1177_s13 = inlined_call_operand.vmem [shape: f32[16,128], index: 13, kind: output, shape index: {3}]  }
   0x1   :  { %742 = vmatprep.subr.bf16.mxu0 %v867_v0  ;;  %762 = vmatprep.subr.bf16.mxu1 %v867_v0  ;;  %v827_v1 = vld [vmem:[%s1164_s4 + $0x38] sm:$0xff]   ;;  %v829_v3 = vld [vmem:[%s1164_s4 + $0x30] sm:$0xff]   ;;  %v831_v5 = vld [vmem:[%s1164_s4 + $0x28] sm:$0xff]  }
   0x2   :  { %v828_v2 = vld [vmem:[%s1165_s5 + $0x38] sm:$0xff]   ;;  %758 = vmatprep.mubr.msk.bf16.mxu0 %vm868_vm0, %v867_v0  ;;  %778 = vmatprep.mubr.msk.bf16.mxu1 %vm868_vm0, %v867_v0  ;;  %v830_v4 = vld [vmem:[%s1165_s5 + $0x30] sm:$0xff]   ;;  %v832_v6 = vld [vmem:[%s1165_s5 + $0x28] sm:$0xff]   ;;  %v493_v38 = vand.u32 127, %v492_v37 }
   0x3   :  { %743 = vmatpush3.bf16.msra.mxu0 %v827_v1  ;;  %763 = vmatpush3.bf16.msra.mxu1 %v828_v2  ;;  %v833_v7 = vld [vmem:[%s1164_s4 + $0x20] sm:$0xff]   ;;  %v835_v9 = vld [vmem:[%s1164_s4 + $0x18] sm:$0xff]   ;;  %v837_v11 = vld [vmem:[%s1164_s4 + $0x10] sm:$0xff]  }
   0x4   :  { %744 = vmatprep.subr.bf16.mxu0 %v867_v0  ;;  %764 = vmatprep.subr.bf16.mxu1 %v867_v0  ;;  %v834_v8 = vld [vmem:[%s1165_s5 + $0x20] sm:$0xff]   ;;  %v836_v10 = vld [vmem:[%s1165_s5 + $0x18] sm:$0xff]   ;;  %v838_v12 = vld [vmem:[%s1165_s5 + $0x10] sm:$0xff]   ;;  %vm494_vm1 = vcmp.lt.s32.totalorder %v493_v38, 32 }
   0x5   :  { %v839_v13 = vld [vmem:[%s1164_s4 + $0x8] sm:$0xff]   ;;  %v841_v15 = vld [vmem:[%s1164_s4] sm:$0xff]   ;;  %v845_v19 = vld [vmem:[%s1168_s6 + $0x38] sm:$0xff]  }
   0x6   :  { %v840_v14 = vld [vmem:[%s1165_s5 + $0x8] sm:$0xff]   ;;  %v842_v16 = vld [vmem:[%s1165_s5] sm:$0xff]   ;;  %v846_v20 = vld [vmem:[%s1169_s7 + $0x38] sm:$0xff]  }
   0x7   :  { %745 = vmatpush3.bf16.msra.mxu0 %v829_v3  ;;  %765 = vmatpush3.bf16.msra.mxu1 %v830_v4  ;;  %v843_v17 = vld [vmem:[%s1166_s0] sm:$0xff]   ;;  %v847_v21 = vld [vmem:[%s1168_s6 + $0x30] sm:$0xff]   ;;  %v849_v23 = vld [vmem:[%s1168_s6 + $0x28] sm:$0xff]  }
   0x8   :  { %746 = vmatprep.subr.bf16.mxu0 %v867_v0  ;;  %766 = vmatprep.subr.bf16.mxu1 %v867_v0  ;;  %v844_v18 = vld [vmem:[%s1167_s1] sm:$0xff]   ;;  %v848_v22 = vld [vmem:[%s1169_s7 + $0x30] sm:$0xff]   ;;  %v850_v24 = vld [vmem:[%s1169_s7 + $0x28] sm:$0xff]  }
   0x9   :  { %v851_v25 = vld [vmem:[%s1168_s6 + $0x20] sm:$0xff]   ;;  %v853_v27 = vld [vmem:[%s1168_s6 + $0x18] sm:$0xff]   ;;  %v855_v29 = vld [vmem:[%s1168_s6 + $0x10] sm:$0xff]  }
   0xa   :  { %v852_v26 = vld [vmem:[%s1169_s7 + $0x20] sm:$0xff]   ;;  %v854_v28 = vld [vmem:[%s1169_s7 + $0x18] sm:$0xff]   ;;  %v856_v30 = vld [vmem:[%s1169_s7 + $0x10] sm:$0xff]  }
   0xb   :  { %747 = vmatpush3.bf16.msra.mxu0 %v831_v5  ;;  %767 = vmatpush3.bf16.msra.mxu1 %v832_v6  ;;  %v857_v31 = vld [vmem:[%s1168_s6 + $0x8] sm:$0xff]   ;;  %v859_v33 = vld [vmem:[%s1168_s6] sm:$0xff]  }
   0xc   :  { %748 = vmatprep.subr.bf16.mxu0 %v867_v0  ;;  %768 = vmatprep.subr.bf16.mxu1 %v867_v0  ;;  %v858_v32 = vld [vmem:[%s1169_s7 + $0x8] sm:$0xff]   ;;  %v860_v34 = vld [vmem:[%s1169_s7] sm:$0xff]  }
   0xd   :  { %v861_v35 = vld [vmem:[%s1170_s2] sm:$0xff]  }
   0xe   :  { %v862_v36 = vld [vmem:[%s1171_s3] sm:$0xff]  }
   0xf   :  { %749 = vmatpush3.bf16.msra.mxu0 %v833_v7  ;;  %769 = vmatpush3.bf16.msra.mxu1 %v834_v8  ;;  %v869_v7 = vmov 0  }
  0x10   :  { %750 = vmatprep.subr.bf16.mxu0 %v867_v0  ;;  %770 = vmatprep.subr.bf16.mxu1 %v867_v0 }
  0x11   :  { %825 = vset.pattern.permute.xlu0 %v869_v7  ;;  %826 = vset.pattern.permute.xlu1 %v869_v7 }
  0x13   :  { %751 = vmatpush3.bf16.msra.mxu0 %v835_v9  ;;  %771 = vmatpush3.bf16.msra.mxu1 %v836_v10 }
  0x14   :  { %752 = vmatprep.subr.bf16.mxu0 %v867_v0  ;;  %772 = vmatprep.subr.bf16.mxu1 %v867_v0 }
  0x17   :  { %753 = vmatpush3.bf16.msra.mxu0 %v837_v11  ;;  %773 = vmatpush3.bf16.msra.mxu1 %v838_v12 }
  0x18   :  { %754 = vmatprep.subr.bf16.mxu0 %v867_v0  ;;  %774 = vmatprep.subr.bf16.mxu1 %v867_v0 }
  0x1b   :  { %755 = vmatpush3.bf16.msra.mxu0 %v839_v13  ;;  %775 = vmatpush3.bf16.msra.mxu1 %v840_v14 }
  0x1c   :  { %756 = vmatprep.subr.bf16.mxu0 %v867_v0  ;;  %776 = vmatprep.subr.bf16.mxu1 %v867_v0 }
  0x1f   :  { %757 = vmatpush3.bf16.msra.mxu0 %v841_v15  ;;  %777 = vmatpush3.bf16.msra.mxu1 %v842_v16 }
  0x20   :  { %782 = vmatprep.subr.bf16.mxu0 %v867_v0  ;;  %802 = vmatprep.subr.bf16.mxu1 %v867_v0 }
  0x22   :  { %759 = vmatmul.mubr.bf16.vlgmr.msra.gmra.mxu0 %v843_v17  ;;  %779 = vmatmul.mubr.bf16.vlgmr.msra.gmra.mxu1 %v844_v18 }
  0x23   :  { %783 = vmatpush3.bf16.msra.mxu0 %v845_v19  ;;  %803 = vmatpush3.bf16.msra.mxu1 %v846_v20 }
  0x24   :  { %784 = vmatprep.subr.bf16.mxu0 %v867_v0  ;;  %804 = vmatprep.subr.bf16.mxu1 %v867_v0 }
  0x25   :  { %798 = vmatprep.mubr.msk.bf16.mxu0 %vm868_vm0, %v867_v0  ;;  %818 = vmatprep.mubr.msk.bf16.mxu1 %vm868_vm0, %v867_v0 }
  0x27   :  { %785 = vmatpush3.bf16.msra.mxu0 %v847_v21  ;;  %805 = vmatpush3.bf16.msra.mxu1 %v848_v22 }
  0x28   :  { %786 = vmatprep.subr.bf16.mxu0 %v867_v0  ;;  %806 = vmatprep.subr.bf16.mxu1 %v867_v0 }
  0x2b   :  { %787 = vmatpush3.bf16.msra.mxu0 %v849_v23  ;;  %807 = vmatpush3.bf16.msra.mxu1 %v850_v24 }
  0x2c   :  { %788 = vmatprep.subr.bf16.mxu0 %v867_v0  ;;  %808 = vmatprep.subr.bf16.mxu1 %v867_v0 }
  0x2f   :  { %789 = vmatpush3.bf16.msra.mxu0 %v851_v25  ;;  %809 = vmatpush3.bf16.msra.mxu1 %v852_v26 }
  0x30   :  { %790 = vmatprep.subr.bf16.mxu0 %v867_v0  ;;  %810 = vmatprep.subr.bf16.mxu1 %v867_v0 }
  0x33   :  { %791 = vmatpush3.bf16.msra.mxu0 %v853_v27  ;;  %811 = vmatpush3.bf16.msra.mxu1 %v854_v28 }
  0x34   :  { %792 = vmatprep.subr.bf16.mxu0 %v867_v0  ;;  %812 = vmatprep.subr.bf16.mxu1 %v867_v0 }
  0x37   :  { %793 = vmatpush3.bf16.msra.mxu0 %v855_v29  ;;  %813 = vmatpush3.bf16.msra.mxu1 %v856_v30 }
  0x38   :  { %794 = vmatprep.subr.bf16.mxu0 %v867_v0  ;;  %814 = vmatprep.subr.bf16.mxu1 %v867_v0 }
  0x3b   :  { %795 = vmatpush3.bf16.msra.mxu0 %v857_v31  ;;  %815 = vmatpush3.bf16.msra.mxu1 %v858_v32 }
  0x3c   :  { %796 = vmatprep.subr.bf16.mxu0 %v867_v0  ;;  %816 = vmatprep.subr.bf16.mxu1 %v867_v0 }
  0x3f   :  { %797 = vmatpush3.bf16.msra.mxu0 %v859_v33  ;;  %817 = vmatpush3.bf16.msra.mxu1 %v860_v34 }
  0x42   :  { %799 = vmatmul.mubr.bf16.vlgmr.msra.gmra.mxu0 %v861_v35  ;;  %819 = vmatmul.mubr.bf16.vlgmr.msra.gmra.mxu1 %v862_v36 }
  0xe2   :  { %v1088_v39 = vpop.f32.mrf.mxu0  ;;  %v1090_v40 = vpop.f32.mrf.mxu1 }
  0xe3   :  { %v497_v41 = vsel %vm494_vm1, %v1088_v39, 0.0  ;;  %v513_v42 = vsel %vm494_vm1, %v1090_v40, 0.0 }
  0xe4   :  { %499 = vadd.xlane.f32.xlu0 %v497_v41  ;;  %v760_v43 = vpop.f32.mrf.mxu0  ;;  %v505_v44 = vmul.f32 %v497_v41, %v497_v41  ;;  %515 = vadd.xlane.f32.xlu1 %v513_v42  ;;  %v780_v45 = vpop.f32.mrf.mxu1  ;;  %v521_v51 = vmul.f32 %v513_v42, %v513_v42 }
  0xe6   :  { %v1096_v46 = vpop.f32.mrf.mxu0  ;;  %v1098_v47 = vpop.f32.mrf.mxu1 }
  0xe7   :  { %v498_v48 = vsel %vm494_vm1, %v1096_v46, 0.0  ;;  %v514_v49 = vsel %vm494_vm1, %v1098_v47, 0.0 }
  0xe8   :  { %507 = vadd.xlane.f32.xlu0 %v505_v44  ;;  %v761_v50 = vpop.f32.mrf.mxu0  ;;  %517 = vadd.xlane.f32.xlu1 %v514_v49  ;;  %v781_v52 = vpop.f32.mrf.mxu1  ;;  %v506_v53 = vmul.f32 %v498_v48, %v498_v48  ;;  %v522_v54 = vmul.f32 %v514_v49, %v514_v49 }
  0xe9   :  { %v572_v52 = vld [vmem:[%s1172_s8] sm:$0xff] }
  0xec   :  { %523 = vadd.xlane.f32.xlu0 %v521_v51  ;;  %509 = vadd.xlane.f32.xlu1 %v506_v53 }
  0xf0   :  { %501 = vadd.xlane.f32.xlu0 %v498_v48  ;;  %525 = vadd.xlane.f32.xlu1 %v522_v54 }
 0x102   :  { %v1104_v55 = vpop.f32.mrf.mxu0  ;;  %v1106_v56 = vpop.f32.mrf.mxu1 }
 0x103   :  { %v529_v57 = vsel %vm494_vm1, %v1104_v55, 0.0  ;;  %v545_v60 = vsel %vm494_vm1, %v1106_v56, 0.0 }
 0x104   :  { %531 = vadd.xlane.f32.xlu0 %v529_v57  ;;  %v800_v58 = vpop.f32.mrf.mxu0  ;;  %v820_v59 = vpop.f32.mrf.mxu1  ;;  %v537_v2 = vmul.f32 %v529_v57, %v529_v57  ;;  %v553_v4 = vmul.f32 %v545_v60, %v545_v60  ;;  %v573_v57 = vld [vmem:[%s1172_s8 + $0x8] sm:$0xff] }
 0x106   :  { %v1112_v61 = vpop.f32.mrf.mxu0  ;;  %v1114_v62 = vpop.f32.mrf.mxu1 }
 0x107   :  { %v530_v63 = vsel %vm494_vm1, %v1112_v61, 0.0  ;;  %v546_v3 = vsel %vm494_vm1, %v1114_v62, 0.0 }
 0x108   :  { %547 = vadd.xlane.f32.xlu0 %v545_v60  ;;  %533 = vadd.xlane.f32.xlu1 %v530_v63  ;;  %v801_v0 = vpop.f32.mrf.mxu0  ;;  %v821_v1 = vpop.f32.mrf.mxu1  ;;  %v538_v5 = vmul.f32 %v530_v63, %v530_v63  ;;  %v554_v6 = vmul.f32 %v546_v3, %v546_v3  ;;  %v580_v63 = vld [vmem:[%s1173_s9] sm:$0xff] }
 0x10c   :  { %539 = vadd.xlane.f32.xlu0 %v537_v2  ;;  %549 = vadd.xlane.f32.xlu1 %v546_v3  ;;  %v581_v2 = vld [vmem:[%s1173_s9 + $0x8] sm:$0xff] }
 0x110   :  { %555 = vadd.xlane.f32.xlu0 %v553_v4  ;;  %541 = vadd.xlane.f32.xlu1 %v538_v5 }
 0x114   :  { %557 = vadd.xlane.f32.xlu1 %v554_v6 }
 0x16d   :  { %v500_v8 = vpop.xlane.xlu0 %499  ;;  %v516_v9 = vpop.xlane.xlu1 %515 }
 0x16e   :  { %v519_v17 = vadd.f32 %v516_v9, %v500_v8 }
 0x171   :  { %v508_v10 = vpop.xlane.xlu0 %507  ;;  %v518_v11 = vpop.xlane.xlu1 %517 }
 0x175   :  { %v524_v12 = vpop.xlane.xlu0 %523  ;;  %v510_v13 = vpop.xlane.xlu1 %509 }
 0x176   :  { %v527_v25 = vadd.f32 %v524_v12, %v508_v10 }
 0x179   :  { %v502_v14 = vpop.xlane.xlu0 %501  ;;  %v526_v15 = vpop.xlane.xlu1 %525 }
 0x17a   :  { %v520_v21 = vadd.f32 %v518_v11, %v502_v14  ;;  %v528_v32 = vadd.f32 %v526_v15, %v510_v13 }
 0x18d   :  { %v532_v16 = vpop.xlane.xlu0 %531 }
 0x18e   :  { %v535_v20 = vadd.f32 %v532_v16, %v519_v17 }
 0x191   :  { %v548_v18 = vpop.xlane.xlu0 %547  ;;  %v534_v19 = vpop.xlane.xlu1 %533 }
 0x192   :  { %v551_v22 = vadd.f32 %v548_v18, %v535_v20  ;;  %v536_v26 = vadd.f32 %v534_v19, %v520_v21 }
 0x194   :  { %v562_v27 = vmul.f32 0.0078125, %v551_v22 }
 0x195   :  { %v540_v23 = vpop.xlane.xlu0 %539  ;;  %v550_v24 = vpop.xlane.xlu1 %549 }
 0x196   :  { %v543_v28 = vadd.f32 %v540_v23, %v527_v25  ;;  %v552_v29 = vadd.f32 %v550_v24, %v536_v26  ;;  %v566_v34 = vmul.f32 %v562_v27, %v562_v27 }
 0x198   :  { %v563_v35 = vmul.f32 0.0078125, %v552_v29 }
 0x199   :  { %v556_v30 = vpop.xlane.xlu0 %555  ;;  %v542_v31 = vpop.xlane.xlu1 %541 }
 0x19a   :  { %v559_v33 = vadd.f32 %v556_v30, %v543_v28  ;;  %v544_v37 = vadd.f32 %v542_v31, %v528_v32  ;;  %v567_v43 = vmul.f32 %v563_v35, %v563_v35 }
 0x19c   :  { %v564_v36 = vmul.f32 0.0078125, %v559_v33 }
 0x19d   :  { %v558_v38 = vpop.xlane.xlu1 %557 }
 0x19e   :  { %v568_v41 = vsub.f32 %v564_v36, %v566_v34  ;;  %v560_v42 = vadd.f32 %v558_v38, %v544_v37 }
 0x1a0   :  { %v570_v44 = vmax.f32 %v568_v41, 0.0  ;;  %v565_v45 = vmul.f32 0.0078125, %v560_v42 }
 0x1a2   :  { %v574_v48 = vadd.f32 1e-05, %v570_v44  ;;  %v569_v49 = vsub.f32 %v565_v45, %v567_v43 }
 0x1a4   :  { %863 = vrsqrt.f32 %v574_v48  ;;  %v571_v50 = vmax.f32 %v569_v49, 0.0 }
 0x1a6   :  { %v575_v51 = vadd.f32 1e-05, %v571_v50 }
 0x1a8   :  { %865 = vrsqrt.f32 %v575_v51 }
 0x1b1   :  { %v864_v53 = vpop.eup %863 }
 0x1b2   :  { %v578_v54 = vmul.f32 %v864_v53, %v572_v52 }
 0x1b4   :  { %588 = vperm.xlu0 %825, %v578_v54   ;;  %v582_v60 = vmul.f32 %v578_v54, %v562_v27 }
 0x1b5   :  { %v866_v58 = vpop.eup %865 }
 0x1b6   :  { %v579_v59 = vmul.f32 %v866_v58, %v573_v57  ;;  %v584_v0 = vsub.f32 %v580_v63, %v582_v60 }
 0x1b8   :  { %593 = vperm.xlu1 %826, %v579_v59   ;;  %v583_v1 = vmul.f32 %v579_v59, %v563_v35 }
 0x1ba   :  { %v585_v3 = vsub.f32 %v581_v2, %v583_v1 }
 0x1bc   :  { %600 = vperm.xlu1 %826, %v584_v0  }
 0x1c0   :  { %605 = vperm.xlu1 %826, %v585_v3  }
 0x22f   :  { %v589_v4 = vpop.permute.xlu0 %588 }
 0x230   :  { %v596_v6 = vmul.f32 %v589_v4, %v1088_v39  ;;  %v618_v7 = vmul.f32 %v589_v4, %v1090_v40  ;;  %v630_v8 = vmul.f32 %v589_v4, %v1104_v55  ;;  %v642_v9 = vmul.f32 %v589_v4, %v1106_v56 }
 0x233   :  { %v594_v5 = vpop.permute.xlu1 %593 }
 0x234   :  { %v597_v15 = vmul.f32 %v594_v5, %v1096_v46  ;;  %v619_v16 = vmul.f32 %v594_v5, %v1098_v47  ;;  %v631_v17 = vmul.f32 %v594_v5, %v1112_v61  ;;  %v643_v18 = vmul.f32 %v594_v5, %v1114_v62 }
 0x237   :  { %v601_v10 = vpop.permute.xlu1 %600 }
 0x238   :  { %v608_v11 = vadd.f32 %v601_v10, %v596_v6  ;;  %v620_v12 = vadd.f32 %v618_v7, %v601_v10  ;;  %v632_v13 = vadd.f32 %v630_v8, %v601_v10  ;;  %v644_v14 = vadd.f32 %v642_v9, %v601_v10 }
 0x23a   :  { %vm610_vm2 = vcmp.ge.f32.partialorder %v608_v11, 0.0  ;;  %v612_v39 = vmul.f32 0.2, %v608_v11  ;;  %vm622_vm3 = vcmp.ge.f32.partialorder %v620_v12, 0.0  ;;  %v624_v40 = vmul.f32 0.2, %v620_v12 }
 0x23b   :  { %vm634_vm4 = vcmp.ge.f32.partialorder %v632_v13, 0.0  ;;  %v636_v55 = vmul.f32 0.2, %v632_v13  ;;  %vm646_vm5 = vcmp.ge.f32.partialorder %v644_v14, 0.0  ;;  %v648_v56 = vmul.f32 0.2, %v644_v14  ;;  %v606_v19 = vpop.permute.xlu1 %605 }
 0x23c   :  { %v614_v20 = vsel %vm610_vm2, %v608_v11, %v612_v39  ;;  %v626_v21 = vsel %vm622_vm3, %v620_v12, %v624_v40  ;;  %v609_v22 = vadd.f32 %v606_v19, %v597_v15  ;;  %v621_v23 = vadd.f32 %v619_v16, %v606_v19 }
 0x23d   :  { %v638_v46 = vsel %vm634_vm4, %v632_v13, %v636_v55  ;;  %v650_v24 = vsel %vm646_vm5, %v644_v14, %v648_v56  ;;  %616 = vst [vmem:[%s1174_s10] sm:$0xff] %v614_v20  ;;  %628 = vst [vmem:[%s1175_s11] sm:$0xff] %v626_v21  ;;  %v633_v47 = vadd.f32 %v631_v17, %v606_v19 }
 0x23e   :  { %v645_v61 = vadd.f32 %v643_v18, %v606_v19  ;;  %640 = vst [vmem:[%s1176_s12] sm:$0xff] %v638_v46  ;;  %652 = vst [vmem:[%s1177_s13] sm:$0xff] %v650_v24  ;;  %vm611_vm6 = vcmp.ge.f32.partialorder %v609_v22, 0.0  ;;  %v613_v62 = vmul.f32 0.2, %v609_v22  ;;  %vm623_vm7 = vcmp.ge.f32.partialorder %v621_v23, 0.0 }
 0x23f   :  { %v625_v25 = vmul.f32 0.2, %v621_v23  ;;  %vm635_vm8 = vcmp.ge.f32.partialorder %v633_v47, 0.0  ;;  %v637_v26 = vmul.f32 0.2, %v633_v47 }
 0x240   :  { %vm647_vm9 = vcmp.ge.f32.partialorder %v645_v61, 0.0  ;;  %v649_v27 = vmul.f32 0.2, %v645_v61  ;;  %v615_v28 = vsel %vm611_vm6, %v609_v22, %v613_v62 }
 0x241   :  { %v627_v29 = vsel %vm623_vm7, %v621_v23, %v625_v25  ;;  %617 = vst [vmem:[%s1174_s10 + $0x8] sm:$0xff] %v615_v28  ;;  %v639_v30 = vsel %vm635_vm8, %v633_v47, %v637_v26 }
 0x242   :  { %629 = vst [vmem:[%s1175_s11 + $0x8] sm:$0xff] %v627_v29  ;;  %v651_v31 = vsel %vm647_vm9, %v645_v61, %v649_v27  ;;  %641 = vst [vmem:[%s1176_s12 + $0x8] sm:$0xff] %v639_v30 }
 0x243   :  { %653 = vst [vmem:[%s1177_s13 + $0x8] sm:$0xff] %v651_v31 }

// kernel: generator_b_forward.11
= control target key start
LH: loop header
LB: loop body
LE: loop exit
PB: predicated region body
PF: predicated region fallthrough
CT: control target
= control target key end

     0   :  { %v556_v0 = vmov 0.0   ;;  %vm557_vm0 = vmmov 0   ;;  %vm73_vm1 = vcmask 523264   ;;  %v558_v41 = vmov 0   ;;  %s727_s4 = inlined_call_operand.vmem [shape: bf16[64,128], index: 4, kind: input, shape index: {}]   ;;  %s728_s5 = inlined_call_operand.vmem [shape: bf16[64,128], index: 5, kind: input, shape index: {}]   ;;  %s729_s6 = inlined_call_operand.vmem [shape: bf16[64,128], index: 6, kind: input, shape index: {}]   ;;  %s730_s7 = inlined_call_operand.vmem [shape: bf16[64,128], index: 7, kind: input, shape index: {}]   ;;  %s731_s0 = inlined_call_operand.vmem [shape: bf16[8,64], index: 0, kind: input, shape index: {}]   ;;  %s732_s1 = inlined_call_operand.vmem [shape: bf16[8,64], index: 1, kind: input, shape index: {}]   ;;  %s733_s2 = inlined_call_operand.vmem [shape: bf16[8,64], index: 2, kind: input, shape index: {}]   ;;  %s734_s3 = inlined_call_operand.vmem [shape: bf16[8,64], index: 3, kind: input, shape index: {}]   ;;  %s735_s8 = inlined_call_operand.vmem [shape: f32[8,1], index: 8, kind: input, shape index: {}]   ;;  %s736_s9 = inlined_call_operand.vmem [shape: f32[8,1], index: 9, kind: input, shape index: {}]   ;;  %s737_s10 = inlined_call_operand.vmem [shape: f32[8,128], index: 10, kind: output, shape index: {0}]   ;;  %s738_s11 = inlined_call_operand.vmem [shape: f32[8,128], index: 11, kind: output, shape index: {1}]   ;;  %s739_s12 = inlined_call_operand.vmem [shape: f32[8,128], index: 12, kind: output, shape index: {2}]   ;;  %s740_s13 = inlined_call_operand.vmem [shape: f32[8,128], index: 13, kind: output, shape index: {3}]  }
   0x1   :  { %485 = vmatprep.subr.bf16.mxu0 %v556_v0  ;;  %497 = vmatprep.subr.bf16.mxu1 %v556_v0  ;;  %v538_v1 = vld [vmem:[%s727_s4 + $0x18] sm:$0xff]   ;;  %v540_v3 = vld [vmem:[%s727_s4 + $0x10] sm:$0xff]   ;;  %v542_v5 = vld [vmem:[%s727_s4 + $0x8] sm:$0xff]  }
   0x2   :  { %v539_v2 = vld [vmem:[%s728_s5 + $0x18] sm:$0xff]   ;;  %493 = vmatprep.mubr.msk.bf16.mxu0 %vm557_vm0, %v556_v0  ;;  %505 = vmatprep.mubr.msk.bf16.mxu1 %vm557_vm0, %v556_v0  ;;  %v541_v4 = vld [vmem:[%s728_s5 + $0x10] sm:$0xff]   ;;  %v543_v6 = vld [vmem:[%s728_s5 + $0x8] sm:$0xff]  }
   0x3   :  { %486 = vmatpush3.bf16.msra.mxu0 %v538_v1  ;;  %498 = vmatpush3.bf16.msra.mxu1 %v539_v2  ;;  %v544_v7 = vld [vmem:[%s727_s4] sm:$0xff]   ;;  %v546_v11 = vld [vmem:[%s729_s6 + $0x18] sm:$0xff]   ;;  %v548_v13 = vld [vmem:[%s729_s6 + $0x10] sm:$0xff]  }
   0x4   :  { %487 = vmatprep.subr.bf16.mxu0 %v556_v0  ;;  %499 = vmatprep.subr.bf16.mxu1 %v556_v0  ;;  %v545_v8 = vld [vmem:[%s728_s5] sm:$0xff]   ;;  %v547_v12 = vld [vmem:[%s730_s7 + $0x18] sm:$0xff]   ;;  %v549_v14 = vld [vmem:[%s730_s7 + $0x10] sm:$0xff]  }
   0x5   :  { %v40_v9 = vld [vmem:[%s731_s0] sm:$0xf]  ;;  %v550_v15 = vld [vmem:[%s729_s6 + $0x8] sm:$0xff]   ;;  %536 = vset.pattern.permute.xlu0 %v558_v41  ;;  %537 = vset.pattern.permute.xlu1 %v558_v41 }
   0x6   :  { %v117_v10 = vld [vmem:[%s732_s1] sm:$0xf]  ;;  %v551_v16 = vld [vmem:[%s730_s7 + $0x8] sm:$0xff]  }
   0x7   :  { %488 = vmatpush3.bf16.msra.mxu0 %v540_v3  ;;  %500 = vmatpush3.bf16.msra.mxu1 %v541_v4  ;;  %v552_v17 = vld [vmem:[%s729_s6] sm:$0xff]  }
   0x8   :  { %489 = vmatprep.subr.bf16.mxu0 %v556_v0  ;;  %501 = vmatprep.subr.bf16.mxu1 %v556_v0  ;;  %v553_v18 = vld [vmem:[%s730_s7] sm:$0xff]  }
   0x9   :  { %v193_v19 = vld [vmem:[%s733_s2] sm:$0xf] }
   0xa   :  { %v269_v20 = vld [vmem:[%s734_s3] sm:$0xf] }
   0xb   :  { %490 = vmatpush3.bf16.msra.mxu0 %v542_v5  ;;  %502 = vmatpush3.bf16.msra.mxu1 %v543_v6  ;;  %v388_v62 = vld [vmem:[%s735_s8] sm:$0xff] }
   0xc   :  { %491 = vmatprep.subr.bf16.mxu0 %v556_v0  ;;  %503 = vmatprep.subr.bf16.mxu1 %v556_v0  ;;  %v392_v1 = vld [vmem:[%s736_s9] sm:$0xff] }
   0xf   :  { %492 = vmatpush3.bf16.msra.mxu0 %v544_v7  ;;  %504 = vmatpush3.bf16.msra.mxu1 %v545_v8 }
  0x10   :  { %509 = vmatprep.subr.bf16.mxu0 %v556_v0  ;;  %521 = vmatprep.subr.bf16.mxu1 %v556_v0 }
  0x12   :  { %494 = vmatmul.mubr.msk.bf16.vlgmr.msra.gmra.mxu0 %vm73_vm1, %v40_v9  ;;  %506 = vmatmul.mubr.msk.bf16.vlgmr.msra.gmra.mxu1 %vm73_vm1, %v117_v10 }
  0x13   :  { %510 = vmatpush3.bf16.msra.mxu0 %v546_v11  ;;  %522 = vmatpush3.bf16.msra.mxu1 %v547_v12 }
  0x14   :  { %511 = vmatprep.subr.bf16.mxu0 %v556_v0  ;;  %523 = vmatprep.subr.bf16.mxu1 %v556_v0 }
  0x15   :  { %517 = vmatprep.mubr.msk.bf16.mxu0 %vm557_vm0, %v556_v0  ;;  %529 = vmatprep.mubr.msk.bf16.mxu1 %vm557_vm0, %v556_v0 }
  0x17   :  { %512 = vmatpush3.bf16.msra.mxu0 %v548_v13  ;;  %524 = vmatpush3.bf16.msra.mxu1 %v549_v14 }
  0x18   :  { %513 = vmatprep.subr.bf16.mxu0 %v556_v0  ;;  %525 = vmatprep.subr.bf16.mxu1 %v556_v0 }
  0x1b   :  { %514 = vmatpush3.bf16.msra.mxu0 %v550_v15  ;;  %526 = vmatpush3.bf16.msra.mxu1 %v551_v16 }
  0x1c   :  { %515 = vmatprep.subr.bf16.mxu0 %v556_v0  ;;  %527 = vmatprep.subr.bf16.mxu1 %v556_v0 }
  0x1f   :  { %516 = vmatpush3.bf16.msra.mxu0 %v552_v17  ;;  %528 = vmatpush3.bf16.msra.mxu1 %v553_v18 }
  0x22   :  { %518 = vmatmul.mubr.msk.bf16.vlgmr.msra.gmra.mxu0 %vm73_vm1, %v193_v19  ;;  %530 = vmatmul.mubr.msk.bf16.vlgmr.msra.gmra.mxu1 %vm73_vm1, %v269_v20 }
  0xd2   :  { %v697_v21 = vpop.f32.mrf.mxu0  ;;  %v699_v22 = vpop.f32.mrf.mxu1 }
  0xd3   :  { %351 = vadd.xlane.f32.xlu0 %v697_v21  ;;  %v354_v23 = vmul.f32 %v697_v21, %v697_v21  ;;  %v362_v26 = vmul.f32 %v699_v22, %v699_v22 }
  0xd4   :  { %v495_v24 = vpop.f32.mrf.mxu0  ;;  %v507_v25 = vpop.f32.mrf.mxu1 }
  0xd5   :  { %355 = vadd.xlane.f32.xlu1 %v354_v23 }
  0xd6   :  { %v114_v27 = vpop.f32.mrf.mxu0  ;;  %v190_v28 = vpop.f32.mrf.mxu1 }
  0xd7   :  { %359 = vadd.xlane.f32.xlu0 %v699_v22 }
  0xd8   :  { %v496_v29 = vpop.f32.mrf.mxu0  ;;  %v508_v30 = vpop.f32.mrf.mxu1 }
  0xd9   :  { %363 = vadd.xlane.f32.xlu1 %v362_v26 }
  0xe2   :  { %v263_v31 = vpop.f32.mrf.mxu0  ;;  %v339_v32 = vpop.f32.mrf.mxu1 }
  0xe3   :  { %367 = vadd.xlane.f32.xlu0 %v263_v31  ;;  %v370_v33 = vmul.f32 %v263_v31, %v263_v31  ;;  %v378_v36 = vmul.f32 %v339_v32, %v339_v32 }
  0xe4   :  { %v519_v34 = vpop.f32.mrf.mxu0  ;;  %v531_v35 = vpop.f32.mrf.mxu1 }
  0xe5   :  { %371 = vadd.xlane.f32.xlu1 %v370_v33 }
  0xe6   :  { %v266_v37 = vpop.f32.mrf.mxu0  ;;  %v342_v38 = vpop.f32.mrf.mxu1 }
  0xe7   :  { %375 = vadd.xlane.f32.xlu0 %v339_v32 }
  0xe8   :  { %v520_v39 = vpop.f32.mrf.mxu0  ;;  %v532_v40 = vpop.f32.mrf.mxu1 }
  0xe9   :  { %379 = vadd.xlane.f32.xlu1 %v378_v36 }
 0x15c   :  { %v352_v42 = vpop.xlane.xlu0 %351 }
 0x15e   :  { %v356_v43 = vpop.xlane.xlu1 %355 }
 0x160   :  { %v360_v44 = vpop.xlane.xlu0 %359 }
 0x161   :  { %v361_v47 = vadd.f32 %v360_v44, %v352_v42 }
 0x162   :  { %v364_v45 = vpop.xlane.xlu1 %363 }
 0x163   :  { %v365_v49 = vadd.f32 %v364_v45, %v356_v43 }
 0x16c   :  { %v368_v46 = vpop.xlane.xlu0 %367 }
 0x16d   :  { %v369_v50 = vadd.f32 %v368_v46, %v361_v47 }
 0x16e   :  { %v372_v48 = vpop.xlane.xlu1 %371 }
 0x16f   :  { %v373_v52 = vadd.f32 %v372_v48, %v365_v49 }
 0x170   :  { %v376_v51 = vpop.xlane.xlu0 %375 }
 0x171   :  { %v377_v53 = vadd.f32 %v376_v51, %v369_v50 }
 0x172   :  { %v380_v54 = vpop.xlane.xlu1 %379 }
 0x173   :  { %v383_v55 = vmul.f32 0.001953125, %v377_v53  ;;  %v381_v56 = vadd.f32 %v380_v54, %v373_v52 }
 0x175   :  { %v385_v57 = vmul.f32 %v383_v55, %v383_v55  ;;  %v384_v58 = vmul.f32 0.001953125, %v381_v56 }
 0x177   :  { %v386_v59 = vsub.f32 %v384_v58, %v385_v57 }
 0x179   :  { %v387_v60 = vmax.f32 %v386_v59, 0.0 }
 0x17b   :  { %v389_v61 = vadd.f32 1e-05, %v387_v60 }
 0x17d   :  { %554 = vrsqrt.f32 %v389_v61 }
 0x18a   :  { %v555_v63 = vpop.eup %554 }
 0x18b   :  { %v391_v0 = vmul.f32 %v555_v63, %v388_v62 }
 0x18d   :  { %397 = vperm.xlu0 %536, %v391_v0   ;;  %v393_v2 = vmul.f32 %v391_v0, %v383_v55 }
 0x18f   :  { %v394_v3 = vsub.f32 %v392_v1, %v393_v2 }
 0x191   :  { %403 = vperm.xlu1 %537, %v394_v3  }
 0x208   :  { %v398_v4 = vpop.permute.xlu0 %397 }
 0x209   :  { %v400_v5 = vmul.f32 %v398_v4, %v697_v21  ;;  %v411_v6 = vmul.f32 %v398_v4, %v699_v22  ;;  %v417_v7 = vmul.f32 %v398_v4, %v263_v31  ;;  %v423_v8 = vmul.f32 %v398_v4, %v339_v32 }
 0x20c   :  { %v404_v9 = vpop.permute.xlu1 %403 }
 0x20d   :  { %v406_v10 = vadd.f32 %v404_v9, %v400_v5  ;;  %v412_v11 = vadd.f32 %v411_v6, %v404_v9  ;;  %v418_v12 = vadd.f32 %v417_v7, %v404_v9  ;;  %v424_v13 = vadd.f32 %v423_v8, %v404_v9 }
 0x20f   :  { %vm407_vm2 = vcmp.ge.f32.partialorder %v406_v10, 0.0  ;;  %v408_v14 = vmul.f32 0.2, %v406_v10  ;;  %vm413_vm3 = vcmp.ge.f32.partialorder %v412_v11, 0.0  ;;  %v414_v15 = vmul.f32 0.2, %v412_v11 }
 0x210   :  { %vm419_vm4 = vcmp.ge.f32.partialorder %v418_v12, 0.0  ;;  %v420_v16 = vmul.f32 0.2, %v418_v12  ;;  %vm425_vm5 = vcmp.ge.f32.partialorder %v424_v13, 0.0  ;;  %v426_v17 = vmul.f32 0.2, %v424_v13 }
 0x211   :  { %v409_v18 = vsel %vm407_vm2, %v406_v10, %v408_v14  ;;  %v415_v19 = vsel %vm413_vm3, %v412_v11, %v414_v15 }
 0x212   :  { %410 = vst [vmem:[%s737_s10] sm:$0xff] %v409_v18  ;;  %416 = vst [vmem:[%s738_s11] sm:$0xff] %v415_v19  ;;  %v421_v20 = vsel %vm419_vm4, %v418_v12, %v420_v16  ;;  %v427_v21 = vsel %vm425_vm5, %v424_v13, %v426_v17 }
 0x213   :  { %422 = vst [vmem:[%s739_s12] sm:$0xff] %v421_v20  ;;  %428 = vst [vmem:[%s740_s13] sm:$0xff] %v427_v21 }

// kernel: generator_b_forward.12
= control target key start
LH: loop header
LB: loop body
LE: loop exit
PB: predicated region body
PF: predicated region fallthrough
CT: control target
= control target key end

     0   :  { %v902_v1 = vmov 0   ;;  %vm89_vm0 = vcmask 261120   ;;  %s1254_s4 = inlined_call_operand.vmem [shape: bf16[32,512], index: 4, kind: input, shape index: {}]   ;;  %s1255_s0 = inlined_call_operand.vmem [shape: bf16[8,32], index: 0, kind: input, shape index: {}]   ;;  %s1256_s5 = inlined_call_operand.vmem [shape: bf16[32,512], index: 5, kind: input, shape index: {}]   ;;  %s1257_s6 = inlined_call_operand.vmem [shape: bf16[32,512], index: 6, kind: input, shape index: {}]   ;;  %s1258_s1 = inlined_call_operand.vmem [shape: bf16[8,32], index: 1, kind: input, shape index: {}]   ;;  %s1259_s7 = inlined_call_operand.vmem [shape: bf16[32,512], index: 7, kind: input, shape index: {}]   ;;  %s1260_s2 = inlined_call_operand.vmem [shape: bf16[8,32], index: 2, kind: input, shape index: {}]   ;;  %s1261_s3 = inlined_call_operand.vmem [shape: bf16[8,32], index: 3, kind: input, shape index: {}]   ;;  %s1262_s8 = inlined_call_operand.vmem [shape: f32[8,1], index: 8, kind: input, shape index: {}]   ;;  %s1263_s9 = inlined_call_operand.vmem [shape: f32[8,1], index: 9, kind: input, shape index: {}]   ;;  %s1264_s10 = inlined_call_operand.vmem [shape: f32[8,512], index: 10, kind: output, shape index: {0}]   ;;  %s1265_s11 = inlined_call_operand.vmem [shape: f32[8,512], index: 11, kind: output, shape index: {1}]   ;;  %s1266_s12 = inlined_call_operand.vmem [shape: f32[8,512], index: 12, kind: output, shape index: {2}]   ;;  %s1267_s13 = inlined_call_operand.vmem [shape: f32[8,512], index: 13, kind: output, shape index: {3}]  }
   0x1   :  { %v852_v0 = vld [vmem:[%s1254_s4 + $0x24] ss:$16 sps:$4 sm:$0xff]   ;;  %125 = vmatprep.mubr.bf16.mxu0 %v902_v1  ;;  %166 = vmatprep.mubr.bf16.mxu1 %v902_v1  ;;  %v854_v2 = vld [vmem:[%s1254_s4 + $0x2c] ss:$16 sps:$4 sm:$0xff]   ;;  %v856_v3 = vld [vmem:[%s1254_s4 + $0x20] ss:$16 sps:$4 sm:$0xff]  }
   0x2   :  { %850 = vset.pattern.permute.xlu0 %v902_v1  ;;  %851 = vset.pattern.permute.xlu1 %v902_v1  ;;  %v857_v4 = vld [vmem:[%s1254_s4 + $0x28] ss:$16 sps:$4 sm:$0xff]   ;;  %v858_v5 = vld [vmem:[%s1254_s4 + $0x4] ss:$16 sps:$4 sm:$0xff]   ;;  %v860_v6 = vld [vmem:[%s1254_s4 + $0xc] ss:$16 sps:$4 sm:$0xff]  }
   0x3   :  { %105 = vmatprep.subr.bf16.mxu0 %v852_v0  ;;  %146 = vmatprep.subr.bf16.mxu1 %v854_v2  ;;  %v862_v7 = vld [vmem:[%s1254_s4] ss:$16 sps:$4 sm:$0xff]   ;;  %v863_v8 = vld [vmem:[%s1254_s4 + $0x8] ss:$16 sps:$4 sm:$0xff]   ;;  %v866_v11 = vld [vmem:[%s1256_s5 + $0x24] ss:$16 sps:$4 sm:$0xff]  }
   0x4   :  { %106 = vmatpush1.bf16.msra.mxu0 %v856_v3  ;;  %147 = vmatpush1.bf16.msra.mxu1 %v857_v4  ;;  %v40_v9 = vld [vmem:[%s1255_s0] sm:$0xf]  ;;  %v867_v12 = vld [vmem:[%s1256_s5 + $0x28] ss:$16 sps:$4 sm:$0xff]   ;;  %v869_v13 = vld [vmem:[%s1256_s5 + $0x2c] ss:$16 sps:$4 sm:$0xff]  }
   0x5   :  { %107 = vmatprep.subr.bf16.mxu0 %v858_v5  ;;  %148 = vmatprep.subr.bf16.mxu1 %v860_v6  ;;  %v864_v10 = vld [vmem:[%s1256_s5 + $0x20] ss:$16 sps:$4 sm:$0xff]   ;;  %v872_v14 = vld [vmem:[%s1256_s5 + $0x4] ss:$16 sps:$4 sm:$0xff]   ;;  %v875_v15 = vld [vmem:[%s1256_s5 + $0xc] ss:$16 sps:$4 sm:$0xff]  }
   0x6   :  { %v870_v16 = vld [vmem:[%s1256_s5] ss:$16 sps:$4 sm:$0xff]   ;;  %v873_v17 = vld [vmem:[%s1256_s5 + $0x8] ss:$16 sps:$4 sm:$0xff]   ;;  %v878_v18 = vld [vmem:[%s1257_s6 + $0x24] ss:$16 sps:$4 sm:$0xff]  }
   0x7   :  { %v881_v19 = vld [vmem:[%s1257_s6 + $0x2c] ss:$16 sps:$4 sm:$0xff]   ;;  %v175_v20 = vld [vmem:[%s1258_s1] sm:$0xf]  ;;  %v879_v22 = vld [vmem:[%s1257_s6 + $0x28] ss:$16 sps:$4 sm:$0xff]  }
   0x8   :  { %108 = vmatpush1.bf16.msra.mxu0 %v862_v7  ;;  %149 = vmatpush1.bf16.msra.mxu1 %v863_v8  ;;  %v876_v21 = vld [vmem:[%s1257_s6 + $0x20] ss:$16 sps:$4 sm:$0xff]   ;;  %v884_v23 = vld [vmem:[%s1257_s6 + $0x4] ss:$16 sps:$4 sm:$0xff]   ;;  %v887_v24 = vld [vmem:[%s1257_s6 + $0xc] ss:$16 sps:$4 sm:$0xff]  }
   0x9   :  { %239 = vmatprep.subr.bf16.mxu0 %v866_v11  ;;  %280 = vmatprep.subr.bf16.mxu1 %v869_v13  ;;  %v882_v25 = vld [vmem:[%s1257_s6] ss:$16 sps:$4 sm:$0xff]   ;;  %v885_v26 = vld [vmem:[%s1257_s6 + $0x8] ss:$16 sps:$4 sm:$0xff]   ;;  %v890_v27 = vld [vmem:[%s1259_s7 + $0x24] ss:$16 sps:$4 sm:$0xff]  }
   0xa   :  { %v893_v28 = vld [vmem:[%s1259_s7 + $0x2c] ss:$16 sps:$4 sm:$0xff]   ;;  %v309_v29 = vld [vmem:[%s1260_s2] sm:$0xf]  ;;  %v891_v31 = vld [vmem:[%s1259_s7 + $0x28] ss:$16 sps:$4 sm:$0xff]  }
   0xb   :  { %817 = vmatmul.mubr.msk.bf16.vlgmr.msra.gmra.mxu0 %vm89_vm0, %v40_v9  ;;  %818 = vmatmul.mubr.msk.bf16.vlgmr.msra.gmra.mxu1 %vm89_vm0, %v40_v9  ;;  %v888_v30 = vld [vmem:[%s1259_s7 + $0x20] ss:$16 sps:$4 sm:$0xff]   ;;  %v896_v32 = vld [vmem:[%s1259_s7 + $0x4] ss:$16 sps:$4 sm:$0xff]   ;;  %v899_v33 = vld [vmem:[%s1259_s7 + $0xc] ss:$16 sps:$4 sm:$0xff]  }
   0xc   :  { %240 = vmatpush1.bf16.msra.mxu0 %v864_v10  ;;  %281 = vmatpush1.bf16.msra.mxu1 %v867_v12  ;;  %v894_v34 = vld [vmem:[%s1259_s7] ss:$16 sps:$4 sm:$0xff]   ;;  %v897_v35 = vld [vmem:[%s1259_s7 + $0x8] ss:$16 sps:$4 sm:$0xff]  }
   0xd   :  { %241 = vmatprep.subr.bf16.mxu0 %v872_v14  ;;  %282 = vmatprep.subr.bf16.mxu1 %v875_v15  ;;  %v443_v36 = vld [vmem:[%s1261_s3] sm:$0xf] }
   0xe   :  { %259 = vmatprep.mubr.bf16.mxu0 %v902_v1  ;;  %300 = vmatprep.mubr.bf16.mxu1 %v902_v1 }
  0x10   :  { %242 = vmatpush1.bf16.msra.mxu0 %v870_v16  ;;  %283 = vmatpush1.bf16.msra.mxu1 %v873_v17 }
  0x11   :  { %373 = vmatprep.subr.bf16.mxu0 %v878_v18  ;;  %414 = vmatprep.subr.bf16.mxu1 %v881_v19 }
  0x13   :  { %827 = vmatmul.mubr.msk.bf16.vlgmr.msra.gmra.mxu0 %vm89_vm0, %v175_v20  ;;  %828 = vmatmul.mubr.msk.bf16.vlgmr.msra.gmra.mxu1 %vm89_vm0, %v175_v20 }
  0x14   :  { %374 = vmatpush1.bf16.msra.mxu0 %v876_v21  ;;  %415 = vmatpush1.bf16.msra.mxu1 %v879_v22 }
  0x15   :  { %375 = vmatprep.subr.bf16.mxu0 %v884_v23  ;;  %416 = vmatprep.subr.bf16.mxu1 %v887_v24 }
  0x16   :  { %393 = vmatprep.mubr.bf16.mxu0 %v902_v1  ;;  %434 = vmatprep.mubr.bf16.mxu1 %v902_v1 }
  0x18   :  { %376 = vmatpush1.bf16.msra.mxu0 %v882_v25  ;;  %417 = vmatpush1.bf16.msra.mxu1 %v885_v26 }
  0x19   :  { %507 = vmatprep.subr.bf16.mxu0 %v890_v27  ;;  %548 = vmatprep.subr.bf16.mxu1 %v893_v28 }
  0x1b   :  { %837 = vmatmul.mubr.msk.bf16.vlgmr.msra.gmra.mxu0 %vm89_vm0, %v309_v29  ;;  %838 = vmatmul.mubr.msk.bf16.vlgmr.msra.gmra.mxu1 %vm89_vm0, %v309_v29 }
  0x1c   :  { %508 = vmatpush1.bf16.msra.mxu0 %v888_v30  ;;  %549 = vmatpush1.bf16.msra.mxu1 %v891_v31 }
  0x1d   :  { %509 = vmatprep.subr.bf16.mxu0 %v896_v32  ;;  %550 = vmatprep.subr.bf16.mxu1 %v899_v33 }
  0x1e   :  { %527 = vmatprep.mubr.bf16.mxu0 %v902_v1  ;;  %568 = vmatprep.mubr.bf16.mxu1 %v902_v1 }
  0x20   :  { %510 = vmatpush1.bf16.msra.mxu0 %v894_v34  ;;  %551 = vmatpush1.bf16.msra.mxu1 %v897_v35 }
  0x23   :  { %847 = vmatmul.mubr.msk.bf16.vlgmr.msra.gmra.mxu0 %vm89_vm0, %v443_v36  ;;  %848 = vmatmul.mubr.msk.bf16.vlgmr.msra.gmra.mxu1 %vm89_vm0, %v443_v36 }
  0xcb   :  { %v1099_v37 = vpop.f32.mrf.mxu0  ;;  %v1101_v38 = vpop.f32.mrf.mxu1 }
  0xcc   :  { %v604_v41 = vmul.f32 %v1099_v37, %v1099_v37  ;;  %v606_v42 = vmul.f32 %v1101_v38, %v1101_v38 }
  0xcd   :  { %v1103_v39 = vpop.f32.mrf.mxu0  ;;  %v1105_v40 = vpop.f32.mrf.mxu1 }
  0xce   :  { %v598_v43 = vadd.f32 %v1103_v39, %v1099_v37  ;;  %v605_v44 = vmul.f32 %v1103_v39, %v1103_v39  ;;  %v607_v52 = vmul.f32 %v1105_v40, %v1105_v40 }
  0xcf   :  { %v131_v45 = vpop.f32.mrf.mxu0  ;;  %v172_v46 = vpop.f32.mrf.mxu1 }
  0xd0   :  { %v599_v47 = vadd.f32 %v598_v43, %v1101_v38  ;;  %v608_v48 = vadd.f32 %v605_v44, %v604_v41 }
  0xd1   :  { %v132_v49 = vpop.f32.mrf.mxu0  ;;  %v173_v50 = vpop.f32.mrf.mxu1 }
  0xd2   :  { %v600_v51 = vadd.f32 %v599_v47, %v1105_v40  ;;  %v609_v53 = vadd.f32 %v608_v48, %v606_v42 }
  0xd3   :  { %v1119_v54 = vpop.f32.mrf.mxu0  ;;  %v1121_v55 = vpop.f32.mrf.mxu1 }
  0xd4   :  { %601 = vadd.xlane.f32.xlu0 %v600_v51  ;;  %v610_v56 = vadd.f32 %v609_v53, %v607_v52  ;;  %v624_v59 = vmul.f32 %v1119_v54, %v1119_v54  ;;  %v626_v60 = vmul.f32 %v1121_v55, %v1121_v55 }
  0xd5   :  { %v1123_v57 = vpop.f32.mrf.mxu0  ;;  %v1125_v58 = vpop.f32.mrf.mxu1 }
  0xd6   :  { %v618_v61 = vadd.f32 %v1123_v57, %v1119_v54  ;;  %v625_v62 = vmul.f32 %v1123_v57, %v1123_v57  ;;  %611 = vadd.xlane.f32.xlu1 %v610_v56  ;;  %v627_v6 = vmul.f32 %v1125_v58, %v1125_v58 }
  0xd7   :  { %v265_v63 = vpop.f32.mrf.mxu0  ;;  %v306_v0 = vpop.f32.mrf.mxu1 }
  0xd8   :  { %v619_v1 = vadd.f32 %v618_v61, %v1121_v55  ;;  %v628_v2 = vadd.f32 %v625_v62, %v624_v59 }
  0xd9   :  { %v266_v3 = vpop.f32.mrf.mxu0  ;;  %v307_v4 = vpop.f32.mrf.mxu1 }
  0xda   :  { %v620_v5 = vadd.f32 %v619_v1, %v1125_v58  ;;  %v629_v7 = vadd.f32 %v628_v2, %v626_v60 }
  0xdb   :  { %v1139_v8 = vpop.f32.mrf.mxu0  ;;  %v1141_v9 = vpop.f32.mrf.mxu1 }
  0xdc   :  { %621 = vadd.xlane.f32.xlu0 %v620_v5  ;;  %v630_v10 = vadd.f32 %v629_v7, %v627_v6  ;;  %v644_v13 = vmul.f32 %v1139_v8, %v1139_v8  ;;  %v646_v14 = vmul.f32 %v1141_v9, %v1141_v9 }
  0xdd   :  { %v1143_v11 = vpop.f32.mrf.mxu0  ;;  %v1145_v12 = vpop.f32.mrf.mxu1 }
  0xde   :  { %v638_v15 = vadd.f32 %v1143_v11, %v1139_v8  ;;  %v645_v16 = vmul.f32 %v1143_v11, %v1143_v11  ;;  %631 = vadd.xlane.f32.xlu1 %v630_v10  ;;  %v647_v24 = vmul.f32 %v1145_v12, %v1145_v12 }
  0xdf   :  { %v399_v17 = vpop.f32.mrf.mxu0  ;;  %v440_v18 = vpop.f32.mrf.mxu1 }
  0xe0   :  { %v639_v19 = vadd.f32 %v638_v15, %v1141_v9  ;;  %v648_v20 = vadd.f32 %v645_v16, %v644_v13  ;;  %v680_v13 = vld [vmem:[%s1262_s8] sm:$0xff] }
  0xe1   :  { %v400_v21 = vpop.f32.mrf.mxu0  ;;  %v441_v22 = vpop.f32.mrf.mxu1  ;;  %v684_v16 = vld [vmem:[%s1263_s9] sm:$0xff] }
  0xe2   :  { %v640_v23 = vadd.f32 %v639_v19, %v1145_v12  ;;  %v649_v25 = vadd.f32 %v648_v20, %v646_v14 }
  0xe3   :  { %v1159_v26 = vpop.f32.mrf.mxu0  ;;  %v1161_v27 = vpop.f32.mrf.mxu1 }
  0xe4   :  { %641 = vadd.xlane.f32.xlu0 %v640_v23  ;;  %v650_v28 = vadd.f32 %v649_v25, %v647_v24  ;;  %v664_v31 = vmul.f32 %v1159_v26, %v1159_v26  ;;  %v666_v32 = vmul.f32 %v1161_v27, %v1161_v27 }
  0xe5   :  { %v1163_v29 = vpop.f32.mrf.mxu0  ;;  %v1165_v30 = vpop.f32.mrf.mxu1 }
  0xe6   :  { %v658_v33 = vadd.f32 %v1163_v29, %v1159_v26  ;;  %v665_v34 = vmul.f32 %v1163_v29, %v1163_v29  ;;  %651 = vadd.xlane.f32.xlu1 %v650_v28  ;;  %v667_v46 = vmul.f32 %v1165_v30, %v1165_v30 }
  0xe7   :  { %v533_v35 = vpop.f32.mrf.mxu0  ;;  %v574_v36 = vpop.f32.mrf.mxu1 }
  0xe8   :  { %v659_v41 = vadd.f32 %v658_v33, %v1161_v27  ;;  %v668_v42 = vadd.f32 %v665_v34, %v664_v31 }
  0xe9   :  { %v534_v43 = vpop.f32.mrf.mxu0  ;;  %v575_v44 = vpop.f32.mrf.mxu1 }
  0xea   :  { %v660_v45 = vadd.f32 %v659_v41, %v1165_v30  ;;  %v669_v47 = vadd.f32 %v668_v42, %v666_v32 }
  0xec   :  { %661 = vadd.xlane.f32.xlu0 %v660_v45  ;;  %v670_v48 = vadd.f32 %v669_v47, %v667_v46 }
  0xee   :  { %671 = vadd.xlane.f32.xlu1 %v670_v48 }
 0x15d   :  { %v602_v49 = vpop.xlane.xlu0 %601 }
 0x15f   :  { %v612_v50 = vpop.xlane.xlu1 %611 }
 0x165   :  { %v622_v51 = vpop.xlane.xlu0 %621 }
 0x166   :  { %v623_v56 = vadd.f32 %v622_v51, %v602_v49 }
 0x167   :  { %v632_v52 = vpop.xlane.xlu1 %631 }
 0x168   :  { %v633_v60 = vadd.f32 %v632_v52, %v612_v50 }
 0x16d   :  { %v642_v53 = vpop.xlane.xlu0 %641 }
 0x16e   :  { %v643_v61 = vadd.f32 %v642_v53, %v623_v56 }
 0x16f   :  { %v652_v59 = vpop.xlane.xlu1 %651 }
 0x170   :  { %v653_v63 = vadd.f32 %v652_v59, %v633_v60 }
 0x175   :  { %v662_v62 = vpop.xlane.xlu0 %661 }
 0x176   :  { %v663_v0 = vadd.f32 %v662_v62, %v643_v61 }
 0x177   :  { %v672_v1 = vpop.xlane.xlu1 %671 }
 0x178   :  { %v675_v2 = vmul.f32 0.00048828125, %v663_v0  ;;  %v673_v3 = vadd.f32 %v672_v1, %v653_v63 }
 0x17a   :  { %v677_v4 = vmul.f32 %v675_v2, %v675_v2  ;;  %v676_v5 = vmul.f32 0.00048828125, %v673_v3 }
 0x17c   :  { %v678_v6 = vsub.f32 %v676_v5, %v677_v4 }
 0x17e   :  { %v679_v7 = vmax.f32 %v678_v6, 0.0 }
 0x180   :  { %v681_v10 = vadd.f32 1e-05, %v679_v7 }
 0x182   :  { %900 = vrsqrt.f32 %v681_v10 }
 0x18f   :  { %v901_v14 = vpop.eup %900 }
 0x190   :  { %v683_v15 = vmul.f32 %v901_v14, %v680_v13 }
 0x192   :  { %689 = vperm.xlu0 %850, %v683_v15   ;;  %v685_v17 = vmul.f32 %v683_v15, %v675_v2 }
 0x194   :  { %v686_v18 = vsub.f32 %v684_v16, %v685_v17 }
 0x196   :  { %698 = vperm.xlu1 %851, %v686_v18  }
 0x20d   :  { %v690_v19 = vpop.permute.xlu0 %689 }
 0x20e   :  { %v692_v20 = vmul.f32 %v690_v19, %v1099_v37  ;;  %v693_v21 = vmul.f32 %v690_v19, %v1103_v39  ;;  %v694_v22 = vmul.f32 %v690_v19, %v1101_v38  ;;  %v695_v23 = vmul.f32 %v690_v19, %v1105_v40 }
 0x20f   :  { %v721_v24 = vmul.f32 %v690_v19, %v1119_v54  ;;  %v722_v25 = vmul.f32 %v690_v19, %v1123_v57  ;;  %v723_v28 = vmul.f32 %v690_v19, %v1121_v55  ;;  %v724_v31 = vmul.f32 %v690_v19, %v1125_v58 }
 0x210   :  { %v745_v32 = vmul.f32 %v690_v19, %v1139_v8  ;;  %v746_v33 = vmul.f32 %v690_v19, %v1143_v11  ;;  %v747_v37 = vmul.f32 %v690_v19, %v1141_v9  ;;  %v748_v39 = vmul.f32 %v690_v19, %v1145_v12 }
 0x211   :  { %v769_v38 = vmul.f32 %v690_v19, %v1159_v26  ;;  %v770_v40 = vmul.f32 %v690_v19, %v1163_v29  ;;  %v771_v54 = vmul.f32 %v690_v19, %v1161_v27  ;;  %v772_v57 = vmul.f32 %v690_v19, %v1165_v30  ;;  %v699_v34 = vpop.permute.xlu1 %698 }
 0x212   :  { %v701_v55 = vadd.f32 %v699_v34, %v692_v20  ;;  %v702_v35 = vadd.f32 %v699_v34, %v693_v21  ;;  %v703_v58 = vadd.f32 %v699_v34, %v694_v22  ;;  %v704_v36 = vadd.f32 %v699_v34, %v695_v23 }
 0x213   :  { %v725_v8 = vadd.f32 %v721_v24, %v699_v34  ;;  %v726_v41 = vadd.f32 %v722_v25, %v699_v34  ;;  %v727_v11 = vadd.f32 %v723_v28, %v699_v34  ;;  %v728_v42 = vadd.f32 %v724_v31, %v699_v34 }
 0x214   :  { %vm705_vm1 = vcmp.ge.f32.partialorder %v701_v55, 0.0  ;;  %vm706_vm2 = vcmp.ge.f32.partialorder %v702_v35, 0.0  ;;  %vm707_vm3 = vcmp.ge.f32.partialorder %v703_v58, 0.0  ;;  %vm708_vm4 = vcmp.ge.f32.partialorder %v704_v36, 0.0 }
 0x215   :  { %v709_v9 = vmul.f32 0.2, %v701_v55  ;;  %v710_v12 = vmul.f32 0.2, %v702_v35  ;;  %v711_v26 = vmul.f32 0.2, %v703_v58  ;;  %v749_v29 = vadd.f32 %v745_v32, %v699_v34 }
 0x216   :  { %v712_v27 = vmul.f32 0.2, %v704_v36  ;;  %vm729_vm5 = vcmp.ge.f32.partialorder %v725_v8, 0.0  ;;  %vm730_vm6 = vcmp.ge.f32.partialorder %v726_v41, 0.0  ;;  %vm731_vm7 = vcmp.ge.f32.partialorder %v727_v11, 0.0 }
 0x217   :  { %v713_v30 = vsel %vm705_vm1, %v701_v55, %v709_v9  ;;  %v714_v43 = vsel %vm706_vm2, %v702_v35, %v710_v12  ;;  %v715_v44 = vsel %vm707_vm3, %v703_v58, %v711_v26  ;;  %vm732_vm8 = vcmp.ge.f32.partialorder %v728_v42, 0.0 }
 0x218   :  { %v716_v45 = vsel %vm708_vm4, %v704_v36, %v712_v27  ;;  %717 = vst [vmem:[%s1264_s10] sm:$0xff] %v713_v30  ;;  %718 = vst [vmem:[%s1264_s10 + $0x8] sm:$0xff] %v714_v43  ;;  %v733_v46 = vmul.f32 0.2, %v725_v8  ;;  %v734_v47 = vmul.f32 0.2, %v726_v41  ;;  %v750_v50 = vadd.f32 %v746_v33, %v699_v34 }
 0x219   :  { %719 = vst [vmem:[%s1264_s10 + $0x10] sm:$0xff] %v715_v44  ;;  %v735_v48 = vmul.f32 0.2, %v727_v11  ;;  %720 = vst [vmem:[%s1264_s10 + $0x18] sm:$0xff] %v716_v45  ;;  %v736_v49 = vmul.f32 0.2, %v728_v42  ;;  %v751_v51 = vadd.f32 %v747_v37, %v699_v34  ;;  %v752_v52 = vadd.f32 %v748_v39, %v699_v34 }
 0x21a   :  { %v737_v53 = vsel %vm729_vm5, %v725_v8, %v733_v46  ;;  %v738_v56 = vsel %vm730_vm6, %v726_v41, %v734_v47  ;;  %vm753_vm9 = vcmp.ge.f32.partialorder %v749_v29, 0.0  ;;  %vm754_vm10 = vcmp.ge.f32.partialorder %v750_v50, 0.0 }
 0x21b   :  { %v739_v59 = vsel %vm731_vm7, %v727_v11, %v735_v48  ;;  %v740_v60 = vsel %vm732_vm8, %v728_v42, %v736_v49  ;;  %741 = vst [vmem:[%s1265_s11] sm:$0xff] %v737_v53  ;;  %742 = vst [vmem:[%s1265_s11 + $0x8] sm:$0xff] %v738_v56  ;;  %vm755_vm11 = vcmp.ge.f32.partialorder %v751_v51, 0.0  ;;  %vm756_vm12 = vcmp.ge.f32.partialorder %v752_v52, 0.0 }
 0x21c   :  { %743 = vst [vmem:[%s1265_s11 + $0x10] sm:$0xff] %v739_v59  ;;  %744 = vst [vmem:[%s1265_s11 + $0x18] sm:$0xff] %v740_v60  ;;  %v757_v61 = vmul.f32 0.2, %v749_v29  ;;  %v758_v62 = vmul.f32 0.2, %v750_v50  ;;  %v773_v0 = vadd.f32 %v769_v38, %v699_v34  ;;  %v774_v2 = vadd.f32 %v770_v40, %v699_v34 }
 0x21d   :  { %v759_v63 = vmul.f32 0.2, %v751_v51  ;;  %v760_v1 = vmul.f32 0.2, %v752_v52  ;;  %v775_v3 = vadd.f32 %v771_v54, %v699_v34  ;;  %v776_v4 = vadd.f32 %v772_v57, %v699_v34 }
 0x21e   :  { %v761_v5 = vsel %vm753_vm9, %v749_v29, %v757_v61  ;;  %v762_v6 = vsel %vm754_vm10, %v750_v50, %v758_v62  ;;  %vm777_vm13 = vcmp.ge.f32.partialorder %v773_v0, 0.0  ;;  %vm778_vm14 = vcmp.ge.f32.partialorder %v774_v2, 0.0 }
 0x21f   :  { %v763_v7 = vsel %vm755_vm11, %v751_v51, %v759_v63  ;;  %v764_v10 = vsel %vm756_vm12, %v752_v52, %v760_v1  ;;  %765 = vst [vmem:[%s1266_s12] sm:$0xff] %v761_v5  ;;  %766 = vst [vmem:[%s1266_s12 + $0x8] sm:$0xff] %v762_v6  ;;  %vm779_vm15 = vcmp.ge.f32.partialorder %v775_v3, 0.0  ;;  %vm780_vm0 = vcmp.ge.f32.partialorder %v776_v4, 0.0 }
 0x220   :  { %767 = vst [vmem:[%s1266_s12 + $0x10] sm:$0xff] %v763_v7  ;;  %768 = vst [vmem:[%s1266_s12 + $0x18] sm:$0xff] %v764_v10  ;;  %v781_v13 = vmul.f32 0.2, %v773_v0  ;;  %v782_v14 = vmul.f32 0.2, %v774_v2 }
 0x221   :  { %v783_v15 = vmul.f32 0.2, %v775_v3  ;;  %v784_v16 = vmul.f32 0.2, %v776_v4 }
 0x222   :  { %v785_v17 = vsel %vm777_vm13, %v773_v0, %v781_v13  ;;  %v786_v18 = vsel %vm778_vm14, %v774_v2, %v782_v14 }
 0x223   :  { %v787_v19 = vsel %vm779_vm15, %v775_v3, %v783_v15  ;;  %v788_v20 = vsel %vm780_vm0, %v776_v4, %v784_v16  ;;  %789 = vst [vmem:[%s1267_s13] sm:$0xff] %v785_v17  ;;  %790 = vst [vmem:[%s1267_s13 + $0x8] sm:$0xff] %v786_v18 }
 0x224   :  { %791 = vst [vmem:[%s1267_s13 + $0x10] sm:$0xff] %v787_v19  ;;  %792 = vst [vmem:[%s1267_s13 + $0x18] sm:$0xff] %v788_v20 }

// kernel: generator_b_forward.13
= control target key start
LH: loop header
LB: loop body
LE: loop exit
PB: predicated region body
PF: predicated region fallthrough
CT: control target
= control target key end

     0   :  { %s915_s12 = smov 0   ;;  %s917_s13 = smov 0   ;;  %s1114_s0 = inlined_call_operand.vmem [shape: bf16[8,72], index: 0, kind: input, shape index: {}]   ;;  %s1115_s1 = inlined_call_operand.vmem [shape: bf16[72,2048], index: 1, kind: input, shape index: {}]   ;;  %s1116_s2 = inlined_call_operand.vmem [shape: f32[8,1], index: 2, kind: input, shape index: {}]   ;;  %s1117_s3 = inlined_call_operand.vmem [shape: f32[8,2048], index: 3, kind: output, shape index: {}]  }
   0x1   :  { %s919_s14 = smov 0  }
   0x2 LB: > { %s758_s15 = sadd.s32 4294967295, %s892_s14   ;;  %s932_s16 = sadd.s32 1, %s892_s14   ;;  %s892_s14 = sphi %s919_s14, %s1120_s14   ;;  %s888_s13 = sphi %s917_s13, %s1119_s13   ;;  %s884_s12 = sphi %s915_s12, %s1118_s12  }
   0x3   : > { %s38_s17 = ssub.s32 %s892_s14, %s932_s16  ;;  %s41_s18 = sadd.s32 1, %s888_s13 }
   0x4   : > { %p39_p0 = scmp.eq.s32.totalorder %s38_s17, 0  ;;  %p48_p1 = scmp.ne.s32.totalorder %s888_s13, %s884_s12 }
   0x5   : > { %p49_p2 = scmp.eq.s32.totalorder %s892_s14, 0  ;;  %p761_p4 = scmp.ge.s32.totalorder %s892_s14, 2 }
   0x6   : > { %s941_s19 = scalar_select %p39_p0, %s888_s13, %s41_s18  }
   0x7   : > { %p50_p3 = por %p49_p2, %p48_p1  ;;  %127 = sbr.rel (%p761_p4) target bundleno = 35 (0x23), region = 24 }
   0xc   : > { %130 = sbr.rel (!%p50_p3) target bundleno = 35 (0x23), region = 28  ;;  %s132_s20 = sand.u32 (%p50_p3), 1, %s888_s13  }
   0xd   : > { %s817_s21 = sshll.u32 (%p50_p3), %s892_s14, 5  ;;  %s818_s22 = smul.u32 (%p50_p3), 288, %s132_s20 }
   0xe   : > { %s949_s25 = scalar_lea.vmem (%p50_p3), %s1115_s1, %s817_s21 }
   0xf   : > { %v150_v0 = vld [vmem:[%s949_s25] sm:$0xff] (%p50_p3)  ;;  %v152_v1 = vld [vmem:[%s949_s25 + $0x8] sm:$0xff] (%p50_p3)  ;;  %v154_v2 = vld [vmem:[%s949_s25 + $0x10] sm:$0xff] (%p50_p3)  ;;  %s957_s26 = scalar_lea.vmem (%p50_p3), [#allocation2], %s818_s22 }
  0x10   : > { %v156_v3 = vld [vmem:[%s949_s25 + $0x18] sm:$0xff] (%p50_p3)  ;;  %v158_v4 = vld [vmem:[%s949_s25 + $0x40] sm:$0xff] (%p50_p3)  ;;  %v160_v5 = vld [vmem:[%s949_s25 + $0x48] sm:$0xff] (%p50_p3)  ;;  %151 = vst [vmem:[%s957_s26] sm:$0xff] (%p50_p3), %v150_v0 }
  0x11   : > { %153 = vst [vmem:[%s957_s26 + $0x8] sm:$0xff] %v152_v1  ;;  %155 = vst [vmem:[%s957_s26 + $0x10] sm:$0xff] %v154_v2  ;;  %v162_v6 = vld [vmem:[%s949_s25 + $0x50] sm:$0xff]  ;;  %v164_v7 = vld [vmem:[%s949_s25 + $0x58] sm:$0xff] }
  0x12   : > { %157 = vst [vmem:[%s957_s26 + $0x18] sm:$0xff] %v156_v3  ;;  %159 = vst [vmem:[%s957_s26 + $0x20] sm:$0xff] %v158_v4  ;;  %v166_v8 = vld [vmem:[%s949_s25 + $0x80] sm:$0xff]  ;;  %v168_v9 = vld [vmem:[%s949_s25 + $0x88] sm:$0xff] }
  0x13   : > { %161 = vst [vmem:[%s957_s26 + $0x28] sm:$0xff] %v160_v5  ;;  %163 = vst [vmem:[%s957_s26 + $0x30] sm:$0xff] %v162_v6  ;;  %v170_v10 = vld [vmem:[%s949_s25 + $0x90] sm:$0xff]  ;;  %v172_v11 = vld [vmem:[%s949_s25 + $0x98] sm:$0xff] }
  0x14   : > { %165 = vst [vmem:[%s957_s26 + $0x38] sm:$0xff] %v164_v7  ;;  %167 = vst [vmem:[%s957_s26 + $0x40] sm:$0xff] %v166_v8  ;;  %v174_v12 = vld [vmem:[%s949_s25 + $0xc0] sm:$0xff]  ;;  %v176_v13 = vld [vmem:[%s949_s25 + $0xc8] sm:$0xff] }
  0x15   : > { %169 = vst [vmem:[%s957_s26 + $0x48] sm:$0xff] %v168_v9  ;;  %171 = vst [vmem:[%s957_s26 + $0x50] sm:$0xff] %v170_v10  ;;  %v178_v14 = vld [vmem:[%s949_s25 + $0xd0] sm:$0xff]  ;;  %v180_v15 = vld [vmem:[%s949_s25 + $0xd8] sm:$0xff] }
  0x16   : > { %173 = vst [vmem:[%s957_s26 + $0x58] sm:$0xff] %v172_v11  ;;  %175 = vst [vmem:[%s957_s26 + $0x60] sm:$0xff] %v174_v12  ;;  %v182_v16 = vld [vmem:[%s949_s25 + $0x100] sm:$0xff]  ;;  %v184_v17 = vld [vmem:[%s949_s25 + $0x108] sm:$0xff] }
  0x17   : > { %177 = vst [vmem:[%s957_s26 + $0x68] sm:$0xff] %v176_v13  ;;  %179 = vst [vmem:[%s957_s26 + $0x70] sm:$0xff] %v178_v14  ;;  %v186_v18 = vld [vmem:[%s949_s25 + $0x110] sm:$0xff]  ;;  %v188_v19 = vld [vmem:[%s949_s25 + $0x118] sm:$0xff] }
  0x18   : > { %181 = vst [vmem:[%s957_s26 + $0x78] sm:$0xff] %v180_v15  ;;  %183 = vst [vmem:[%s957_s26 + $0x80] sm:$0xff] %v182_v16  ;;  %v190_v20 = vld [vmem:[%s949_s25 + $0x140] sm:$0xff]  ;;  %v192_v21 = vld [vmem:[%s949_s25 + $0x148] sm:$0xff] }
  0x19   : > { %185 = vst [vmem:[%s957_s26 + $0x88] sm:$0xff] %v184_v17  ;;  %187 = vst [vmem:[%s957_s26 + $0x90] sm:$0xff] %v186_v18  ;;  %v194_v22 = vld [vmem:[%s949_s25 + $0x150] sm:$0xff]  ;;  %v196_v23 = vld [vmem:[%s949_s25 + $0x158] sm:$0xff] }
  0x1a   : > { %189 = vst [vmem:[%s957_s26 + $0x98] sm:$0xff] %v188_v19  ;;  %191 = vst [vmem:[%s957_s26 + $0xa0] sm:$0xff] %v190_v20  ;;  %v198_v24 = vld [vmem:[%s949_s25 + $0x180] sm:$0xff]  ;;  %v200_v25 = vld [vmem:[%s949_s25 + $0x188] sm:$0xff] }
  0x1b   : > { %193 = vst [vmem:[%s957_s26 + $0xa8] sm:$0xff] %v192_v21  ;;  %195 = vst [vmem:[%s957_s26 + $0xb0] sm:$0xff] %v194_v22  ;;  %v202_v26 = vld [vmem:[%s949_s25 + $0x190] sm:$0xff]  ;;  %v204_v27 = vld [vmem:[%s949_s25 + $0x198] sm:$0xff] }
  0x1c   : > { %197 = vst [vmem:[%s957_s26 + $0xb8] sm:$0xff] %v196_v23  ;;  %199 = vst [vmem:[%s957_s26 + $0xc0] sm:$0xff] %v198_v24  ;;  %v206_v28 = vld [vmem:[%s949_s25 + $0x1c0] sm:$0xff]  ;;  %v208_v29 = vld [vmem:[%s949_s25 + $0x1c8] sm:$0xff] }
  0x1d   : > { %201 = vst [vmem:[%s957_s26 + $0xc8] sm:$0xff] %v200_v25  ;;  %203 = vst [vmem:[%s957_s26 + $0xd0] sm:$0xff] %v202_v26  ;;  %v210_v30 = vld [vmem:[%s949_s25 + $0x1d0] sm:$0xff]  ;;  %v212_v31 = vld [vmem:[%s949_s25 + $0x1d8] sm:$0xff] }
  0x1e   : > { %205 = vst [vmem:[%s957_s26 + $0xd8] sm:$0xff] %v204_v27  ;;  %207 = vst [vmem:[%s957_s26 + $0xe0] sm:$0xff] %v206_v28  ;;  %v214_v32 = vld [vmem:[%s949_s25 + $0x200] sm:$0xff]  ;;  %v216_v33 = vld [vmem:[%s949_s25 + $0x208] sm:$0xff] }
  0x1f   : > { %209 = vst [vmem:[%s957_s26 + $0xe8] sm:$0xff] %v208_v29  ;;  %211 = vst [vmem:[%s957_s26 + $0xf0] sm:$0xff] %v210_v30  ;;  %v218_v34 = vld [vmem:[%s949_s25 + $0x210] sm:$0xff]  ;;  %v220_v35 = vld [vmem:[%s949_s25 + $0x218] sm:$0xff] }
  0x20   : > { %213 = vst [vmem:[%s957_s26 + $0xf8] sm:$0xff] %v212_v31  ;;  %215 = vst [vmem:[%s957_s26 + $0x100] sm:$0xff] %v214_v32 }
  0x21   : > { %217 = vst [vmem:[%s957_s26 + $0x108] sm:$0xff] %v216_v33  ;;  %219 = vst [vmem:[%s957_s26 + $0x110] sm:$0xff] %v218_v34 }
  0x22   : > { %221 = vst [vmem:[%s957_s26 + $0x118] sm:$0xff] %v220_v35 }
  0x23 PF: > { %p764_p5 = scmp.ge.s32.totalorder %s892_s14, 1  ;;  %p226_p6 = scmp.lt.s32.totalorder %s892_s14, 3 }
  0x25   : > { %p227_p7 = pnand %p764_p5, %p226_p6 }
  0x26   : > { %s233_s27 = sand.u32 (!%p227_p7), 1, %s884_s12   ;;  %s765_s7 = sshll.u32 (!%p227_p7), %s758_s15, 3 }
  0x27   : > { %230 = sbr.rel (%p227_p7) target bundleno = 301 (0x12d), region = 51  ;;  %p258_p8 = scmp.lt.s32.totalorder (!%p227_p7), %s765_s7, 15 }
  0x28   : > { %s819_s28 = smul.u32 (!%p227_p7), 288, %s233_s27 }
  0x2a   : > { %s1034_s4 = scalar_lea.vmem (!%p227_p7), [#allocation2], %s819_s28 }
  0x2c   : > { %v894_v36 = vmov 0   ;;  %v301_v37 = vld [vmem:[%s1116_s2] sm:$0xff]  ;;  %vm491_vm0 = vcmask 1043456   ;;  %v298_v39 = vld [vmem:[%s1034_s4 + $0x108] sm:$0xff]  ;;  %v299_v12 = vld [vmem:[%s1034_s4 + $0x110] sm:$0xff]  ;;  %vm487_vm1 = vcmask 588800  }
  0x2d   : > { %548 = vmatprep.mubr.bf16.mxu0 %v894_v36  ;;  %589 = vmatprep.mubr.bf16.mxu1 %v894_v36  ;;  %v297_v38 = vld [vmem:[%s1034_s4 + $0x100] sm:$0xff]  ;;  %v802_v42 = vcombine.high %v298_v39, %v298_v39  ;;  %v801_v44 = vcombine.low %v298_v39, %v298_v39  ;;  %v290_v46 = vld [vmem:[%s1034_s4 + $0xc8] sm:$0xff]  ;;  %v300_v13 = vld [vmem:[%s1034_s4 + $0x118] sm:$0xff]  ;;  %v804_v16 = vcombine.high %v299_v12, %v299_v12  ;;  %s1122_s7 = smov (!%p258_p8, %s765_s7), 15 }
  0x2e   : > { %845 = vset.pattern.permute.xlu0 %v894_v36  ;;  %v289_v40 = vld [vmem:[%s1034_s4 + $0xc0] sm:$0xff]  ;;  %v800_v41 = vcombine.high %v297_v38, %v297_v38  ;;  %v799_v43 = vcombine.low %v297_v38, %v297_v38  ;;  %v294_v47 = vld [vmem:[%s1034_s4 + $0xe8] sm:$0xff]  ;;  %v806_v17 = vcombine.high %v300_v13, %v300_v13  ;;  %v803_v18 = vcombine.low %v299_v12, %v299_v12  ;;  %v291_v20 = vld [vmem:[%s1034_s4 + $0xd0] sm:$0xff]  ;;  %s766_s8 = sshll.u32 %s1122_s7, 3 }
  0x2f   : > { %304 = vperm.xlu0 %845, %v301_v37   ;;  %v293_v45 = vld [vmem:[%s1034_s4 + $0xe0] sm:$0xff]  ;;  %v794_v49 = vcombine.high %v290_v46, %v294_v47  ;;  %v282_v52 = vld [vmem:[%s1034_s4 + $0x88] sm:$0xff]  ;;  %809 = vmatprep.subr.msk.bf16.mxu1 %vm491_vm0, %v802_v42  ;;  %v499_v54 = vsel %vm491_vm0, %v801_v44, 0  ;;  %v793_v57 = vcombine.low %v290_v46, %v294_v47  ;;  %v805_v19 = vcombine.low %v300_v13, %v300_v13  ;;  %v295_v21 = vld [vmem:[%s1034_s4 + $0xf0] sm:$0xff]  ;;  %s1094_s11 = scalar_lea.vmem %s1117_s3, %s766_s8 }
  0x30   : > { %v792_v48 = vcombine.high %v289_v40, %v293_v45  ;;  %v281_v50 = vld [vmem:[%s1034_s4 + $0x80] sm:$0xff]  ;;  %807 = vmatprep.subr.msk.bf16.mxu0 %vm491_vm0, %v800_v41  ;;  %v493_v53 = vsel %vm491_vm0, %v799_v43, 0  ;;  %v286_v55 = vld [vmem:[%s1034_s4 + $0xa8] sm:$0xff]  ;;  %564 = vmatpush1.bf16.msra.mxu1 %v499_v54  ;;  %v791_v56 = vcombine.low %v289_v40, %v293_v45  ;;  %v292_v22 = vld [vmem:[%s1034_s4 + $0xd8] sm:$0xff]  ;;  %v505_v25 = vsel %vm491_vm0, %v803_v18, 0 }
  0x31   : > { %v285_v51 = vld [vmem:[%s1034_s4 + $0xa0] sm:$0xff]  ;;  %523 = vmatpush1.bf16.msra.mxu0 %v493_v53  ;;  %565 = vmatprep.subr.bf16.mxu1 %v794_v49  ;;  %v786_v59 = vcombine.high %v282_v52, %v286_v55  ;;  %v274_v62 = vld [vmem:[%s1034_s4 + $0x48] sm:$0xff]  ;;  %v785_v1 = vcombine.low %v282_v52, %v286_v55  ;;  %v296_v23 = vld [vmem:[%s1034_s4 + $0xf8] sm:$0xff]  ;;  %v511_v26 = vsel %vm491_vm0, %v805_v19, 0  ;;  %v796_v27 = vcombine.high %v291_v20, %v295_v21 }
  0x32   : > { %524 = vmatprep.subr.bf16.mxu0 %v792_v48  ;;  %v784_v58 = vcombine.high %v281_v50, %v285_v51  ;;  %v273_v60 = vld [vmem:[%s1034_s4 + $0x40] sm:$0xff]  ;;  %v278_v63 = vld [vmem:[%s1034_s4 + $0x68] sm:$0xff]  ;;  %v783_v0 = vcombine.low %v281_v50, %v285_v51  ;;  %v798_v28 = vcombine.high %v292_v22, %v296_v23  ;;  %v283_v29 = vld [vmem:[%s1034_s4 + $0x90] sm:$0xff]  ;;  %v795_v33 = vcombine.low %v291_v20, %v295_v21 }
  0x33   : > { %v277_v61 = vld [vmem:[%s1034_s4 + $0x60] sm:$0xff]  ;;  %v778_v3 = vcombine.high %v274_v62, %v278_v63  ;;  %v266_v6 = vld [vmem:[%s1034_s4 + $0x8] sm:$0xff]  ;;  %v777_v9 = vcombine.low %v274_v62, %v278_v63  ;;  %v287_v30 = vld [vmem:[%s1034_s4 + $0xb0] sm:$0xff]  ;;  %v797_v34 = vcombine.low %v292_v22, %v296_v23 }
  0x34   : > { %566 = vmatpush1.bf16.msra.mxu1 %v793_v57  ;;  %v776_v2 = vcombine.high %v273_v60, %v277_v61  ;;  %v265_v4 = vld [vmem:[%s1034_s4] sm:$0xff]  ;;  %v270_v7 = vld [vmem:[%s1034_s4 + $0x28] sm:$0xff]  ;;  %v775_v8 = vcombine.low %v273_v60, %v277_v61  ;;  %v284_v31 = vld [vmem:[%s1034_s4 + $0x98] sm:$0xff]  ;;  %v788_v35 = vcombine.high %v283_v29, %v287_v30  ;;  %v787_v42 = vcombine.low %v283_v29, %v287_v30 }
  0x35   : > { %525 = vmatpush1.bf16.msra.mxu0 %v791_v56  ;;  %567 = vmatprep.subr.bf16.mxu1 %v786_v59  ;;  %v269_v5 = vld [vmem:[%s1034_s4 + $0x20] sm:$0xff]  ;;  %v770_v11 = vcombine.high %v266_v6, %v270_v7  ;;  %v769_v15 = vcombine.low %v266_v6, %v270_v7  ;;  %v288_v32 = vld [vmem:[%s1034_s4 + $0xb8] sm:$0xff]  ;;  %v275_v38 = vld [vmem:[%s1034_s4 + $0x50] sm:$0xff] }
  0x36   : > { %526 = vmatprep.subr.bf16.mxu0 %v784_v58  ;;  %v768_v10 = vcombine.high %v265_v4, %v269_v5  ;;  %v767_v14 = vcombine.low %v265_v4, %v269_v5  ;;  %v264_v24 = vld [vmem:[%s1114_s0] sm:$0xf]  ;;  %v790_v37 = vcombine.high %v284_v31, %v288_v32  ;;  %v279_v39 = vld [vmem:[%s1034_s4 + $0x70] sm:$0xff]  ;;  %v276_v40 = vld [vmem:[%s1034_s4 + $0x58] sm:$0xff]  ;;  %v789_v43 = vcombine.low %v284_v31, %v288_v32 }
  0x37   : > { %v280_v41 = vld [vmem:[%s1034_s4 + $0x78] sm:$0xff]  ;;  %v780_v44 = vcombine.high %v275_v38, %v279_v39  ;;  %v267_v46 = vld [vmem:[%s1034_s4 + $0x10] sm:$0xff]  ;;  %v779_v50 = vcombine.low %v275_v38, %v279_v39 }
  0x38   : > { %568 = vmatpush1.bf16.msra.mxu1 %v785_v1  ;;  %v782_v45 = vcombine.high %v276_v40, %v280_v41  ;;  %v271_v47 = vld [vmem:[%s1034_s4 + $0x30] sm:$0xff]  ;;  %v268_v48 = vld [vmem:[%s1034_s4 + $0x18] sm:$0xff]  ;;  %v781_v51 = vcombine.low %v276_v40, %v280_v41 }
  0x39   : > { %527 = vmatpush1.bf16.msra.mxu0 %v783_v0  ;;  %569 = vmatprep.subr.bf16.mxu1 %v778_v3  ;;  %v272_v49 = vld [vmem:[%s1034_s4 + $0x38] sm:$0xff]  ;;  %v771_v53 = vcombine.low %v267_v46, %v271_v47 }
  0x3a   : > { %528 = vmatprep.subr.bf16.mxu0 %v776_v2  ;;  %v774_v52 = vcombine.high %v268_v48, %v272_v49  ;;  %v773_v54 = vcombine.low %v268_v48, %v272_v49 }
  0x3c   : > { %570 = vmatpush1.bf16.msra.mxu1 %v777_v9 }
  0x3d   : > { %529 = vmatpush1.bf16.msra.mxu0 %v775_v8  ;;  %571 = vmatprep.subr.bf16.mxu1 %v770_v11 }
  0x3e   : > { %530 = vmatprep.subr.bf16.mxu0 %v768_v10 }
  0x40   : > { %572 = vmatpush1.bf16.msra.mxu1 %v769_v15 }
  0x41   : > { %531 = vmatpush1.bf16.msra.mxu0 %v767_v14  ;;  %813 = vmatprep.subr.msk.bf16.mxu1 %vm491_vm0, %v806_v17 }
  0x42   : > { %811 = vmatprep.subr.msk.bf16.mxu0 %vm491_vm0, %v804_v16 }
  0x43   : > { %810 = vmatmul.mubr.msk.bf16.vlgmr.msra.gmra.mxu1 %vm487_vm1, %v264_v24 }
  0x44   : > { %808 = vmatmul.mubr.msk.bf16.vlgmr.msra.gmra.mxu0 %vm487_vm1, %v264_v24  ;;  %646 = vmatpush1.bf16.msra.mxu1 %v511_v26 }
  0x45   : > { %605 = vmatpush1.bf16.msra.mxu0 %v505_v25  ;;  %647 = vmatprep.subr.bf16.mxu1 %v798_v28 }
  0x46   : > { %606 = vmatprep.subr.bf16.mxu0 %v796_v27  ;;  %630 = vmatprep.mubr.bf16.mxu0 %v894_v36 }
  0x47   : > { %671 = vmatprep.mubr.bf16.mxu1 %v894_v36  ;;  %v772_v36 = vcombine.high %v267_v46, %v271_v47 }
  0x48   : > { %648 = vmatpush1.bf16.msra.mxu1 %v797_v34 }
  0x49   : > { %607 = vmatpush1.bf16.msra.mxu0 %v795_v33  ;;  %649 = vmatprep.subr.bf16.mxu1 %v790_v37 }
  0x4a   : > { %608 = vmatprep.subr.bf16.mxu0 %v788_v35 }
  0x4c   : > { %650 = vmatpush1.bf16.msra.mxu1 %v789_v43 }
  0x4d   : > { %609 = vmatpush1.bf16.msra.mxu0 %v787_v42  ;;  %651 = vmatprep.subr.bf16.mxu1 %v782_v45 }
  0x4e   : > { %610 = vmatprep.subr.bf16.mxu0 %v780_v44 }
  0x50   : > { %652 = vmatpush1.bf16.msra.mxu1 %v781_v51 }
  0x51   : > { %611 = vmatpush1.bf16.msra.mxu0 %v779_v50  ;;  %653 = vmatprep.subr.bf16.mxu1 %v774_v52 }
  0x52   : > { %612 = vmatprep.subr.bf16.mxu0 %v772_v36 }
  0x54   : > { %654 = vmatpush1.bf16.msra.mxu1 %v773_v54 }
  0x55   : > { %613 = vmatpush1.bf16.msra.mxu0 %v771_v53 }
  0x57   : > { %814 = vmatmul.mubr.msk.bf16.vlgmr.msra.gmra.mxu1 %vm487_vm1, %v264_v24 }
  0x58   : > { %812 = vmatmul.mubr.msk.bf16.vlgmr.msra.gmra.mxu0 %vm487_vm1, %v264_v24 }
  0xaa   : > { %v305_v55 = vpop.permute.xlu0 %304 }
 0x103   : > { %v591_v57 = vpop.f32.mrf.mxu1 }
 0x104   : > { %v550_v56 = vpop.f32.mrf.mxu0  ;;  %v592_v59 = vadd.f32 %v591_v57, %v305_v55 }
 0x105   : > { %v551_v58 = vadd.f32 %v550_v56, %v305_v55  ;;  %v593_v61 = vpop.f32.mrf.mxu1 }
 0x106   : > { %v552_v60 = vpop.f32.mrf.mxu0  ;;  %v594_v63 = vadd.f32 %v593_v61, %v305_v55 }
 0x107   : > { %854 = vtanh.f32 %v551_v58  ;;  %v553_v62 = vadd.f32 %v552_v60, %v305_v55  ;;  %v595_v1 = vpop.f32.mrf.mxu1 }
 0x108   : > { %856 = vtanh.f32 %v592_v59  ;;  %v554_v0 = vpop.f32.mrf.mxu0 }
 0x109   : > { %858 = vtanh.f32 %v553_v62  ;;  %v596_v3 = vpop.f32.mrf.mxu1 }
 0x10a   : > { %860 = vtanh.f32 %v594_v63  ;;  %v555_v2 = vpop.f32.mrf.mxu0 }
 0x114   : > { %v855_v4 = vpop.eup %854 }
 0x115   : > { %v857_v5 = vpop.eup %856  ;;  %688 = vst [vmem:[%s1094_s11] sm:$0xff] %v855_v4 }
 0x116   : > { %v859_v6 = vpop.eup %858  ;;  %690 = vst [vmem:[%s1094_s11 + $0x10] sm:$0xff] %v857_v5 }
 0x117   : > { %v861_v7 = vpop.eup %860  ;;  %689 = vst [vmem:[%s1094_s11 + $0x8] sm:$0xff] %v859_v6  ;;  %v673_v9 = vpop.f32.mrf.mxu1 }
 0x118   : > { %691 = vst [vmem:[%s1094_s11 + $0x18] sm:$0xff] %v861_v7  ;;  %v632_v8 = vpop.f32.mrf.mxu0  ;;  %v674_v11 = vadd.f32 %v673_v9, %v305_v55 }
 0x119   : > { %v633_v10 = vadd.f32 %v632_v8, %v305_v55  ;;  %v675_v13 = vpop.f32.mrf.mxu1 }
 0x11a   : > { %v634_v12 = vpop.f32.mrf.mxu0  ;;  %v676_v15 = vadd.f32 %v675_v13, %v305_v55 }
 0x11b   : > { %862 = vtanh.f32 %v633_v10  ;;  %v635_v14 = vadd.f32 %v634_v12, %v305_v55  ;;  %v677_v17 = vpop.f32.mrf.mxu1 }
 0x11c   : > { %864 = vtanh.f32 %v674_v11  ;;  %v636_v16 = vpop.f32.mrf.mxu0 }
 0x11d   : > { %866 = vtanh.f32 %v635_v14  ;;  %v678_v19 = vpop.f32.mrf.mxu1 }
 0x11e   : > { %868 = vtanh.f32 %v676_v15  ;;  %v637_v18 = vpop.f32.mrf.mxu0 }
 0x128   : > { %v863_v20 = vpop.eup %862 }
 0x129   : > { %v865_v21 = vpop.eup %864  ;;  %692 = vst [vmem:[%s1094_s11 + $0x20] sm:$0xff] %v863_v20 }
 0x12a   : > { %v867_v22 = vpop.eup %866  ;;  %694 = vst [vmem:[%s1094_s11 + $0x30] sm:$0xff] %v865_v21 }
 0x12b   : > { %v869_v23 = vpop.eup %868  ;;  %693 = vst [vmem:[%s1094_s11 + $0x28] sm:$0xff] %v867_v22 }
 0x12c   : > { %695 = vst [vmem:[%s1094_s11 + $0x38] sm:$0xff] %v869_v23 }
 0x12d PF: > { %p10_p9 = scmp.ge.s32.totalorder %s932_s16, 4   ;;  %s1118_s12 = smov %s888_s13 }
 0x12e   : > { %s1119_s13 = smov %s941_s19  ;;  %s1120_s14 = smov %s932_s16 }
 0x12f   :  { %12 = sbr.rel (!%p10_p9) target bundleno = 2 (0x2), region = 90 }

</bundles_post_ra>
